<compile_context>
chip_gen: v6e
topology: v6e:2x2x1
jax: 0.10.0
libtpu: 0.0.40
codegen_flags: <defaults>
</compile_context>

<pallas_src>
from functools import partial

import jax
import jax.numpy as jnp
import numpy as np
from jax.experimental import pallas as pl
from jax.experimental.pallas import tpu as pltpu

NEG_SLOPE = 0.01   # nn.LeakyReLU default negative_slope
BN_EPS = 1e-5      # nn.BatchNorm2d default eps


def make_conv_block_kernel(N, H, W, Cin, Cout, PAD, conv_dtype):
    Hp, Wp = H + 2, W + 2
    R = N * Hp * Wp                       # flattened padded pixel count (lane axis)
    Rbig = R + 2 * PAD
    R_floor = (R // 128) * 128            # for lane-aligned halo zeroing of the tail
    inv_count = 1.0 / float(N * H * W)    # BatchNorm2d train-mode element count per channel

    def kernel(x_ref, w1_ref, g1_ref, be1_ref, w2_ref, g2_ref, be2_ref,
               o_ref, xbuf_ref, ybig_ref, mask_ref):
        # ---- in-kernel relayout: NCHW rows -> zero-padded lane-dense (Cin, Rbig) -------
        # The same loop also builds the interior-validity mask (replaces the former
        # f32 HBM mask input).  Full zero-init gives the halo rows/columns for free.
        xbuf_ref[...] = jnp.zeros(xbuf_ref.shape, xbuf_ref.dtype)
        mask_ref[...] = jnp.zeros(mask_ref.shape, mask_ref.dtype)
        ones_row = jnp.ones((1, W), jnp.float32)
        for n in range(N):
            xn = x_ref[n].astype(xbuf_ref.dtype)          # (Cin, H*W): load + cast once/image
            for h in range(H):
                dst = n * Hp * Wp + (h + 1) * Wp + 1      # interior row start (R-space)
                xbuf_ref[:, pl.ds(PAD + dst, W)] = xn[:, h * W:(h + 1) * W]
                mask_ref[:, pl.ds(dst, W)] = ones_row

        mask = mask_ref[...]                              # (1, R): 1.0 on valid pixels

        def conv3x3(src_ref, w_ref):
            # 9 accumulating K=C MXU matmuls on statically lane-shifted views of the
            # halo-padded source (no packed tap stack -> no extra VMEM store+reload).
            acc = None
            for t in range(9):
                ky, kx = t // 3, t % 3
                off = PAD + (ky - 1) * Wp + (kx - 1)      # static lane offset of this tap
                part = jnp.dot(w_ref[t], src_ref[:, pl.ds(off, R)],
                               preferred_element_type=jnp.float32)   # (Cout, R) f32
                acc = part if acc is None else acc + part
            return acc

        def bn_lrelu(acc, g_ref, be_ref):
            # Train-mode BatchNorm over valid pixels (biased variance), fused single pass,
            # then apply as a precomputed per-channel scale/shift (2 VPU ops/element).
            am = acc * mask
            s1 = jnp.sum(am, axis=1, keepdims=True)       # (Cout, 1)
            s2 = jnp.sum(am * acc, axis=1, keepdims=True)
            mean = s1 * inv_count
            var = jnp.maximum(s2 * inv_count - mean * mean, 0.0)   # clamp: f32 cancellation guard
            scale = g_ref[...] * jax.lax.rsqrt(var + BN_EPS)       # (Cout, 1)
            shift = be_ref[...] - mean * scale
            y = acc * scale + shift
            return jnp.maximum(y, NEG_SLOPE * y)          # LeakyReLU (0 < slope < 1)

        # conv1 -> BN1 -> LeakyReLU
        y1 = bn_lrelu(conv3x3(xbuf_ref, w1_ref), g1_ref, be1_ref)

        # Masked activation into the halo-padded conv2 source.  Only the two halo lane
        # ranges are zeroed (lane-aligned stores); the interior is fully overwritten.
        ybig_ref[:, pl.ds(0, PAD)] = jnp.zeros((Cout, PAD), ybig_ref.dtype)
        tail = Rbig - (PAD + R_floor)
        ybig_ref[:, pl.ds(PAD + R_floor, tail)] = jnp.zeros((Cout, tail), ybig_ref.dtype)
        ybig_ref[:, pl.ds(PAD, R)] = (y1 * mask).astype(ybig_ref.dtype)

        # conv2 -> BN2 -> LeakyReLU
        y2 = bn_lrelu(conv3x3(ybig_ref, w2_ref), g2_ref, be2_ref)

        # Scatter valid (cropped) rows straight into the NCHW-flattened (N*Cout, H*W)
        # output: no wrapper-side crop/transpose, minimal HBM writeback.
        for n in range(N):
            for h in range(H):
                src = n * Hp * Wp + (h + 1) * Wp + 1
                o_ref[pl.ds(n * Cout, Cout), pl.ds(h * W, W)] = y2[:, src:src + W]

    return kernel


@partial(jax.jit, static_argnames=("conv_dtype",))
def conv_block_forward(x_nchw, params, conv_dtype=jnp.bfloat16):
    """Pallas implementation of conv_block.forward.  x_nchw: (N, Cin, H, W), like PyTorch."""
    # b1 / b2 are accepted but unused: a per-channel bias added before train-mode BatchNorm
    # is cancelled exactly by the batch-mean subtraction (zero effect on the output).
    # TODO(synk): re-add the biases if this is ever reused with eval-mode (running-stats) BN;
    # the running-stats side-effect of nn.BatchNorm2d training is not modeled here.
    w1, b1, g1, be1, w2, b2, g2, be2 = params
    del b1, b2
    N, Cin, H, W = x_nchw.shape
    Cout = w1.shape[0]
    Hp, Wp = H + 2, W + 2
    R = N * Hp * Wp
    PAD = ((Wp + 1 + 127) // 128) * 128      # lane halo (>= Wp+1, 128-aligned so the big
    Rbig = R + 2 * PAD                       # interior store / centre tap stay lane-aligned)
    isz = jnp.dtype(conv_dtype).itemsize

    # Free reshape only: the kernel does the padding/relayout/cast internally.
    x3 = x_nchw.reshape(N, Cin, H * W)

    # PyTorch OIHW weights -> (9, Cout, C) tap-major stack for the per-tap matmuls.
    def pack(w):
        return jnp.transpose(w, (2, 3, 0, 1)).reshape(9, w.shape[0], w.shape[1]).astype(conv_dtype)

    def col(v):
        return v.reshape(-1, 1).astype(jnp.float32)

    kernel = make_conv_block_kernel(N, H, W, Cin, Cout, PAD, conv_dtype)
    args = (x3, pack(w1), col(g1), col(be1), pack(w2), col(g2), col(be2))

    # VMEM limit ~2x the live set (no pipelining to double-buffer), clamped to 48 MiB so we
    # never request v7x's whole 64 MiB per-core VMEM.
    live = ((N * Cin * H * W + N * Cout * H * W) * 4      # x input + output (f32, VMEM-resident)
            + (Cin + Cout) * Rbig * isz                   # xbuf + ybig scratch
            + 4 * Cout * R * 4                            # transient acc / y1 / y2 f32 values
            + R * 4)                                      # mask scratch
    vmem_bytes = int(min(max(2 * live, 16 * 2**20), 48 * 2**20))

    vmem = pl.BlockSpec(memory_space=pltpu.MemorySpace.VMEM)
    out2d = pl.pallas_call(
        kernel,
        out_shape=jax.ShapeDtypeStruct((N * Cout, H * W), jnp.float32),
        in_specs=[vmem] * len(args),
        out_specs=vmem,
        scratch_shapes=[pltpu.VMEM((Cin, Rbig), conv_dtype),    # halo-padded input buffer
                        pltpu.VMEM((Cout, Rbig), conv_dtype),   # halo-padded y1 (conv2 source)
                        pltpu.VMEM((1, R), jnp.float32)],       # interior-validity mask
        compiler_params=pltpu.CompilerParams(vmem_limit_bytes=vmem_bytes),
    )(*args)

    return out2d.reshape(N, Cout, H, W)       # free reshape: output is already NCHW order


def conv_block_ref(x, params):
    """Pure-JAX f32 reference matching the PyTorch module (training-mode BatchNorm)."""
    w1, b1, g1, be1, w2, b2, g2, be2 = params

    def conv(x, w, b):
        y = jax.lax.conv_general_dilated(
            x, w, window_strides=(1, 1), padding="SAME",
            dimension_numbers=("NCHW", "OIHW", "NCHW"))
        return y + b[None, :, None, None]

    def bn(x, g, be):
        m = jnp.mean(x, axis=(0, 2, 3), keepdims=True)
        v = jnp.mean((x - m) ** 2, axis=(0, 2, 3), keepdims=True)
        return (x - m) * jax.lax.rsqrt(v + BN_EPS) * g[None, :, None, None] + be[None, :, None, None]

    def lrelu(x):
        return jnp.where(x >= 0, x, NEG_SLOPE * x)

    y = lrelu(bn(conv(x, w1, b1), g1, be1))
    y = lrelu(bn(conv(y, w2, b2), g2, be2))
    return y


if __name__ == "__main__":
    key = jax.random.PRNGKey(0)
    N, Cin, Cout, H, W = 2, 4, 8, 16, 16
    ks = jax.random.split(key, 9)

    x = jax.random.normal(ks[0], (N, Cin, H, W), jnp.float32)
    # deterministic synthetic parameters (shapes per nn.Conv2d / nn.BatchNorm2d in __init__)
    w1 = 0.2 * jax.random.normal(ks[1], (Cout, Cin, 3, 3), jnp.float32)
    b1 = 0.1 * jax.random.normal(ks[2], (Cout,), jnp.float32)
    g1 = 1.0 + 0.1 * jax.random.normal(ks[3], (Cout,), jnp.float32)
    be1 = 0.1 * jax.random.normal(ks[4], (Cout,), jnp.float32)
    w2 = 0.2 * jax.random.normal(ks[5], (Cout, Cout, 3, 3), jnp.float32)
    b2 = 0.1 * jax.random.normal(ks[6], (Cout,), jnp.float32)
    g2 = 1.0 + 0.1 * jax.random.normal(ks[7], (Cout,), jnp.float32)
    be2 = 0.1 * jax.random.normal(ks[8], (Cout,), jnp.float32)
    params = (w1, b1, g1, be1, w2, b2, g2, be2)

    ref = jax.block_until_ready(conv_block_ref(x, params))

    # f32-operand variant: tight check against the PyTorch-semantics reference.
    out_f32 = jax.block_until_ready(conv_block_forward(x, params, conv_dtype=jnp.float32))
    assert out_f32.shape == (N, Cout, H, W), out_f32.shape
    if not np.allclose(np.asarray(out_f32), np.asarray(ref), rtol=2e-3, atol=2e-3):
        raise AssertionError(
            "f32 variant mismatch vs reference, max abs diff = %g"
            % float(np.max(np.abs(np.asarray(out_f32) - np.asarray(ref)))))

    # default bf16-operand variant (full-rate MXU on v6e/v7x); looser tolerance reflects
    # bf16 rounding of the conv operands only (all accumulation + BN math stays in f32).
    out_bf16 = jax.block_until_ready(conv_block_forward(x, params))
    assert out_bf16.shape == (N, Cout, H, W), out_bf16.shape
    if not np.allclose(np.asarray(out_bf16), np.asarray(ref), rtol=6e-2, atol=6e-2):
        raise AssertionError(
            "bf16 variant mismatch vs reference, max abs diff = %g"
            % float(np.max(np.abs(np.asarray(out_bf16) - np.asarray(ref)))))

    print("KERNEL_OK")
</pallas_src>

<mosaic_0001>
module attributes {stable_mosaic.version = 11 : i64} {
  func.func @kernel(%arg0: memref<2x4x256xf32, #tpu.memory_space<vmem>>, %arg1: memref<9x8x4xf32, #tpu.memory_space<vmem>>, %arg2: memref<8x1xf32, #tpu.memory_space<vmem>>, %arg3: memref<8x1xf32, #tpu.memory_space<vmem>>, %arg4: memref<9x8x8xf32, #tpu.memory_space<vmem>>, %arg5: memref<8x1xf32, #tpu.memory_space<vmem>>, %arg6: memref<8x1xf32, #tpu.memory_space<vmem>>, %arg7: memref<16x256xf32, #tpu.memory_space<vmem>>, %arg8: memref<4x904xf32, #tpu.memory_space<vmem>>, %arg9: memref<8x904xf32, #tpu.memory_space<vmem>>, %arg10: memref<1x648xf32, #tpu.memory_space<vmem>>) attributes {dimension_semantics = [], scalar_prefetch = 0 : i64, scratch_operands = 3 : i64, tpu.core_type = #tpu.core_type<tc>} {
    %cst = arith.constant 0.000000e+00 : f32
    %0 = vector.broadcast %cst : f32 to vector<4x904xf32>
    %c0 = arith.constant 0 : index
    %c0_0 = arith.constant 0 : index
    %1 = vector.load %arg8[%c0, %c0_0] : memref<4x904xf32, #tpu.memory_space<vmem>>, vector<4x904xf32>
    tpu.vector_store %arg8[%c0, %c0_0], %0 {strides = array<i32>} : memref<4x904xf32, #tpu.memory_space<vmem>>, vector<4x904xf32>,
    %cst_1 = arith.constant 0.000000e+00 : f32
    %2 = vector.broadcast %cst_1 : f32 to vector<1x648xf32>
    %c0_2 = arith.constant 0 : index
    %c0_3 = arith.constant 0 : index
    %3 = vector.load %arg10[%c0_2, %c0_3] : memref<1x648xf32, #tpu.memory_space<vmem>>, vector<1x648xf32>
    tpu.vector_store %arg10[%c0_2, %c0_3], %2 {strides = array<i32>} : memref<1x648xf32, #tpu.memory_space<vmem>>, vector<1x648xf32>,
    %cst_4 = arith.constant 1.000000e+00 : f32
    %4 = vector.broadcast %cst_4 : f32 to vector<1x16xf32>
    %c0_5 = arith.constant 0 : index
    %c0_6 = arith.constant 0 : index
    %c0_7 = arith.constant 0 : index
    %5 = vector.load %arg0[%c0_5, %c0_6, %c0_7] : memref<2x4x256xf32, #tpu.memory_space<vmem>>, vector<1x4x256xf32>
    %6 = vector.shape_cast %5 : vector<1x4x256xf32> to vector<4x256xf32>
    %7 = vector.extract_strided_slice %6 {offsets = [0, 0], sizes = [4, 16], strides = [1, 1]} : vector<4x256xf32> to vector<4x16xf32>
    %c0_8 = arith.constant 0 : index
    %c147 = arith.constant 147 : index
    %8 = vector.load %arg8[%c0_8, %c147] : memref<4x904xf32, #tpu.memory_space<vmem>>, vector<4x16xf32>
    tpu.vector_store %arg8[%c0_8, %c147], %7 {strides = array<i32>} : memref<4x904xf32, #tpu.memory_space<vmem>>, vector<4x16xf32>,
    %c0_9 = arith.constant 0 : index
    %c19 = arith.constant 19 : index
    %9 = vector.load %arg10[%c0_9, %c19] : memref<1x648xf32, #tpu.memory_space<vmem>>, vector<1x16xf32>
    tpu.vector_store %arg10[%c0_9, %c19], %4 {strides = array<i32>} : memref<1x648xf32, #tpu.memory_space<vmem>>, vector<1x16xf32>,
    %10 = vector.extract_strided_slice %6 {offsets = [0, 16], sizes = [4, 16], strides = [1, 1]} : vector<4x256xf32> to vector<4x16xf32>
    %c0_10 = arith.constant 0 : index
    %c165 = arith.constant 165 : index
    %11 = vector.load %arg8[%c0_10, %c165] : memref<4x904xf32, #tpu.memory_space<vmem>>, vector<4x16xf32>
    tpu.vector_store %arg8[%c0_10, %c165], %10 {strides = array<i32>} : memref<4x904xf32, #tpu.memory_space<vmem>>, vector<4x16xf32>,
    %c0_11 = arith.constant 0 : index
    %c37 = arith.constant 37 : index
    %12 = vector.load %arg10[%c0_11, %c37] : memref<1x648xf32, #tpu.memory_space<vmem>>, vector<1x16xf32>
    tpu.vector_store %arg10[%c0_11, %c37], %4 {strides = array<i32>} : memref<1x648xf32, #tpu.memory_space<vmem>>, vector<1x16xf32>,
    %13 = vector.extract_strided_slice %6 {offsets = [0, 32], sizes = [4, 16], strides = [1, 1]} : vector<4x256xf32> to vector<4x16xf32>
    %c0_12 = arith.constant 0 : index
    %c183 = arith.constant 183 : index
    %14 = vector.load %arg8[%c0_12, %c183] : memref<4x904xf32, #tpu.memory_space<vmem>>, vector<4x16xf32>
    tpu.vector_store %arg8[%c0_12, %c183], %13 {strides = array<i32>} : memref<4x904xf32, #tpu.memory_space<vmem>>, vector<4x16xf32>,
    %c0_13 = arith.constant 0 : index
    %c55 = arith.constant 55 : index
    %15 = vector.load %arg10[%c0_13, %c55] : memref<1x648xf32, #tpu.memory_space<vmem>>, vector<1x16xf32>
    tpu.vector_store %arg10[%c0_13, %c55], %4 {strides = array<i32>} : memref<1x648xf32, #tpu.memory_space<vmem>>, vector<1x16xf32>,
    %16 = vector.extract_strided_slice %6 {offsets = [0, 48], sizes = [4, 16], strides = [1, 1]} : vector<4x256xf32> to vector<4x16xf32>
    %c0_14 = arith.constant 0 : index
    %c201 = arith.constant 201 : index
    %17 = vector.load %arg8[%c0_14, %c201] : memref<4x904xf32, #tpu.memory_space<vmem>>, vector<4x16xf32>
    tpu.vector_store %arg8[%c0_14, %c201], %16 {strides = array<i32>} : memref<4x904xf32, #tpu.memory_space<vmem>>, vector<4x16xf32>,
    %c0_15 = arith.constant 0 : index
    %c73 = arith.constant 73 : index
    %18 = vector.load %arg10[%c0_15, %c73] : memref<1x648xf32, #tpu.memory_space<vmem>>, vector<1x16xf32>
    tpu.vector_store %arg10[%c0_15, %c73], %4 {strides = array<i32>} : memref<1x648xf32, #tpu.memory_space<vmem>>, vector<1x16xf32>,
    %19 = vector.extract_strided_slice %6 {offsets = [0, 64], sizes = [4, 16], strides = [1, 1]} : vector<4x256xf32> to vector<4x16xf32>
    %c0_16 = arith.constant 0 : index
    %c219 = arith.constant 219 : index
    %20 = vector.load %arg8[%c0_16, %c219] : memref<4x904xf32, #tpu.memory_space<vmem>>, vector<4x16xf32>
    tpu.vector_store %arg8[%c0_16, %c219], %19 {strides = array<i32>} : memref<4x904xf32, #tpu.memory_space<vmem>>, vector<4x16xf32>,
    %c0_17 = arith.constant 0 : index
    %c91 = arith.constant 91 : index
    %21 = vector.load %arg10[%c0_17, %c91] : memref<1x648xf32, #tpu.memory_space<vmem>>, vector<1x16xf32>
    tpu.vector_store %arg10[%c0_17, %c91], %4 {strides = array<i32>} : memref<1x648xf32, #tpu.memory_space<vmem>>, vector<1x16xf32>,
    %22 = vector.extract_strided_slice %6 {offsets = [0, 80], sizes = [4, 16], strides = [1, 1]} : vector<4x256xf32> to vector<4x16xf32>
    %c0_18 = arith.constant 0 : index
    %c237 = arith.constant 237 : index
    %23 = vector.load %arg8[%c0_18, %c237] : memref<4x904xf32, #tpu.memory_space<vmem>>, vector<4x16xf32>
    tpu.vector_store %arg8[%c0_18, %c237], %22 {strides = array<i32>} : memref<4x904xf32, #tpu.memory_space<vmem>>, vector<4x16xf32>,
    %c0_19 = arith.constant 0 : index
    %c109 = arith.constant 109 : index
    %24 = vector.load %arg10[%c0_19, %c109] : memref<1x648xf32, #tpu.memory_space<vmem>>, vector<1x16xf32>
    tpu.vector_store %arg10[%c0_19, %c109], %4 {strides = array<i32>} : memref<1x648xf32, #tpu.memory_space<vmem>>, vector<1x16xf32>,
    %25 = vector.extract_strided_slice %6 {offsets = [0, 96], sizes = [4, 16], strides = [1, 1]} : vector<4x256xf32> to vector<4x16xf32>
    %c0_20 = arith.constant 0 : index
    %c255 = arith.constant 255 : index
    %26 = vector.load %arg8[%c0_20, %c255] : memref<4x904xf32, #tpu.memory_space<vmem>>, vector<4x16xf32>
    tpu.vector_store %arg8[%c0_20, %c255], %25 {strides = array<i32>} : memref<4x904xf32, #tpu.memory_space<vmem>>, vector<4x16xf32>,
    %c0_21 = arith.constant 0 : index
    %c127 = arith.constant 127 : index
    %27 = vector.load %arg10[%c0_21, %c127] : memref<1x648xf32, #tpu.memory_space<vmem>>, vector<1x16xf32>
    tpu.vector_store %arg10[%c0_21, %c127], %4 {strides = array<i32>} : memref<1x648xf32, #tpu.memory_space<vmem>>, vector<1x16xf32>,
    %28 = vector.extract_strided_slice %6 {offsets = [0, 112], sizes = [4, 16], strides = [1, 1]} : vector<4x256xf32> to vector<4x16xf32>
    %c0_22 = arith.constant 0 : index
    %c273 = arith.constant 273 : index
    %29 = vector.load %arg8[%c0_22, %c273] : memref<4x904xf32, #tpu.memory_space<vmem>>, vector<4x16xf32>
    tpu.vector_store %arg8[%c0_22, %c273], %28 {strides = array<i32>} : memref<4x904xf32, #tpu.memory_space<vmem>>, vector<4x16xf32>,
    %c0_23 = arith.constant 0 : index
    %c145 = arith.constant 145 : index
    %30 = vector.load %arg10[%c0_23, %c145] : memref<1x648xf32, #tpu.memory_space<vmem>>, vector<1x16xf32>
    tpu.vector_store %arg10[%c0_23, %c145], %4 {strides = array<i32>} : memref<1x648xf32, #tpu.memory_space<vmem>>, vector<1x16xf32>,
    %31 = vector.extract_strided_slice %6 {offsets = [0, 128], sizes = [4, 16], strides = [1, 1]} : vector<4x256xf32> to vector<4x16xf32>
    %c0_24 = arith.constant 0 : index
    %c291 = arith.constant 291 : index
    %32 = vector.load %arg8[%c0_24, %c291] : memref<4x904xf32, #tpu.memory_space<vmem>>, vector<4x16xf32>
    tpu.vector_store %arg8[%c0_24, %c291], %31 {strides = array<i32>} : memref<4x904xf32, #tpu.memory_space<vmem>>, vector<4x16xf32>,
    %c0_25 = arith.constant 0 : index
    %c163 = arith.constant 163 : index
    %33 = vector.load %arg10[%c0_25, %c163] : memref<1x648xf32, #tpu.memory_space<vmem>>, vector<1x16xf32>
    tpu.vector_store %arg10[%c0_25, %c163], %4 {strides = array<i32>} : memref<1x648xf32, #tpu.memory_space<vmem>>, vector<1x16xf32>,
    %34 = vector.extract_strided_slice %6 {offsets = [0, 144], sizes = [4, 16], strides = [1, 1]} : vector<4x256xf32> to vector<4x16xf32>
    %c0_26 = arith.constant 0 : index
    %c309 = arith.constant 309 : index
    %35 = vector.load %arg8[%c0_26, %c309] : memref<4x904xf32, #tpu.memory_space<vmem>>, vector<4x16xf32>
    tpu.vector_store %arg8[%c0_26, %c309], %34 {strides = array<i32>} : memref<4x904xf32, #tpu.memory_space<vmem>>, vector<4x16xf32>,
    %c0_27 = arith.constant 0 : index
    %c181 = arith.constant 181 : index
    %36 = vector.load %arg10[%c0_27, %c181] : memref<1x648xf32, #tpu.memory_space<vmem>>, vector<1x16xf32>
    tpu.vector_store %arg10[%c0_27, %c181], %4 {strides = array<i32>} : memref<1x648xf32, #tpu.memory_space<vmem>>, vector<1x16xf32>,
    %37 = vector.extract_strided_slice %6 {offsets = [0, 160], sizes = [4, 16], strides = [1, 1]} : vector<4x256xf32> to vector<4x16xf32>
    %c0_28 = arith.constant 0 : index
    %c327 = arith.constant 327 : index
    %38 = vector.load %arg8[%c0_28, %c327] : memref<4x904xf32, #tpu.memory_space<vmem>>, vector<4x16xf32>
    tpu.vector_store %arg8[%c0_28, %c327], %37 {strides = array<i32>} : memref<4x904xf32, #tpu.memory_space<vmem>>, vector<4x16xf32>,
    %c0_29 = arith.constant 0 : index
    %c199 = arith.constant 199 : index
    %39 = vector.load %arg10[%c0_29, %c199] : memref<1x648xf32, #tpu.memory_space<vmem>>, vector<1x16xf32>
    tpu.vector_store %arg10[%c0_29, %c199], %4 {strides = array<i32>} : memref<1x648xf32, #tpu.memory_space<vmem>>, vector<1x16xf32>,
    %40 = vector.extract_strided_slice %6 {offsets = [0, 176], sizes = [4, 16], strides = [1, 1]} : vector<4x256xf32> to vector<4x16xf32>
    %c0_30 = arith.constant 0 : index
    %c345 = arith.constant 345 : index
    %41 = vector.load %arg8[%c0_30, %c345] : memref<4x904xf32, #tpu.memory_space<vmem>>, vector<4x16xf32>
    tpu.vector_store %arg8[%c0_30, %c345], %40 {strides = array<i32>} : memref<4x904xf32, #tpu.memory_space<vmem>>, vector<4x16xf32>,
    %c0_31 = arith.constant 0 : index
    %c217 = arith.constant 217 : index
    %42 = vector.load %arg10[%c0_31, %c217] : memref<1x648xf32, #tpu.memory_space<vmem>>, vector<1x16xf32>
    tpu.vector_store %arg10[%c0_31, %c217], %4 {strides = array<i32>} : memref<1x648xf32, #tpu.memory_space<vmem>>, vector<1x16xf32>,
    %43 = vector.extract_strided_slice %6 {offsets = [0, 192], sizes = [4, 16], strides = [1, 1]} : vector<4x256xf32> to vector<4x16xf32>
    %c0_32 = arith.constant 0 : index
    %c363 = arith.constant 363 : index
    %44 = vector.load %arg8[%c0_32, %c363] : memref<4x904xf32, #tpu.memory_space<vmem>>, vector<4x16xf32>
    tpu.vector_store %arg8[%c0_32, %c363], %43 {strides = array<i32>} : memref<4x904xf32, #tpu.memory_space<vmem>>, vector<4x16xf32>,
    %c0_33 = arith.constant 0 : index
    %c235 = arith.constant 235 : index
    %45 = vector.load %arg10[%c0_33, %c235] : memref<1x648xf32, #tpu.memory_space<vmem>>, vector<1x16xf32>
    tpu.vector_store %arg10[%c0_33, %c235], %4 {strides = array<i32>} : memref<1x648xf32, #tpu.memory_space<vmem>>, vector<1x16xf32>,
    %46 = vector.extract_strided_slice %6 {offsets = [0, 208], sizes = [4, 16], strides = [1, 1]} : vector<4x256xf32> to vector<4x16xf32>
    %c0_34 = arith.constant 0 : index
    %c381 = arith.constant 381 : index
    %47 = vector.load %arg8[%c0_34, %c381] : memref<4x904xf32, #tpu.memory_space<vmem>>, vector<4x16xf32>
    tpu.vector_store %arg8[%c0_34, %c381], %46 {strides = array<i32>} : memref<4x904xf32, #tpu.memory_space<vmem>>, vector<4x16xf32>,
    %c0_35 = arith.constant 0 : index
    %c253 = arith.constant 253 : index
    %48 = vector.load %arg10[%c0_35, %c253] : memref<1x648xf32, #tpu.memory_space<vmem>>, vector<1x16xf32>
    tpu.vector_store %arg10[%c0_35, %c253], %4 {strides = array<i32>} : memref<1x648xf32, #tpu.memory_space<vmem>>, vector<1x16xf32>,
    %49 = vector.extract_strided_slice %6 {offsets = [0, 224], sizes = [4, 16], strides = [1, 1]} : vector<4x256xf32> to vector<4x16xf32>
    %c0_36 = arith.constant 0 : index
    %c399 = arith.constant 399 : index
    %50 = vector.load %arg8[%c0_36, %c399] : memref<4x904xf32, #tpu.memory_space<vmem>>, vector<4x16xf32>
    tpu.vector_store %arg8[%c0_36, %c399], %49 {strides = array<i32>} : memref<4x904xf32, #tpu.memory_space<vmem>>, vector<4x16xf32>,
    %c0_37 = arith.constant 0 : index
    %c271 = arith.constant 271 : index
    %51 = vector.load %arg10[%c0_37, %c271] : memref<1x648xf32, #tpu.memory_space<vmem>>, vector<1x16xf32>
    tpu.vector_store %arg10[%c0_37, %c271], %4 {strides = array<i32>} : memref<1x648xf32, #tpu.memory_space<vmem>>, vector<1x16xf32>,
    %52 = vector.extract_strided_slice %6 {offsets = [0, 240], sizes = [4, 16], strides = [1, 1]} : vector<4x256xf32> to vector<4x16xf32>
    %c0_38 = arith.constant 0 : index
    %c417 = arith.constant 417 : index
    %53 = vector.load %arg8[%c0_38, %c417] : memref<4x904xf32, #tpu.memory_space<vmem>>, vector<4x16xf32>
    tpu.vector_store %arg8[%c0_38, %c417], %52 {strides = array<i32>} : memref<4x904xf32, #tpu.memory_space<vmem>>, vector<4x16xf32>,
    %c0_39 = arith.constant 0 : index
    %c289 = arith.constant 289 : index
    %54 = vector.load %arg10[%c0_39, %c289] : memref<1x648xf32, #tpu.memory_space<vmem>>, vector<1x16xf32>
    tpu.vector_store %arg10[%c0_39, %c289], %4 {strides = array<i32>} : memref<1x648xf32, #tpu.memory_space<vmem>>, vector<1x16xf32>,
    %c1 = arith.constant 1 : index
    %c0_40 = arith.constant 0 : index
    %c0_41 = arith.constant 0 : index
    %55 = vector.load %arg0[%c1, %c0_40, %c0_41] : memref<2x4x256xf32, #tpu.memory_space<vmem>>, vector<1x4x256xf32>
    %56 = vector.shape_cast %55 : vector<1x4x256xf32> to vector<4x256xf32>
    %57 = vector.extract_strided_slice %56 {offsets = [0, 0], sizes = [4, 16], strides = [1, 1]} : vector<4x256xf32> to vector<4x16xf32>
    %c0_42 = arith.constant 0 : index
    %c471 = arith.constant 471 : index
    %58 = vector.load %arg8[%c0_42, %c471] : memref<4x904xf32, #tpu.memory_space<vmem>>, vector<4x16xf32>
    tpu.vector_store %arg8[%c0_42, %c471], %57 {strides = array<i32>} : memref<4x904xf32, #tpu.memory_space<vmem>>, vector<4x16xf32>,
    %c0_43 = arith.constant 0 : index
    %c343 = arith.constant 343 : index
    %59 = vector.load %arg10[%c0_43, %c343] : memref<1x648xf32, #tpu.memory_space<vmem>>, vector<1x16xf32>
    tpu.vector_store %arg10[%c0_43, %c343], %4 {strides = array<i32>} : memref<1x648xf32, #tpu.memory_space<vmem>>, vector<1x16xf32>,
    %60 = vector.extract_strided_slice %56 {offsets = [0, 16], sizes = [4, 16], strides = [1, 1]} : vector<4x256xf32> to vector<4x16xf32>
    %c0_44 = arith.constant 0 : index
    %c489 = arith.constant 489 : index
    %61 = vector.load %arg8[%c0_44, %c489] : memref<4x904xf32, #tpu.memory_space<vmem>>, vector<4x16xf32>
    tpu.vector_store %arg8[%c0_44, %c489], %60 {strides = array<i32>} : memref<4x904xf32, #tpu.memory_space<vmem>>, vector<4x16xf32>,
    %c0_45 = arith.constant 0 : index
    %c361 = arith.constant 361 : index
    %62 = vector.load %arg10[%c0_45, %c361] : memref<1x648xf32, #tpu.memory_space<vmem>>, vector<1x16xf32>
    tpu.vector_store %arg10[%c0_45, %c361], %4 {strides = array<i32>} : memref<1x648xf32, #tpu.memory_space<vmem>>, vector<1x16xf32>,
    %63 = vector.extract_strided_slice %56 {offsets = [0, 32], sizes = [4, 16], strides = [1, 1]} : vector<4x256xf32> to vector<4x16xf32>
    %c0_46 = arith.constant 0 : index
    %c507 = arith.constant 507 : index
    %64 = vector.load %arg8[%c0_46, %c507] : memref<4x904xf32, #tpu.memory_space<vmem>>, vector<4x16xf32>
    tpu.vector_store %arg8[%c0_46, %c507], %63 {strides = array<i32>} : memref<4x904xf32, #tpu.memory_space<vmem>>, vector<4x16xf32>,
    %c0_47 = arith.constant 0 : index
    %c379 = arith.constant 379 : index
    %65 = vector.load %arg10[%c0_47, %c379] : memref<1x648xf32, #tpu.memory_space<vmem>>, vector<1x16xf32>
    tpu.vector_store %arg10[%c0_47, %c379], %4 {strides = array<i32>} : memref<1x648xf32, #tpu.memory_space<vmem>>, vector<1x16xf32>,
    %66 = vector.extract_strided_slice %56 {offsets = [0, 48], sizes = [4, 16], strides = [1, 1]} : vector<4x256xf32> to vector<4x16xf32>
    %c0_48 = arith.constant 0 : index
    %c525 = arith.constant 525 : index
    %67 = vector.load %arg8[%c0_48, %c525] : memref<4x904xf32, #tpu.memory_space<vmem>>, vector<4x16xf32>
    tpu.vector_store %arg8[%c0_48, %c525], %66 {strides = array<i32>} : memref<4x904xf32, #tpu.memory_space<vmem>>, vector<4x16xf32>,
    %c0_49 = arith.constant 0 : index
    %c397 = arith.constant 397 : index
    %68 = vector.load %arg10[%c0_49, %c397] : memref<1x648xf32, #tpu.memory_space<vmem>>, vector<1x16xf32>
    tpu.vector_store %arg10[%c0_49, %c397], %4 {strides = array<i32>} : memref<1x648xf32, #tpu.memory_space<vmem>>, vector<1x16xf32>,
    %69 = vector.extract_strided_slice %56 {offsets = [0, 64], sizes = [4, 16], strides = [1, 1]} : vector<4x256xf32> to vector<4x16xf32>
    %c0_50 = arith.constant 0 : index
    %c543 = arith.constant 543 : index
    %70 = vector.load %arg8[%c0_50, %c543] : memref<4x904xf32, #tpu.memory_space<vmem>>, vector<4x16xf32>
    tpu.vector_store %arg8[%c0_50, %c543], %69 {strides = array<i32>} : memref<4x904xf32, #tpu.memory_space<vmem>>, vector<4x16xf32>,
    %c0_51 = arith.constant 0 : index
    %c415 = arith.constant 415 : index
    %71 = vector.load %arg10[%c0_51, %c415] : memref<1x648xf32, #tpu.memory_space<vmem>>, vector<1x16xf32>
    tpu.vector_store %arg10[%c0_51, %c415], %4 {strides = array<i32>} : memref<1x648xf32, #tpu.memory_space<vmem>>, vector<1x16xf32>,
    %72 = vector.extract_strided_slice %56 {offsets = [0, 80], sizes = [4, 16], strides = [1, 1]} : vector<4x256xf32> to vector<4x16xf32>
    %c0_52 = arith.constant 0 : index
    %c561 = arith.constant 561 : index
    %73 = vector.load %arg8[%c0_52, %c561] : memref<4x904xf32, #tpu.memory_space<vmem>>, vector<4x16xf32>
    tpu.vector_store %arg8[%c0_52, %c561], %72 {strides = array<i32>} : memref<4x904xf32, #tpu.memory_space<vmem>>, vector<4x16xf32>,
    %c0_53 = arith.constant 0 : index
    %c433 = arith.constant 433 : index
    %74 = vector.load %arg10[%c0_53, %c433] : memref<1x648xf32, #tpu.memory_space<vmem>>, vector<1x16xf32>
    tpu.vector_store %arg10[%c0_53, %c433], %4 {strides = array<i32>} : memref<1x648xf32, #tpu.memory_space<vmem>>, vector<1x16xf32>,
    %75 = vector.extract_strided_slice %56 {offsets = [0, 96], sizes = [4, 16], strides = [1, 1]} : vector<4x256xf32> to vector<4x16xf32>
    %c0_54 = arith.constant 0 : index
    %c579 = arith.constant 579 : index
    %76 = vector.load %arg8[%c0_54, %c579] : memref<4x904xf32, #tpu.memory_space<vmem>>, vector<4x16xf32>
    tpu.vector_store %arg8[%c0_54, %c579], %75 {strides = array<i32>} : memref<4x904xf32, #tpu.memory_space<vmem>>, vector<4x16xf32>,
    %c0_55 = arith.constant 0 : index
    %c451 = arith.constant 451 : index
    %77 = vector.load %arg10[%c0_55, %c451] : memref<1x648xf32, #tpu.memory_space<vmem>>, vector<1x16xf32>
    tpu.vector_store %arg10[%c0_55, %c451], %4 {strides = array<i32>} : memref<1x648xf32, #tpu.memory_space<vmem>>, vector<1x16xf32>,
    %78 = vector.extract_strided_slice %56 {offsets = [0, 112], sizes = [4, 16], strides = [1, 1]} : vector<4x256xf32> to vector<4x16xf32>
    %c0_56 = arith.constant 0 : index
    %c597 = arith.constant 597 : index
    %79 = vector.load %arg8[%c0_56, %c597] : memref<4x904xf32, #tpu.memory_space<vmem>>, vector<4x16xf32>
    tpu.vector_store %arg8[%c0_56, %c597], %78 {strides = array<i32>} : memref<4x904xf32, #tpu.memory_space<vmem>>, vector<4x16xf32>,
    %c0_57 = arith.constant 0 : index
    %c469 = arith.constant 469 : index
    %80 = vector.load %arg10[%c0_57, %c469] : memref<1x648xf32, #tpu.memory_space<vmem>>, vector<1x16xf32>
    tpu.vector_store %arg10[%c0_57, %c469], %4 {strides = array<i32>} : memref<1x648xf32, #tpu.memory_space<vmem>>, vector<1x16xf32>,
    %81 = vector.extract_strided_slice %56 {offsets = [0, 128], sizes = [4, 16], strides = [1, 1]} : vector<4x256xf32> to vector<4x16xf32>
    %c0_58 = arith.constant 0 : index
    %c615 = arith.constant 615 : index
    %82 = vector.load %arg8[%c0_58, %c615] : memref<4x904xf32, #tpu.memory_space<vmem>>, vector<4x16xf32>
    tpu.vector_store %arg8[%c0_58, %c615], %81 {strides = array<i32>} : memref<4x904xf32, #tpu.memory_space<vmem>>, vector<4x16xf32>,
    %c0_59 = arith.constant 0 : index
    %c487 = arith.constant 487 : index
    %83 = vector.load %arg10[%c0_59, %c487] : memref<1x648xf32, #tpu.memory_space<vmem>>, vector<1x16xf32>
    tpu.vector_store %arg10[%c0_59, %c487], %4 {strides = array<i32>} : memref<1x648xf32, #tpu.memory_space<vmem>>, vector<1x16xf32>,
    %84 = vector.extract_strided_slice %56 {offsets = [0, 144], sizes = [4, 16], strides = [1, 1]} : vector<4x256xf32> to vector<4x16xf32>
    %c0_60 = arith.constant 0 : index
    %c633 = arith.constant 633 : index
    %85 = vector.load %arg8[%c0_60, %c633] : memref<4x904xf32, #tpu.memory_space<vmem>>, vector<4x16xf32>
    tpu.vector_store %arg8[%c0_60, %c633], %84 {strides = array<i32>} : memref<4x904xf32, #tpu.memory_space<vmem>>, vector<4x16xf32>,
    %c0_61 = arith.constant 0 : index
    %c505 = arith.constant 505 : index
    %86 = vector.load %arg10[%c0_61, %c505] : memref<1x648xf32, #tpu.memory_space<vmem>>, vector<1x16xf32>
    tpu.vector_store %arg10[%c0_61, %c505], %4 {strides = array<i32>} : memref<1x648xf32, #tpu.memory_space<vmem>>, vector<1x16xf32>,
    %87 = vector.extract_strided_slice %56 {offsets = [0, 160], sizes = [4, 16], strides = [1, 1]} : vector<4x256xf32> to vector<4x16xf32>
    %c0_62 = arith.constant 0 : index
    %c651 = arith.constant 651 : index
    %88 = vector.load %arg8[%c0_62, %c651] : memref<4x904xf32, #tpu.memory_space<vmem>>, vector<4x16xf32>
    tpu.vector_store %arg8[%c0_62, %c651], %87 {strides = array<i32>} : memref<4x904xf32, #tpu.memory_space<vmem>>, vector<4x16xf32>,
    %c0_63 = arith.constant 0 : index
    %c523 = arith.constant 523 : index
    %89 = vector.load %arg10[%c0_63, %c523] : memref<1x648xf32, #tpu.memory_space<vmem>>, vector<1x16xf32>
    tpu.vector_store %arg10[%c0_63, %c523], %4 {strides = array<i32>} : memref<1x648xf32, #tpu.memory_space<vmem>>, vector<1x16xf32>,
    %90 = vector.extract_strided_slice %56 {offsets = [0, 176], sizes = [4, 16], strides = [1, 1]} : vector<4x256xf32> to vector<4x16xf32>
    %c0_64 = arith.constant 0 : index
    %c669 = arith.constant 669 : index
    %91 = vector.load %arg8[%c0_64, %c669] : memref<4x904xf32, #tpu.memory_space<vmem>>, vector<4x16xf32>
    tpu.vector_store %arg8[%c0_64, %c669], %90 {strides = array<i32>} : memref<4x904xf32, #tpu.memory_space<vmem>>, vector<4x16xf32>,
    %c0_65 = arith.constant 0 : index
    %c541 = arith.constant 541 : index
    %92 = vector.load %arg10[%c0_65, %c541] : memref<1x648xf32, #tpu.memory_space<vmem>>, vector<1x16xf32>
    tpu.vector_store %arg10[%c0_65, %c541], %4 {strides = array<i32>} : memref<1x648xf32, #tpu.memory_space<vmem>>, vector<1x16xf32>,
    %93 = vector.extract_strided_slice %56 {offsets = [0, 192], sizes = [4, 16], strides = [1, 1]} : vector<4x256xf32> to vector<4x16xf32>
    %c0_66 = arith.constant 0 : index
    %c687 = arith.constant 687 : index
    %94 = vector.load %arg8[%c0_66, %c687] : memref<4x904xf32, #tpu.memory_space<vmem>>, vector<4x16xf32>
    tpu.vector_store %arg8[%c0_66, %c687], %93 {strides = array<i32>} : memref<4x904xf32, #tpu.memory_space<vmem>>, vector<4x16xf32>,
    %c0_67 = arith.constant 0 : index
    %c559 = arith.constant 559 : index
    %95 = vector.load %arg10[%c0_67, %c559] : memref<1x648xf32, #tpu.memory_space<vmem>>, vector<1x16xf32>
    tpu.vector_store %arg10[%c0_67, %c559], %4 {strides = array<i32>} : memref<1x648xf32, #tpu.memory_space<vmem>>, vector<1x16xf32>,
    %96 = vector.extract_strided_slice %56 {offsets = [0, 208], sizes = [4, 16], strides = [1, 1]} : vector<4x256xf32> to vector<4x16xf32>
    %c0_68 = arith.constant 0 : index
    %c705 = arith.constant 705 : index
    %97 = vector.load %arg8[%c0_68, %c705] : memref<4x904xf32, #tpu.memory_space<vmem>>, vector<4x16xf32>
    tpu.vector_store %arg8[%c0_68, %c705], %96 {strides = array<i32>} : memref<4x904xf32, #tpu.memory_space<vmem>>, vector<4x16xf32>,
    %c0_69 = arith.constant 0 : index
    %c577 = arith.constant 577 : index
    %98 = vector.load %arg10[%c0_69, %c577] : memref<1x648xf32, #tpu.memory_space<vmem>>, vector<1x16xf32>
    tpu.vector_store %arg10[%c0_69, %c577], %4 {strides = array<i32>} : memref<1x648xf32, #tpu.memory_space<vmem>>, vector<1x16xf32>,
    %99 = vector.extract_strided_slice %56 {offsets = [0, 224], sizes = [4, 16], strides = [1, 1]} : vector<4x256xf32> to vector<4x16xf32>
    %c0_70 = arith.constant 0 : index
    %c723 = arith.constant 723 : index
    %100 = vector.load %arg8[%c0_70, %c723] : memref<4x904xf32, #tpu.memory_space<vmem>>, vector<4x16xf32>
    tpu.vector_store %arg8[%c0_70, %c723], %99 {strides = array<i32>} : memref<4x904xf32, #tpu.memory_space<vmem>>, vector<4x16xf32>,
    %c0_71 = arith.constant 0 : index
    %c595 = arith.constant 595 : index
    %101 = vector.load %arg10[%c0_71, %c595] : memref<1x648xf32, #tpu.memory_space<vmem>>, vector<1x16xf32>
    tpu.vector_store %arg10[%c0_71, %c595], %4 {strides = array<i32>} : memref<1x648xf32, #tpu.memory_space<vmem>>, vector<1x16xf32>,
    %102 = vector.extract_strided_slice %56 {offsets = [0, 240], sizes = [4, 16], strides = [1, 1]} : vector<4x256xf32> to vector<4x16xf32>
    %c0_72 = arith.constant 0 : index
    %c741 = arith.constant 741 : index
    %103 = vector.load %arg8[%c0_72, %c741] : memref<4x904xf32, #tpu.memory_space<vmem>>, vector<4x16xf32>
    tpu.vector_store %arg8[%c0_72, %c741], %102 {strides = array<i32>} : memref<4x904xf32, #tpu.memory_space<vmem>>, vector<4x16xf32>,
    %c0_73 = arith.constant 0 : index
    %c613 = arith.constant 613 : index
    %104 = vector.load %arg10[%c0_73, %c613] : memref<1x648xf32, #tpu.memory_space<vmem>>, vector<1x16xf32>
    tpu.vector_store %arg10[%c0_73, %c613], %4 {strides = array<i32>} : memref<1x648xf32, #tpu.memory_space<vmem>>, vector<1x16xf32>,
    %c0_74 = arith.constant 0 : index
    %c0_75 = arith.constant 0 : index
    %105 = vector.load %arg10[%c0_74, %c0_75] : memref<1x648xf32, #tpu.memory_space<vmem>>, vector<1x648xf32>
    %c0_76 = arith.constant 0 : index
    %c0_77 = arith.constant 0 : index
    %c0_78 = arith.constant 0 : index
    %106 = vector.load %arg1[%c0_76, %c0_77, %c0_78] : memref<9x8x4xf32, #tpu.memory_space<vmem>>, vector<1x8x4xf32>
    %107 = vector.shape_cast %106 : vector<1x8x4xf32> to vector<8x4xf32>
    %c0_79 = arith.constant 0 : index
    %c109_80 = arith.constant 109 : index
    %108 = vector.load %arg8[%c0_79, %c109_80] : memref<4x904xf32, #tpu.memory_space<vmem>>, vector<4x648xf32>
    %cst_81 = arith.constant dense<0.000000e+00> : vector<8x648xf32>
    %109 = tpu.matmul %107, %108, %cst_81 {dimension_numbers = #tpu.dot_dimension_numbers<[1], [0], [0], [1], [0, 0, 1, 1], [], []>} : vector<8x4xf32>, vector<4x648xf32>, vector<8x648xf32> -> vector<8x648xf32>
    %c1_82 = arith.constant 1 : index
    %c0_83 = arith.constant 0 : index
    %c0_84 = arith.constant 0 : index
    %110 = vector.load %arg1[%c1_82, %c0_83, %c0_84] : memref<9x8x4xf32, #tpu.memory_space<vmem>>, vector<1x8x4xf32>
    %111 = vector.shape_cast %110 : vector<1x8x4xf32> to vector<8x4xf32>
    %c0_85 = arith.constant 0 : index
    %c110 = arith.constant 110 : index
    %112 = vector.load %arg8[%c0_85, %c110] : memref<4x904xf32, #tpu.memory_space<vmem>>, vector<4x648xf32>
    %cst_86 = arith.constant dense<0.000000e+00> : vector<8x648xf32>
    %113 = tpu.matmul %111, %112, %cst_86 {dimension_numbers = #tpu.dot_dimension_numbers<[1], [0], [0], [1], [0, 0, 1, 1], [], []>} : vector<8x4xf32>, vector<4x648xf32>, vector<8x648xf32> -> vector<8x648xf32>
    %114 = arith.addf %109, %113 : vector<8x648xf32>
    %c2 = arith.constant 2 : index
    %c0_87 = arith.constant 0 : index
    %c0_88 = arith.constant 0 : index
    %115 = vector.load %arg1[%c2, %c0_87, %c0_88] : memref<9x8x4xf32, #tpu.memory_space<vmem>>, vector<1x8x4xf32>
    %116 = vector.shape_cast %115 : vector<1x8x4xf32> to vector<8x4xf32>
    %c0_89 = arith.constant 0 : index
    %c111 = arith.constant 111 : index
    %117 = vector.load %arg8[%c0_89, %c111] : memref<4x904xf32, #tpu.memory_space<vmem>>, vector<4x648xf32>
    %cst_90 = arith.constant dense<0.000000e+00> : vector<8x648xf32>
    %118 = tpu.matmul %116, %117, %cst_90 {dimension_numbers = #tpu.dot_dimension_numbers<[1], [0], [0], [1], [0, 0, 1, 1], [], []>} : vector<8x4xf32>, vector<4x648xf32>, vector<8x648xf32> -> vector<8x648xf32>
    %119 = arith.addf %114, %118 : vector<8x648xf32>
    %c3 = arith.constant 3 : index
    %c0_91 = arith.constant 0 : index
    %c0_92 = arith.constant 0 : index
    %120 = vector.load %arg1[%c3, %c0_91, %c0_92] : memref<9x8x4xf32, #tpu.memory_space<vmem>>, vector<1x8x4xf32>
    %121 = vector.shape_cast %120 : vector<1x8x4xf32> to vector<8x4xf32>
    %c0_93 = arith.constant 0 : index
    %c127_94 = arith.constant 127 : index
    %122 = vector.load %arg8[%c0_93, %c127_94] : memref<4x904xf32, #tpu.memory_space<vmem>>, vector<4x648xf32>
    %cst_95 = arith.constant dense<0.000000e+00> : vector<8x648xf32>
    %123 = tpu.matmul %121, %122, %cst_95 {dimension_numbers = #tpu.dot_dimension_numbers<[1], [0], [0], [1], [0, 0, 1, 1], [], []>} : vector<8x4xf32>, vector<4x648xf32>, vector<8x648xf32> -> vector<8x648xf32>
    %124 = arith.addf %119, %123 : vector<8x648xf32>
    %c4 = arith.constant 4 : index
    %c0_96 = arith.constant 0 : index
    %c0_97 = arith.constant 0 : index
    %125 = vector.load %arg1[%c4, %c0_96, %c0_97] : memref<9x8x4xf32, #tpu.memory_space<vmem>>, vector<1x8x4xf32>
    %126 = vector.shape_cast %125 : vector<1x8x4xf32> to vector<8x4xf32>
    %c0_98 = arith.constant 0 : index
    %c128 = arith.constant 128 : index
    %127 = vector.load %arg8[%c0_98, %c128] : memref<4x904xf32, #tpu.memory_space<vmem>>, vector<4x648xf32>
    %cst_99 = arith.constant dense<0.000000e+00> : vector<8x648xf32>
    %128 = tpu.matmul %126, %127, %cst_99 {dimension_numbers = #tpu.dot_dimension_numbers<[1], [0], [0], [1], [0, 0, 1, 1], [], []>} : vector<8x4xf32>, vector<4x648xf32>, vector<8x648xf32> -> vector<8x648xf32>
    %129 = arith.addf %124, %128 : vector<8x648xf32>
    %c5 = arith.constant 5 : index
    %c0_100 = arith.constant 0 : index
    %c0_101 = arith.constant 0 : index
    %130 = vector.load %arg1[%c5, %c0_100, %c0_101] : memref<9x8x4xf32, #tpu.memory_space<vmem>>, vector<1x8x4xf32>
    %131 = vector.shape_cast %130 : vector<1x8x4xf32> to vector<8x4xf32>
    %c0_102 = arith.constant 0 : index
    %c129 = arith.constant 129 : index
    %132 = vector.load %arg8[%c0_102, %c129] : memref<4x904xf32, #tpu.memory_space<vmem>>, vector<4x648xf32>
    %cst_103 = arith.constant dense<0.000000e+00> : vector<8x648xf32>
    %133 = tpu.matmul %131, %132, %cst_103 {dimension_numbers = #tpu.dot_dimension_numbers<[1], [0], [0], [1], [0, 0, 1, 1], [], []>} : vector<8x4xf32>, vector<4x648xf32>, vector<8x648xf32> -> vector<8x648xf32>
    %134 = arith.addf %129, %133 : vector<8x648xf32>
    %c6 = arith.constant 6 : index
    %c0_104 = arith.constant 0 : index
    %c0_105 = arith.constant 0 : index
    %135 = vector.load %arg1[%c6, %c0_104, %c0_105] : memref<9x8x4xf32, #tpu.memory_space<vmem>>, vector<1x8x4xf32>
    %136 = vector.shape_cast %135 : vector<1x8x4xf32> to vector<8x4xf32>
    %c0_106 = arith.constant 0 : index
    %c145_107 = arith.constant 145 : index
    %137 = vector.load %arg8[%c0_106, %c145_107] : memref<4x904xf32, #tpu.memory_space<vmem>>, vector<4x648xf32>
    %cst_108 = arith.constant dense<0.000000e+00> : vector<8x648xf32>
    %138 = tpu.matmul %136, %137, %cst_108 {dimension_numbers = #tpu.dot_dimension_numbers<[1], [0], [0], [1], [0, 0, 1, 1], [], []>} : vector<8x4xf32>, vector<4x648xf32>, vector<8x648xf32> -> vector<8x648xf32>
    %139 = arith.addf %134, %138 : vector<8x648xf32>
    %c7 = arith.constant 7 : index
    %c0_109 = arith.constant 0 : index
    %c0_110 = arith.constant 0 : index
    %140 = vector.load %arg1[%c7, %c0_109, %c0_110] : memref<9x8x4xf32, #tpu.memory_space<vmem>>, vector<1x8x4xf32>
    %141 = vector.shape_cast %140 : vector<1x8x4xf32> to vector<8x4xf32>
    %c0_111 = arith.constant 0 : index
    %c146 = arith.constant 146 : index
    %142 = vector.load %arg8[%c0_111, %c146] : memref<4x904xf32, #tpu.memory_space<vmem>>, vector<4x648xf32>
    %cst_112 = arith.constant dense<0.000000e+00> : vector<8x648xf32>
    %143 = tpu.matmul %141, %142, %cst_112 {dimension_numbers = #tpu.dot_dimension_numbers<[1], [0], [0], [1], [0, 0, 1, 1], [], []>} : vector<8x4xf32>, vector<4x648xf32>, vector<8x648xf32> -> vector<8x648xf32>
    %144 = arith.addf %139, %143 : vector<8x648xf32>
    %c8 = arith.constant 8 : index
    %c0_113 = arith.constant 0 : index
    %c0_114 = arith.constant 0 : index
    %145 = vector.load %arg1[%c8, %c0_113, %c0_114] : memref<9x8x4xf32, #tpu.memory_space<vmem>>, vector<1x8x4xf32>
    %146 = vector.shape_cast %145 : vector<1x8x4xf32> to vector<8x4xf32>
    %c0_115 = arith.constant 0 : index
    %c147_116 = arith.constant 147 : index
    %147 = vector.load %arg8[%c0_115, %c147_116] : memref<4x904xf32, #tpu.memory_space<vmem>>, vector<4x648xf32>
    %cst_117 = arith.constant dense<0.000000e+00> : vector<8x648xf32>
    %148 = tpu.matmul %146, %147, %cst_117 {dimension_numbers = #tpu.dot_dimension_numbers<[1], [0], [0], [1], [0, 0, 1, 1], [], []>} : vector<8x4xf32>, vector<4x648xf32>, vector<8x648xf32> -> vector<8x648xf32>
    %149 = arith.addf %144, %148 : vector<8x648xf32>
    %150 = vector.broadcast %105 : vector<1x648xf32> to vector<8x648xf32>
    %151 = arith.mulf %149, %150 : vector<8x648xf32>
    %cst_118 = arith.constant dense<0.000000e+00> : vector<8xf32>
    %152 = vector.multi_reduction <add>, %151, %cst_118 [1] : vector<8x648xf32> to vector<8xf32>
    %153 = vector.shape_cast %152 : vector<8xf32> to vector<8x1xf32>
    %154 = arith.mulf %151, %149 : vector<8x648xf32>
    %cst_119 = arith.constant dense<0.000000e+00> : vector<8xf32>
    %155 = vector.multi_reduction <add>, %154, %cst_119 [1] : vector<8x648xf32> to vector<8xf32>
    %156 = vector.shape_cast %155 : vector<8xf32> to vector<8x1xf32>
    %cst_120 = arith.constant 0.001953125 : f32
    %157 = vector.broadcast %cst_120 : f32 to vector<8x1xf32>
    %158 = arith.mulf %153, %157 : vector<8x1xf32>
    %cst_121 = arith.constant 0.001953125 : f32
    %159 = vector.broadcast %cst_121 : f32 to vector<8x1xf32>
    %160 = arith.mulf %156, %159 : vector<8x1xf32>
    %161 = arith.mulf %158, %158 : vector<8x1xf32>
    %162 = arith.subf %160, %161 : vector<8x1xf32>
    %cst_122 = arith.constant 0.000000e+00 : f32
    %163 = vector.broadcast %cst_122 : f32 to vector<8x1xf32>
    %164 = arith.maximumf %162, %163 : vector<8x1xf32>
    %c0_123 = arith.constant 0 : index
    %c0_124 = arith.constant 0 : index
    %165 = vector.load %arg2[%c0_123, %c0_124] : memref<8x1xf32, #tpu.memory_space<vmem>>, vector<8x1xf32>
    %cst_125 = arith.constant 9.99999974E-6 : f32
    %166 = vector.broadcast %cst_125 : f32 to vector<8x1xf32>
    %167 = arith.addf %164, %166 : vector<8x1xf32>
    %168 = math.rsqrt %167 : vector<8x1xf32>
    %169 = arith.mulf %165, %168 : vector<8x1xf32>
    %c0_126 = arith.constant 0 : index
    %c0_127 = arith.constant 0 : index
    %170 = vector.load %arg3[%c0_126, %c0_127] : memref<8x1xf32, #tpu.memory_space<vmem>>, vector<8x1xf32>
    %171 = arith.mulf %158, %169 : vector<8x1xf32>
    %172 = arith.subf %170, %171 : vector<8x1xf32>
    %173 = vector.broadcast %169 : vector<8x1xf32> to vector<8x648xf32>
    %174 = arith.mulf %149, %173 : vector<8x648xf32>
    %175 = vector.broadcast %172 : vector<8x1xf32> to vector<8x648xf32>
    %176 = arith.addf %174, %175 : vector<8x648xf32>
    %cst_128 = arith.constant 0.00999999977 : f32
    %177 = vector.broadcast %cst_128 : f32 to vector<8x648xf32>
    %178 = arith.mulf %177, %176 : vector<8x648xf32>
    %179 = arith.maximumf %176, %178 : vector<8x648xf32>
    %cst_129 = arith.constant 0.000000e+00 : f32
    %180 = vector.broadcast %cst_129 : f32 to vector<8x128xf32>
    %c0_130 = arith.constant 0 : index
    %c0_131 = arith.constant 0 : index
    %181 = vector.load %arg9[%c0_130, %c0_131] : memref<8x904xf32, #tpu.memory_space<vmem>>, vector<8x128xf32>
    tpu.vector_store %arg9[%c0_130, %c0_131], %180 {strides = array<i32>} : memref<8x904xf32, #tpu.memory_space<vmem>>, vector<8x128xf32>,
    %cst_132 = arith.constant 0.000000e+00 : f32
    %182 = vector.broadcast %cst_132 : f32 to vector<8x136xf32>
    %c0_133 = arith.constant 0 : index
    %c768 = arith.constant 768 : index
    %183 = vector.load %arg9[%c0_133, %c768] : memref<8x904xf32, #tpu.memory_space<vmem>>, vector<8x136xf32>
    tpu.vector_store %arg9[%c0_133, %c768], %182 {strides = array<i32>} : memref<8x904xf32, #tpu.memory_space<vmem>>, vector<8x136xf32>,
    %184 = vector.broadcast %105 : vector<1x648xf32> to vector<8x648xf32>
    %185 = arith.mulf %179, %184 : vector<8x648xf32>
    %c0_134 = arith.constant 0 : index
    %c128_135 = arith.constant 128 : index
    %186 = vector.load %arg9[%c0_134, %c128_135] : memref<8x904xf32, #tpu.memory_space<vmem>>, vector<8x648xf32>
    tpu.vector_store %arg9[%c0_134, %c128_135], %185 {strides = array<i32>} : memref<8x904xf32, #tpu.memory_space<vmem>>, vector<8x648xf32>,
    %c0_136 = arith.constant 0 : index
    %c0_137 = arith.constant 0 : index
    %c0_138 = arith.constant 0 : index
    %187 = vector.load %arg4[%c0_136, %c0_137, %c0_138] : memref<9x8x8xf32, #tpu.memory_space<vmem>>, vector<1x8x8xf32>
    %188 = vector.shape_cast %187 : vector<1x8x8xf32> to vector<8x8xf32>
    %c0_139 = arith.constant 0 : index
    %c109_140 = arith.constant 109 : index
    %189 = vector.load %arg9[%c0_139, %c109_140] : memref<8x904xf32, #tpu.memory_space<vmem>>, vector<8x648xf32>
    %cst_141 = arith.constant dense<0.000000e+00> : vector<8x648xf32>
    %190 = tpu.matmul %188, %189, %cst_141 {dimension_numbers = #tpu.dot_dimension_numbers<[1], [0], [0], [1], [0, 0, 1, 1], [], []>} : vector<8x8xf32>, vector<8x648xf32>, vector<8x648xf32> -> vector<8x648xf32>
    %c1_142 = arith.constant 1 : index
    %c0_143 = arith.constant 0 : index
    %c0_144 = arith.constant 0 : index
    %191 = vector.load %arg4[%c1_142, %c0_143, %c0_144] : memref<9x8x8xf32, #tpu.memory_space<vmem>>, vector<1x8x8xf32>
    %192 = vector.shape_cast %191 : vector<1x8x8xf32> to vector<8x8xf32>
    %c0_145 = arith.constant 0 : index
    %c110_146 = arith.constant 110 : index
    %193 = vector.load %arg9[%c0_145, %c110_146] : memref<8x904xf32, #tpu.memory_space<vmem>>, vector<8x648xf32>
    %cst_147 = arith.constant dense<0.000000e+00> : vector<8x648xf32>
    %194 = tpu.matmul %192, %193, %cst_147 {dimension_numbers = #tpu.dot_dimension_numbers<[1], [0], [0], [1], [0, 0, 1, 1], [], []>} : vector<8x8xf32>, vector<8x648xf32>, vector<8x648xf32> -> vector<8x648xf32>
    %195 = arith.addf %190, %194 : vector<8x648xf32>
    %c2_148 = arith.constant 2 : index
    %c0_149 = arith.constant 0 : index
    %c0_150 = arith.constant 0 : index
    %196 = vector.load %arg4[%c2_148, %c0_149, %c0_150] : memref<9x8x8xf32, #tpu.memory_space<vmem>>, vector<1x8x8xf32>
    %197 = vector.shape_cast %196 : vector<1x8x8xf32> to vector<8x8xf32>
    %c0_151 = arith.constant 0 : index
    %c111_152 = arith.constant 111 : index
    %198 = vector.load %arg9[%c0_151, %c111_152] : memref<8x904xf32, #tpu.memory_space<vmem>>, vector<8x648xf32>
    %cst_153 = arith.constant dense<0.000000e+00> : vector<8x648xf32>
    %199 = tpu.matmul %197, %198, %cst_153 {dimension_numbers = #tpu.dot_dimension_numbers<[1], [0], [0], [1], [0, 0, 1, 1], [], []>} : vector<8x8xf32>, vector<8x648xf32>, vector<8x648xf32> -> vector<8x648xf32>
    %200 = arith.addf %195, %199 : vector<8x648xf32>
    %c3_154 = arith.constant 3 : index
    %c0_155 = arith.constant 0 : index
    %c0_156 = arith.constant 0 : index
    %201 = vector.load %arg4[%c3_154, %c0_155, %c0_156] : memref<9x8x8xf32, #tpu.memory_space<vmem>>, vector<1x8x8xf32>
    %202 = vector.shape_cast %201 : vector<1x8x8xf32> to vector<8x8xf32>
    %c0_157 = arith.constant 0 : index
    %c127_158 = arith.constant 127 : index
    %203 = vector.load %arg9[%c0_157, %c127_158] : memref<8x904xf32, #tpu.memory_space<vmem>>, vector<8x648xf32>
    %cst_159 = arith.constant dense<0.000000e+00> : vector<8x648xf32>
    %204 = tpu.matmul %202, %203, %cst_159 {dimension_numbers = #tpu.dot_dimension_numbers<[1], [0], [0], [1], [0, 0, 1, 1], [], []>} : vector<8x8xf32>, vector<8x648xf32>, vector<8x648xf32> -> vector<8x648xf32>
    %205 = arith.addf %200, %204 : vector<8x648xf32>
    %c4_160 = arith.constant 4 : index
    %c0_161 = arith.constant 0 : index
    %c0_162 = arith.constant 0 : index
    %206 = vector.load %arg4[%c4_160, %c0_161, %c0_162] : memref<9x8x8xf32, #tpu.memory_space<vmem>>, vector<1x8x8xf32>
    %207 = vector.shape_cast %206 : vector<1x8x8xf32> to vector<8x8xf32>
    %c0_163 = arith.constant 0 : index
    %c128_164 = arith.constant 128 : index
    %208 = vector.load %arg9[%c0_163, %c128_164] : memref<8x904xf32, #tpu.memory_space<vmem>>, vector<8x648xf32>
    %cst_165 = arith.constant dense<0.000000e+00> : vector<8x648xf32>
    %209 = tpu.matmul %207, %208, %cst_165 {dimension_numbers = #tpu.dot_dimension_numbers<[1], [0], [0], [1], [0, 0, 1, 1], [], []>} : vector<8x8xf32>, vector<8x648xf32>, vector<8x648xf32> -> vector<8x648xf32>
    %210 = arith.addf %205, %209 : vector<8x648xf32>
    %c5_166 = arith.constant 5 : index
    %c0_167 = arith.constant 0 : index
    %c0_168 = arith.constant 0 : index
    %211 = vector.load %arg4[%c5_166, %c0_167, %c0_168] : memref<9x8x8xf32, #tpu.memory_space<vmem>>, vector<1x8x8xf32>
    %212 = vector.shape_cast %211 : vector<1x8x8xf32> to vector<8x8xf32>
    %c0_169 = arith.constant 0 : index
    %c129_170 = arith.constant 129 : index
    %213 = vector.load %arg9[%c0_169, %c129_170] : memref<8x904xf32, #tpu.memory_space<vmem>>, vector<8x648xf32>
    %cst_171 = arith.constant dense<0.000000e+00> : vector<8x648xf32>
    %214 = tpu.matmul %212, %213, %cst_171 {dimension_numbers = #tpu.dot_dimension_numbers<[1], [0], [0], [1], [0, 0, 1, 1], [], []>} : vector<8x8xf32>, vector<8x648xf32>, vector<8x648xf32> -> vector<8x648xf32>
    %215 = arith.addf %210, %214 : vector<8x648xf32>
    %c6_172 = arith.constant 6 : index
    %c0_173 = arith.constant 0 : index
    %c0_174 = arith.constant 0 : index
    %216 = vector.load %arg4[%c6_172, %c0_173, %c0_174] : memref<9x8x8xf32, #tpu.memory_space<vmem>>, vector<1x8x8xf32>
    %217 = vector.shape_cast %216 : vector<1x8x8xf32> to vector<8x8xf32>
    %c0_175 = arith.constant 0 : index
    %c145_176 = arith.constant 145 : index
    %218 = vector.load %arg9[%c0_175, %c145_176] : memref<8x904xf32, #tpu.memory_space<vmem>>, vector<8x648xf32>
    %cst_177 = arith.constant dense<0.000000e+00> : vector<8x648xf32>
    %219 = tpu.matmul %217, %218, %cst_177 {dimension_numbers = #tpu.dot_dimension_numbers<[1], [0], [0], [1], [0, 0, 1, 1], [], []>} : vector<8x8xf32>, vector<8x648xf32>, vector<8x648xf32> -> vector<8x648xf32>
    %220 = arith.addf %215, %219 : vector<8x648xf32>
    %c7_178 = arith.constant 7 : index
    %c0_179 = arith.constant 0 : index
    %c0_180 = arith.constant 0 : index
    %221 = vector.load %arg4[%c7_178, %c0_179, %c0_180] : memref<9x8x8xf32, #tpu.memory_space<vmem>>, vector<1x8x8xf32>
    %222 = vector.shape_cast %221 : vector<1x8x8xf32> to vector<8x8xf32>
    %c0_181 = arith.constant 0 : index
    %c146_182 = arith.constant 146 : index
    %223 = vector.load %arg9[%c0_181, %c146_182] : memref<8x904xf32, #tpu.memory_space<vmem>>, vector<8x648xf32>
    %cst_183 = arith.constant dense<0.000000e+00> : vector<8x648xf32>
    %224 = tpu.matmul %222, %223, %cst_183 {dimension_numbers = #tpu.dot_dimension_numbers<[1], [0], [0], [1], [0, 0, 1, 1], [], []>} : vector<8x8xf32>, vector<8x648xf32>, vector<8x648xf32> -> vector<8x648xf32>
    %225 = arith.addf %220, %224 : vector<8x648xf32>
    %c8_184 = arith.constant 8 : index
    %c0_185 = arith.constant 0 : index
    %c0_186 = arith.constant 0 : index
    %226 = vector.load %arg4[%c8_184, %c0_185, %c0_186] : memref<9x8x8xf32, #tpu.memory_space<vmem>>, vector<1x8x8xf32>
    %227 = vector.shape_cast %226 : vector<1x8x8xf32> to vector<8x8xf32>
    %c0_187 = arith.constant 0 : index
    %c147_188 = arith.constant 147 : index
    %228 = vector.load %arg9[%c0_187, %c147_188] : memref<8x904xf32, #tpu.memory_space<vmem>>, vector<8x648xf32>
    %cst_189 = arith.constant dense<0.000000e+00> : vector<8x648xf32>
    %229 = tpu.matmul %227, %228, %cst_189 {dimension_numbers = #tpu.dot_dimension_numbers<[1], [0], [0], [1], [0, 0, 1, 1], [], []>} : vector<8x8xf32>, vector<8x648xf32>, vector<8x648xf32> -> vector<8x648xf32>
    %230 = arith.addf %225, %229 : vector<8x648xf32>
    %231 = vector.broadcast %105 : vector<1x648xf32> to vector<8x648xf32>
    %232 = arith.mulf %230, %231 : vector<8x648xf32>
    %cst_190 = arith.constant dense<0.000000e+00> : vector<8xf32>
    %233 = vector.multi_reduction <add>, %232, %cst_190 [1] : vector<8x648xf32> to vector<8xf32>
    %234 = vector.shape_cast %233 : vector<8xf32> to vector<8x1xf32>
    %235 = arith.mulf %232, %230 : vector<8x648xf32>
    %cst_191 = arith.constant dense<0.000000e+00> : vector<8xf32>
    %236 = vector.multi_reduction <add>, %235, %cst_191 [1] : vector<8x648xf32> to vector<8xf32>
    %237 = vector.shape_cast %236 : vector<8xf32> to vector<8x1xf32>
    %cst_192 = arith.constant 0.001953125 : f32
    %238 = vector.broadcast %cst_192 : f32 to vector<8x1xf32>
    %239 = arith.mulf %234, %238 : vector<8x1xf32>
    %cst_193 = arith.constant 0.001953125 : f32
    %240 = vector.broadcast %cst_193 : f32 to vector<8x1xf32>
    %241 = arith.mulf %237, %240 : vector<8x1xf32>
    %242 = arith.mulf %239, %239 : vector<8x1xf32>
    %243 = arith.subf %241, %242 : vector<8x1xf32>
    %cst_194 = arith.constant 0.000000e+00 : f32
    %244 = vector.broadcast %cst_194 : f32 to vector<8x1xf32>
    %245 = arith.maximumf %243, %244 : vector<8x1xf32>
    %c0_195 = arith.constant 0 : index
    %c0_196 = arith.constant 0 : index
    %246 = vector.load %arg5[%c0_195, %c0_196] : memref<8x1xf32, #tpu.memory_space<vmem>>, vector<8x1xf32>
    %cst_197 = arith.constant 9.99999974E-6 : f32
    %247 = vector.broadcast %cst_197 : f32 to vector<8x1xf32>
    %248 = arith.addf %245, %247 : vector<8x1xf32>
    %249 = math.rsqrt %248 : vector<8x1xf32>
    %250 = arith.mulf %246, %249 : vector<8x1xf32>
    %c0_198 = arith.constant 0 : index
    %c0_199 = arith.constant 0 : index
    %251 = vector.load %arg6[%c0_198, %c0_199] : memref<8x1xf32, #tpu.memory_space<vmem>>, vector<8x1xf32>
    %252 = arith.mulf %239, %250 : vector<8x1xf32>
    %253 = arith.subf %251, %252 : vector<8x1xf32>
    %254 = vector.broadcast %250 : vector<8x1xf32> to vector<8x648xf32>
    %255 = arith.mulf %230, %254 : vector<8x648xf32>
    %256 = vector.broadcast %253 : vector<8x1xf32> to vector<8x648xf32>
    %257 = arith.addf %255, %256 : vector<8x648xf32>
    %cst_200 = arith.constant 0.00999999977 : f32
    %258 = vector.broadcast %cst_200 : f32 to vector<8x648xf32>
    %259 = arith.mulf %258, %257 : vector<8x648xf32>
    %260 = arith.maximumf %257, %259 : vector<8x648xf32>
    %261 = vector.extract_strided_slice %260 {offsets = [0, 19], sizes = [8, 16], strides = [1, 1]} : vector<8x648xf32> to vector<8x16xf32>
    %c0_201 = arith.constant 0 : index
    %c0_202 = arith.constant 0 : index
    %262 = vector.load %arg7[%c0_201, %c0_202] : memref<16x256xf32, #tpu.memory_space<vmem>>, vector<8x16xf32>
    tpu.vector_store %arg7[%c0_201, %c0_202], %261 {strides = array<i32>} : memref<16x256xf32, #tpu.memory_space<vmem>>, vector<8x16xf32>,
    %263 = vector.extract_strided_slice %260 {offsets = [0, 37], sizes = [8, 16], strides = [1, 1]} : vector<8x648xf32> to vector<8x16xf32>
    %c0_203 = arith.constant 0 : index
    %c16 = arith.constant 16 : index
    %264 = vector.load %arg7[%c0_203, %c16] : memref<16x256xf32, #tpu.memory_space<vmem>>, vector<8x16xf32>
    tpu.vector_store %arg7[%c0_203, %c16], %263 {strides = array<i32>} : memref<16x256xf32, #tpu.memory_space<vmem>>, vector<8x16xf32>,
    %265 = vector.extract_strided_slice %260 {offsets = [0, 55], sizes = [8, 16], strides = [1, 1]} : vector<8x648xf32> to vector<8x16xf32>
    %c0_204 = arith.constant 0 : index
    %c32 = arith.constant 32 : index
    %266 = vector.load %arg7[%c0_204, %c32] : memref<16x256xf32, #tpu.memory_space<vmem>>, vector<8x16xf32>
    tpu.vector_store %arg7[%c0_204, %c32], %265 {strides = array<i32>} : memref<16x256xf32, #tpu.memory_space<vmem>>, vector<8x16xf32>,
    %267 = vector.extract_strided_slice %260 {offsets = [0, 73], sizes = [8, 16], strides = [1, 1]} : vector<8x648xf32> to vector<8x16xf32>
    %c0_205 = arith.constant 0 : index
    %c48 = arith.constant 48 : index
    %268 = vector.load %arg7[%c0_205, %c48] : memref<16x256xf32, #tpu.memory_space<vmem>>, vector<8x16xf32>
    tpu.vector_store %arg7[%c0_205, %c48], %267 {strides = array<i32>} : memref<16x256xf32, #tpu.memory_space<vmem>>, vector<8x16xf32>,
    %269 = vector.extract_strided_slice %260 {offsets = [0, 91], sizes = [8, 16], strides = [1, 1]} : vector<8x648xf32> to vector<8x16xf32>
    %c0_206 = arith.constant 0 : index
    %c64 = arith.constant 64 : index
    %270 = vector.load %arg7[%c0_206, %c64] : memref<16x256xf32, #tpu.memory_space<vmem>>, vector<8x16xf32>
    tpu.vector_store %arg7[%c0_206, %c64], %269 {strides = array<i32>} : memref<16x256xf32, #tpu.memory_space<vmem>>, vector<8x16xf32>,
    %271 = vector.extract_strided_slice %260 {offsets = [0, 109], sizes = [8, 16], strides = [1, 1]} : vector<8x648xf32> to vector<8x16xf32>
    %c0_207 = arith.constant 0 : index
    %c80 = arith.constant 80 : index
    %272 = vector.load %arg7[%c0_207, %c80] : memref<16x256xf32, #tpu.memory_space<vmem>>, vector<8x16xf32>
    tpu.vector_store %arg7[%c0_207, %c80], %271 {strides = array<i32>} : memref<16x256xf32, #tpu.memory_space<vmem>>, vector<8x16xf32>,
    %273 = vector.extract_strided_slice %260 {offsets = [0, 127], sizes = [8, 16], strides = [1, 1]} : vector<8x648xf32> to vector<8x16xf32>
    %c0_208 = arith.constant 0 : index
    %c96 = arith.constant 96 : index
    %274 = vector.load %arg7[%c0_208, %c96] : memref<16x256xf32, #tpu.memory_space<vmem>>, vector<8x16xf32>
    tpu.vector_store %arg7[%c0_208, %c96], %273 {strides = array<i32>} : memref<16x256xf32, #tpu.memory_space<vmem>>, vector<8x16xf32>,
    %275 = vector.extract_strided_slice %260 {offsets = [0, 145], sizes = [8, 16], strides = [1, 1]} : vector<8x648xf32> to vector<8x16xf32>
    %c0_209 = arith.constant 0 : index
    %c112 = arith.constant 112 : index
    %276 = vector.load %arg7[%c0_209, %c112] : memref<16x256xf32, #tpu.memory_space<vmem>>, vector<8x16xf32>
    tpu.vector_store %arg7[%c0_209, %c112], %275 {strides = array<i32>} : memref<16x256xf32, #tpu.memory_space<vmem>>, vector<8x16xf32>,
    %277 = vector.extract_strided_slice %260 {offsets = [0, 163], sizes = [8, 16], strides = [1, 1]} : vector<8x648xf32> to vector<8x16xf32>
    %c0_210 = arith.constant 0 : index
    %c128_211 = arith.constant 128 : index
    %278 = vector.load %arg7[%c0_210, %c128_211] : memref<16x256xf32, #tpu.memory_space<vmem>>, vector<8x16xf32>
    tpu.vector_store %arg7[%c0_210, %c128_211], %277 {strides = array<i32>} : memref<16x256xf32, #tpu.memory_space<vmem>>, vector<8x16xf32>,
    %279 = vector.extract_strided_slice %260 {offsets = [0, 181], sizes = [8, 16], strides = [1, 1]} : vector<8x648xf32> to vector<8x16xf32>
    %c0_212 = arith.constant 0 : index
    %c144 = arith.constant 144 : index
    %280 = vector.load %arg7[%c0_212, %c144] : memref<16x256xf32, #tpu.memory_space<vmem>>, vector<8x16xf32>
    tpu.vector_store %arg7[%c0_212, %c144], %279 {strides = array<i32>} : memref<16x256xf32, #tpu.memory_space<vmem>>, vector<8x16xf32>,
    %281 = vector.extract_strided_slice %260 {offsets = [0, 199], sizes = [8, 16], strides = [1, 1]} : vector<8x648xf32> to vector<8x16xf32>
    %c0_213 = arith.constant 0 : index
    %c160 = arith.constant 160 : index
    %282 = vector.load %arg7[%c0_213, %c160] : memref<16x256xf32, #tpu.memory_space<vmem>>, vector<8x16xf32>
    tpu.vector_store %arg7[%c0_213, %c160], %281 {strides = array<i32>} : memref<16x256xf32, #tpu.memory_space<vmem>>, vector<8x16xf32>,
    %283 = vector.extract_strided_slice %260 {offsets = [0, 217], sizes = [8, 16], strides = [1, 1]} : vector<8x648xf32> to vector<8x16xf32>
    %c0_214 = arith.constant 0 : index
    %c176 = arith.constant 176 : index
    %284 = vector.load %arg7[%c0_214, %c176] : memref<16x256xf32, #tpu.memory_space<vmem>>, vector<8x16xf32>
    tpu.vector_store %arg7[%c0_214, %c176], %283 {strides = array<i32>} : memref<16x256xf32, #tpu.memory_space<vmem>>, vector<8x16xf32>,
    %285 = vector.extract_strided_slice %260 {offsets = [0, 235], sizes = [8, 16], strides = [1, 1]} : vector<8x648xf32> to vector<8x16xf32>
    %c0_215 = arith.constant 0 : index
    %c192 = arith.constant 192 : index
    %286 = vector.load %arg7[%c0_215, %c192] : memref<16x256xf32, #tpu.memory_space<vmem>>, vector<8x16xf32>
    tpu.vector_store %arg7[%c0_215, %c192], %285 {strides = array<i32>} : memref<16x256xf32, #tpu.memory_space<vmem>>, vector<8x16xf32>,
    %287 = vector.extract_strided_slice %260 {offsets = [0, 253], sizes = [8, 16], strides = [1, 1]} : vector<8x648xf32> to vector<8x16xf32>
    %c0_216 = arith.constant 0 : index
    %c208 = arith.constant 208 : index
    %288 = vector.load %arg7[%c0_216, %c208] : memref<16x256xf32, #tpu.memory_space<vmem>>, vector<8x16xf32>
    tpu.vector_store %arg7[%c0_216, %c208], %287 {strides = array<i32>} : memref<16x256xf32, #tpu.memory_space<vmem>>, vector<8x16xf32>,
    %289 = vector.extract_strided_slice %260 {offsets = [0, 271], sizes = [8, 16], strides = [1, 1]} : vector<8x648xf32> to vector<8x16xf32>
    %c0_217 = arith.constant 0 : index
    %c224 = arith.constant 224 : index
    %290 = vector.load %arg7[%c0_217, %c224] : memref<16x256xf32, #tpu.memory_space<vmem>>, vector<8x16xf32>
    tpu.vector_store %arg7[%c0_217, %c224], %289 {strides = array<i32>} : memref<16x256xf32, #tpu.memory_space<vmem>>, vector<8x16xf32>,
    %291 = vector.extract_strided_slice %260 {offsets = [0, 289], sizes = [8, 16], strides = [1, 1]} : vector<8x648xf32> to vector<8x16xf32>
    %c0_218 = arith.constant 0 : index
    %c240 = arith.constant 240 : index
    %292 = vector.load %arg7[%c0_218, %c240] : memref<16x256xf32, #tpu.memory_space<vmem>>, vector<8x16xf32>
    tpu.vector_store %arg7[%c0_218, %c240], %291 {strides = array<i32>} : memref<16x256xf32, #tpu.memory_space<vmem>>, vector<8x16xf32>,
    %293 = vector.extract_strided_slice %260 {offsets = [0, 343], sizes = [8, 16], strides = [1, 1]} : vector<8x648xf32> to vector<8x16xf32>
    %c8_219 = arith.constant 8 : index
    %c0_220 = arith.constant 0 : index
    %294 = vector.load %arg7[%c8_219, %c0_220] : memref<16x256xf32, #tpu.memory_space<vmem>>, vector<8x16xf32>
    tpu.vector_store %arg7[%c8_219, %c0_220], %293 {strides = array<i32>} : memref<16x256xf32, #tpu.memory_space<vmem>>, vector<8x16xf32>,
    %295 = vector.extract_strided_slice %260 {offsets = [0, 361], sizes = [8, 16], strides = [1, 1]} : vector<8x648xf32> to vector<8x16xf32>
    %c8_221 = arith.constant 8 : index
    %c16_222 = arith.constant 16 : index
    %296 = vector.load %arg7[%c8_221, %c16_222] : memref<16x256xf32, #tpu.memory_space<vmem>>, vector<8x16xf32>
    tpu.vector_store %arg7[%c8_221, %c16_222], %295 {strides = array<i32>} : memref<16x256xf32, #tpu.memory_space<vmem>>, vector<8x16xf32>,
    %297 = vector.extract_strided_slice %260 {offsets = [0, 379], sizes = [8, 16], strides = [1, 1]} : vector<8x648xf32> to vector<8x16xf32>
    %c8_223 = arith.constant 8 : index
    %c32_224 = arith.constant 32 : index
    %298 = vector.load %arg7[%c8_223, %c32_224] : memref<16x256xf32, #tpu.memory_space<vmem>>, vector<8x16xf32>
    tpu.vector_store %arg7[%c8_223, %c32_224], %297 {strides = array<i32>} : memref<16x256xf32, #tpu.memory_space<vmem>>, vector<8x16xf32>,
    %299 = vector.extract_strided_slice %260 {offsets = [0, 397], sizes = [8, 16], strides = [1, 1]} : vector<8x648xf32> to vector<8x16xf32>
    %c8_225 = arith.constant 8 : index
    %c48_226 = arith.constant 48 : index
    %300 = vector.load %arg7[%c8_225, %c48_226] : memref<16x256xf32, #tpu.memory_space<vmem>>, vector<8x16xf32>
    tpu.vector_store %arg7[%c8_225, %c48_226], %299 {strides = array<i32>} : memref<16x256xf32, #tpu.memory_space<vmem>>, vector<8x16xf32>,
    %301 = vector.extract_strided_slice %260 {offsets = [0, 415], sizes = [8, 16], strides = [1, 1]} : vector<8x648xf32> to vector<8x16xf32>
    %c8_227 = arith.constant 8 : index
    %c64_228 = arith.constant 64 : index
    %302 = vector.load %arg7[%c8_227, %c64_228] : memref<16x256xf32, #tpu.memory_space<vmem>>, vector<8x16xf32>
    tpu.vector_store %arg7[%c8_227, %c64_228], %301 {strides = array<i32>} : memref<16x256xf32, #tpu.memory_space<vmem>>, vector<8x16xf32>,
    %303 = vector.extract_strided_slice %260 {offsets = [0, 433], sizes = [8, 16], strides = [1, 1]} : vector<8x648xf32> to vector<8x16xf32>
    %c8_229 = arith.constant 8 : index
    %c80_230 = arith.constant 80 : index
    %304 = vector.load %arg7[%c8_229, %c80_230] : memref<16x256xf32, #tpu.memory_space<vmem>>, vector<8x16xf32>
    tpu.vector_store %arg7[%c8_229, %c80_230], %303 {strides = array<i32>} : memref<16x256xf32, #tpu.memory_space<vmem>>, vector<8x16xf32>,
    %305 = vector.extract_strided_slice %260 {offsets = [0, 451], sizes = [8, 16], strides = [1, 1]} : vector<8x648xf32> to vector<8x16xf32>
    %c8_231 = arith.constant 8 : index
    %c96_232 = arith.constant 96 : index
    %306 = vector.load %arg7[%c8_231, %c96_232] : memref<16x256xf32, #tpu.memory_space<vmem>>, vector<8x16xf32>
    tpu.vector_store %arg7[%c8_231, %c96_232], %305 {strides = array<i32>} : memref<16x256xf32, #tpu.memory_space<vmem>>, vector<8x16xf32>,
    %307 = vector.extract_strided_slice %260 {offsets = [0, 469], sizes = [8, 16], strides = [1, 1]} : vector<8x648xf32> to vector<8x16xf32>
    %c8_233 = arith.constant 8 : index
    %c112_234 = arith.constant 112 : index
    %308 = vector.load %arg7[%c8_233, %c112_234] : memref<16x256xf32, #tpu.memory_space<vmem>>, vector<8x16xf32>
    tpu.vector_store %arg7[%c8_233, %c112_234], %307 {strides = array<i32>} : memref<16x256xf32, #tpu.memory_space<vmem>>, vector<8x16xf32>,
    %309 = vector.extract_strided_slice %260 {offsets = [0, 487], sizes = [8, 16], strides = [1, 1]} : vector<8x648xf32> to vector<8x16xf32>
    %c8_235 = arith.constant 8 : index
    %c128_236 = arith.constant 128 : index
    %310 = vector.load %arg7[%c8_235, %c128_236] : memref<16x256xf32, #tpu.memory_space<vmem>>, vector<8x16xf32>
    tpu.vector_store %arg7[%c8_235, %c128_236], %309 {strides = array<i32>} : memref<16x256xf32, #tpu.memory_space<vmem>>, vector<8x16xf32>,
    %311 = vector.extract_strided_slice %260 {offsets = [0, 505], sizes = [8, 16], strides = [1, 1]} : vector<8x648xf32> to vector<8x16xf32>
    %c8_237 = arith.constant 8 : index
    %c144_238 = arith.constant 144 : index
    %312 = vector.load %arg7[%c8_237, %c144_238] : memref<16x256xf32, #tpu.memory_space<vmem>>, vector<8x16xf32>
    tpu.vector_store %arg7[%c8_237, %c144_238], %311 {strides = array<i32>} : memref<16x256xf32, #tpu.memory_space<vmem>>, vector<8x16xf32>,
    %313 = vector.extract_strided_slice %260 {offsets = [0, 523], sizes = [8, 16], strides = [1, 1]} : vector<8x648xf32> to vector<8x16xf32>
    %c8_239 = arith.constant 8 : index
    %c160_240 = arith.constant 160 : index
    %314 = vector.load %arg7[%c8_239, %c160_240] : memref<16x256xf32, #tpu.memory_space<vmem>>, vector<8x16xf32>
    tpu.vector_store %arg7[%c8_239, %c160_240], %313 {strides = array<i32>} : memref<16x256xf32, #tpu.memory_space<vmem>>, vector<8x16xf32>,
    %315 = vector.extract_strided_slice %260 {offsets = [0, 541], sizes = [8, 16], strides = [1, 1]} : vector<8x648xf32> to vector<8x16xf32>
    %c8_241 = arith.constant 8 : index
    %c176_242 = arith.constant 176 : index
    %316 = vector.load %arg7[%c8_241, %c176_242] : memref<16x256xf32, #tpu.memory_space<vmem>>, vector<8x16xf32>
    tpu.vector_store %arg7[%c8_241, %c176_242], %315 {strides = array<i32>} : memref<16x256xf32, #tpu.memory_space<vmem>>, vector<8x16xf32>,
    %317 = vector.extract_strided_slice %260 {offsets = [0, 559], sizes = [8, 16], strides = [1, 1]} : vector<8x648xf32> to vector<8x16xf32>
    %c8_243 = arith.constant 8 : index
    %c192_244 = arith.constant 192 : index
    %318 = vector.load %arg7[%c8_243, %c192_244] : memref<16x256xf32, #tpu.memory_space<vmem>>, vector<8x16xf32>
    tpu.vector_store %arg7[%c8_243, %c192_244], %317 {strides = array<i32>} : memref<16x256xf32, #tpu.memory_space<vmem>>, vector<8x16xf32>,
    %319 = vector.extract_strided_slice %260 {offsets = [0, 577], sizes = [8, 16], strides = [1, 1]} : vector<8x648xf32> to vector<8x16xf32>
    %c8_245 = arith.constant 8 : index
    %c208_246 = arith.constant 208 : index
    %320 = vector.load %arg7[%c8_245, %c208_246] : memref<16x256xf32, #tpu.memory_space<vmem>>, vector<8x16xf32>
    tpu.vector_store %arg7[%c8_245, %c208_246], %319 {strides = array<i32>} : memref<16x256xf32, #tpu.memory_space<vmem>>, vector<8x16xf32>,
    %321 = vector.extract_strided_slice %260 {offsets = [0, 595], sizes = [8, 16], strides = [1, 1]} : vector<8x648xf32> to vector<8x16xf32>
    %c8_247 = arith.constant 8 : index
    %c224_248 = arith.constant 224 : index
    %322 = vector.load %arg7[%c8_247, %c224_248] : memref<16x256xf32, #tpu.memory_space<vmem>>, vector<8x16xf32>
    tpu.vector_store %arg7[%c8_247, %c224_248], %321 {strides = array<i32>} : memref<16x256xf32, #tpu.memory_space<vmem>>, vector<8x16xf32>,
    %323 = vector.extract_strided_slice %260 {offsets = [0, 613], sizes = [8, 16], strides = [1, 1]} : vector<8x648xf32> to vector<8x16xf32>
    %c8_249 = arith.constant 8 : index
    %c240_250 = arith.constant 240 : index
    %324 = vector.load %arg7[%c8_249, %c240_250] : memref<16x256xf32, #tpu.memory_space<vmem>>, vector<8x16xf32>
    tpu.vector_store %arg7[%c8_249, %c240_250], %323 {strides = array<i32>} : memref<16x256xf32, #tpu.memory_space<vmem>>, vector<8x16xf32>,
    return
  }
}

</mosaic_0001>

<bundles_post_ra>
// kernel: conv_block_forward.1
= control target key start
LH: loop header
LB: loop body
LE: loop exit
PB: predicated region body
PF: predicated region fallthrough
CT: control target
= control target key end

     0   :  { %v5462_v1 = vmov 0.0   ;;  %s5463_s26 = smov 23   ;;  %s5464_s27 = smov 19   ;;  %vm29_vm0 = vcmask 1043456   ;;  %vm30_vm1 = vcmask 64516   ;;  %vm43_vm3 = vcmask 281752   ;;  %s6485_s0 = inlined_call_operand.vmem [shape: f32[2,4,256], index: 0, kind: input, shape index: {}]   ;;  %s6486_s1 = inlined_call_operand.vmem [shape: f32[9,8,4], index: 1, kind: input, shape index: {}]   ;;  %s6487_s2 = inlined_call_operand.vmem [shape: f32[8,1], index: 2, kind: input, shape index: {}]   ;;  %s6488_s3 = inlined_call_operand.vmem [shape: f32[8,1], index: 3, kind: input, shape index: {}]   ;;  %s6489_s4 = inlined_call_operand.vmem [shape: f32[9,8,8], index: 4, kind: input, shape index: {}]   ;;  %s6490_s5 = inlined_call_operand.vmem [shape: f32[8,1], index: 5, kind: input, shape index: {}]   ;;  %s6491_s6 = inlined_call_operand.vmem [shape: f32[8,1], index: 6, kind: input, shape index: {}]   ;;  %s6492_s7 = inlined_call_operand.vmem [shape: f32[16,256], index: 7, kind: output, shape index: {}]  }
   0x1   :  { %v38_v0 = vld [vmem:[%s6485_s0] sm:$0xff]  ;;  %26 = vst [vmem:[#allocation2] sm:$0xff] %v5462_v1  ;;  %27 = vst [vmem:[#allocation2 + $0x8] sm:$0xff] %v5462_v1  ;;  %559 = vmatprep.mubr.f32.mxu1 %v5462_v1  ;;  %488 = vmatprep.mubr.f32.mxu0 %v5462_v1  ;;  %s5465_s28 = smov 25   ;;  %s5466_s29 = smov 21   ;;  %v5278_v2 = vld [vmem:[%s6485_s0 + $0x8] sm:$0xff] }
   0x2   :  { %28 = vst [vmem:[#allocation2 + $0x10] sm:$0xff] %v5462_v1  ;;  %2817 = vst [vmem:[#allocation3] sm:$0xff] %v5462_v1  ;;  %58 = vrot.lane.b32.xlu1 %v38_v0, %s5463_s26  ;;  %40 = vrot.lane.b32.xlu0 %v38_v0, %s5464_s27  ;;  %s6493_s30 = smov 27   ;;  %s6496_s8 = smov 31   ;;  %vm52_vm4 = vcmask 429352   ;;  %vm61_vm5 = vcmask 576952  }
   0x3   :  { %2818 = vst [vmem:[#allocation3 + $0x30] sm:$0xff] %v5462_v1  ;;  %vm31_vm2 = vmor %vm30_vm1, %vm29_vm0  ;;  %s6507_s9 = smov 35   ;;  %s6495_s10 = smov 29   ;;  %vm70_vm6 = vcmask 724552   ;;  %vm79_vm7 = vcmask 872152   ;;  %vm100_vm8 = vcmask 1044472  }
   0x4   :  { %32 = vst.msk [vmem:[#allocation2 + $0x18] sm:$0xff] %vm31_vm2, %v5462_v1  ;;  %s6500_s11 = smov 33   ;;  %s5472_s12 = smov 37   ;;  %vm101_vm9 = vcmask 121860   ;;  %vm97_vm10 = vcmask 252928   ;;  %vm88_vm11 = vcmask 1019752  }
   0x5   :  { %s5473_s13 = smov 41   ;;  %s5474_s14 = smov 39   ;;  %vm102_vm12 = vmor %vm101_vm9, %vm100_vm8  ;;  %vm120_vm13 = vcmask 285696   ;;  %vm111_vm14 = vcmask 265352   ;;  %vm123_vm15 = vcmask 412952   ;;  %vm6502_vm1 = vcmask 302080  }
   0x6   :  { %67 = vrot.lane.b32.xlu1 %v38_v0, %s5465_s28  ;;  %49 = vrot.lane.b32.xlu0 %v38_v0, %s5466_s29  ;;  %s5475_s15 = smov 45   ;;  %s5476_s16 = smov 43   ;;  %vm135_vm2 = vcmask 560552   ;;  %vm184_vm8 = vcmask 105476   ;;  %vm180_vm9 = vcmask 367616  }
   0x7   :  { %s5477_s17 = smov 49   ;;  %s5478_s18 = smov 47  }
   0x8   :  { %s5479_s21 = smov 87   ;;  %s5480_s22 = smov 91  }
   0x9   :  { %s5481_s23 = smov 93   ;;  %s5482_s24 = smov 89  }
   0xa   :  { %76 = vrot.lane.b32.xlu1 %v38_v0, %s6493_s30  ;;  %94 = vrot.lane.b32.xlu0 %v38_v0, %s6496_s8  ;;  %s6498_s25 = smov 97   ;;  %s5486_s0 = smov 103  }
   0xb   :  { %s5489_s19 = smov 107   ;;  %s5490_s20 = smov 109   ;;  %v1151_v3 = vld [vmem:[#allocation2 + $0x18] sm:$0xf] }
   0xc   :  { %s5491_s30 = smov 111   ;;  %s5494_s8 = smov 117  }
   0xe   :  { %117 = vrot.lane.b32.xlu1 %v38_v0, %s6507_s9  ;;  %85 = vrot.lane.b32.xlu0 %v38_v0, %s6495_s10  ;;  %s5493_s10 = smov 115  }
  0x12   :  { %108 = vrot.lane.b32.xlu1 %v38_v0, %s6500_s11  ;;  %129 = vrot.lane.b32.xlu0 %v38_v0, %s5472_s12 }
  0x16   :  { %153 = vrot.lane.b32.xlu1 %v38_v0, %s5473_s13  ;;  %141 = vrot.lane.b32.xlu0 %v38_v0, %s5474_s14 }
  0x1a   :  { %177 = vrot.lane.b32.xlu1 %v38_v0, %s5475_s15  ;;  %165 = vrot.lane.b32.xlu0 %v38_v0, %s5476_s16  ;;  %s6494_s15 = smov 95   ;;  %s6497_s16 = smov 99  }
  0x1e   :  { %201 = vrot.lane.b32.xlu1 %v38_v0, %s5477_s17  ;;  %191 = vrot.lane.b32.xlu0 %v38_v0, %s5478_s18  ;;  %s6501_s17 = smov 101   ;;  %s5488_s18 = smov 105  }
  0x22   :  { %214 = vrot.lane.b32.xlu1 %v5278_v2, %s5479_s21  ;;  %232 = vrot.lane.b32.xlu0 %v5278_v2, %s5480_s22 }
  0x26   :  { %246 = vrot.lane.b32.xlu1 %v5278_v2, %s5481_s23  ;;  %223 = vrot.lane.b32.xlu0 %v5278_v2, %s5482_s24 }
  0x2a   :  { %264 = vrot.lane.b32.xlu1 %v5278_v2, %s6498_s25  ;;  %255 = vrot.lane.b32.xlu0 %v5278_v2, %s6494_s15  ;;  %s5492_s15 = smov 113   ;;  %s5499_s25 = smov 110  }
  0x2e   :  { %273 = vrot.lane.b32.xlu1 %v5278_v2, %s6497_s16  ;;  %291 = vrot.lane.b32.xlu0 %v5278_v2, %s5486_s0  ;;  %s5495_s16 = smov 1  }
  0x32   :  { %282 = vrot.lane.b32.xlu1 %v5278_v2, %s6501_s17  ;;  %303 = vrot.lane.b32.xlu0 %v5278_v2, %s5488_s18 }
  0x36   :  { %317 = vrot.lane.b32.xlu0 %v5278_v2, %s5489_s19  ;;  %327 = vrot.lane.b32.xlu1 %v5278_v2, %s5490_s20 }
  0x3a   :  { %337 = vrot.lane.b32.xlu0 %v5278_v2, %s5491_s30  ;;  %347 = vrot.lane.b32.xlu1 %v5278_v2, %s5492_s15  ;;  %s5498_s15 = smov 127  }
  0x3e   :  { %357 = vrot.lane.b32.xlu0 %v5278_v2, %s5493_s10  ;;  %367 = vrot.lane.b32.xlu1 %v5278_v2, %s5494_s8  ;;  %s5496_s8 = smov 18   ;;  %s5497_s10 = smov 17  }
  0x42   :  { %1171 = vrot.lane.b32.xlu0 %v1151_v3, %s5495_s16 }
  0x74   :  { %v59_v4 = vpop.permute.xlu1 %58  ;;  %v41_v5 = vpop.permute.xlu0 %40 }
  0x75   :  { %44 = vst.msk [vmem:[#allocation2 + $0x4] sm:$0xf] %vm43_vm3, %v41_v5  ;;  %vm156_vm3 = vcmask 334848  }
  0x78   :  { %v68_v6 = vpop.permute.xlu1 %67  ;;  %v50_v7 = vpop.permute.xlu0 %49 }
  0x79   :  { %53 = vst.msk [vmem:[#allocation2 + $0x4] sm:$0xf] %vm52_vm4, %v50_v7  ;;  %vm144_vm4 = vcmask 318464  }
  0x7a   :  { %62 = vst.msk [vmem:[#allocation2 + $0x4] sm:$0xf] %vm61_vm5, %v59_v4  ;;  %vm147_vm5 = vcmask 708152  }
  0x7b   :  { %71 = vst.msk [vmem:[#allocation2 + $0x4] sm:$0xf] %vm70_vm6, %v68_v6  ;;  %vm159_vm6 = vcmask 855752  }
  0x7c   :  { %v77_v8 = vpop.permute.xlu1 %76  ;;  %v95_v9 = vpop.permute.xlu0 %94 }
  0x7d   :  { %80 = vst.msk [vmem:[#allocation2 + $0x4] sm:$0xf] %vm79_vm7, %v77_v8  ;;  %v96_v10 = vrot.slane %v95_v9, 4  ;;  %vm183_vm7 = vcmask 1044456  }
  0x7f   :  { %v98_v13 = vsel %vm97_vm10, %v96_v10, %v95_v9  ;;  %vm168_vm10 = vcmask 351232  }
  0x80   :  { %v118_v11 = vpop.permute.xlu1 %117  ;;  %v86_v12 = vpop.permute.xlu0 %85 }
  0x81   :  { %v119_v14 = vrot.slane %v118_v11, 4  ;;  %89 = vst.msk [vmem:[#allocation2 + $0x4] sm:$0xf] %vm88_vm11, %v86_v12  ;;  %vm171_vm11 = vcmask 1003352  }
  0x82   :  { %103 = vst.msk [vmem:[#allocation2 + $0x4] sm:$0xff] %vm102_vm12, %v98_v13  ;;  %vm185_vm12 = vmor %vm184_vm8, %vm183_vm7  ;;  %vm249_vm7 = vcmask 232552   ;;  %vm258_vm8 = vcmask 380152  }
  0x83   :  { %v121_v15 = vsel %vm120_vm13, %v118_v11, %v119_v14  ;;  %vm195_vm13 = vcmask 248952  }
  0x84   :  { %v109_v16 = vpop.permute.xlu1 %108  ;;  %v130_v17 = vpop.permute.xlu0 %129 }
  0x85   :  { %112 = vst.msk [vmem:[#allocation2 + $0x8] sm:$0xf] %vm111_vm14, %v109_v16  ;;  %v131_v18 = vrot.slane %v130_v17, 4  ;;  %vm205_vm14 = vcmask 396552  }
  0x86   :  { %124 = vst.msk [vmem:[#allocation2 + $0x8] sm:$0xf] %vm123_vm15, %v121_v15  ;;  %vm217_vm15 = vcmask 839352  }
  0x87   :  { %v133_v19 = vsel %vm6502_vm1, %v130_v17, %v131_v18 }
  0x88   :  { %136 = vst.msk [vmem:[#allocation2 + $0x8] sm:$0xf] %vm135_vm2, %v133_v19  ;;  %v154_v20 = vpop.permute.xlu1 %153  ;;  %v142_v21 = vpop.permute.xlu0 %141  ;;  %vm238_vm2 = vcmask 1044440  }
  0x89   :  { %v155_v22 = vrot.slane %v154_v20, 4  ;;  %v143_v23 = vrot.slane %v142_v21, 4  ;;  %v379_v24 = vld [vmem:[#allocation2] sm:$0xff] }
  0x8a   :  { %390 = vrot.lane.b32.xlu0 %v379_v24, %s5496_s8  ;;  %v5592_v25 = vcombine.high %v379_v24, %v379_v24 }
  0x8b   :  { %v157_v26 = vsel %vm156_vm3, %v154_v20, %v155_v22  ;;  %v145_v27 = vsel %vm144_vm4, %v142_v21, %v143_v23  ;;  %vm239_vm3 = vcmask 89092   ;;  %vm235_vm4 = vcmask 744448  }
  0x8c   :  { %148 = vst.msk [vmem:[#allocation2 + $0x8] sm:$0xf] %vm147_vm5, %v145_v27  ;;  %v178_v28 = vpop.permute.xlu1 %177  ;;  %896 = vrot.lane.b32.xlu1 %v5592_v25, %s5497_s10  ;;  %v166_v29 = vpop.permute.xlu0 %165  ;;  %vm226_vm5 = vcmask 986952  }
  0x8d   :  { %v179_v30 = vrot.slane %v178_v28, 4  ;;  %160 = vst.msk [vmem:[#allocation2 + $0x8] sm:$0xf] %vm159_vm6, %v157_v26  ;;  %v167_v31 = vrot.slane %v166_v29, 4  ;;  %vm240_vm6 = vmor %vm239_vm3, %vm238_vm2  ;;  %vm306_vm2 = vcmask 859136  }
  0x8e   :  { %637 = vrot.lane.b32.xlu0 %v379_v24, %s5464_s27 }
  0x8f   :  { %v181_v32 = vsel %vm180_vm9, %v178_v28, %v179_v30  ;;  %v169_v33 = vsel %vm168_vm10, %v166_v29, %v167_v31  ;;  %vm267_vm9 = vcmask 527752   ;;  %vm276_vm10 = vcmask 675352  }
  0x90   :  { %172 = vst.msk [vmem:[#allocation2 + $0x8] sm:$0xf] %vm171_vm11, %v169_v33  ;;  %v202_v34 = vpop.permute.xlu1 %201  ;;  %v192_v35 = vpop.permute.xlu0 %191  ;;  %vm294_vm11 = vcmask 842752  }
  0x91   :  { %186 = vst.msk [vmem:[#allocation2 + $0x8] sm:$0xff] %vm185_vm12, %v181_v32  ;;  %v203_v36 = vrot.slane %v202_v34, 4  ;;  %v193_v37 = vrot.slane %v192_v35, 4  ;;  %vm285_vm12 = vcmask 822952  }
  0x92   :  { %894 = vrot.lane.b32.xlu0 %v379_v24, %s5497_s10 }
  0x93   :  { %196 = vst.msk [vmem:[#allocation2 + $0xc] sm:$0xf] %vm195_vm13, %v193_v37  ;;  %vm309_vm13 = vcmask 1044424  }
  0x94   :  { %v215_v38 = vpop.permute.xlu1 %214  ;;  %206 = vst.msk [vmem:[#allocation2 + $0xc] sm:$0xf] %vm205_vm14, %v203_v36  ;;  %v233_v39 = vpop.permute.xlu0 %232  ;;  %vm310_vm14 = vcmask 72708  }
  0x95   :  { %218 = vst.msk [vmem:[#allocation2 + $0xc] sm:$0xf] %vm217_vm15, %v215_v38  ;;  %v234_v40 = vrot.slane %v233_v39, 4  ;;  %vm297_vm15 = vcmask 970552   ;;  %vm311_vm3 = vmor %vm310_vm14, %vm309_vm13  ;;  %vm906_vm13 = vcmask 138240   ;;  %vm1173_vm14 = vcmask 7168  }
  0x96   :  { %1159 = vrot.lane.b32.xlu0 %v379_v24, %s5495_s16 }
  0x97   :  { %v236_v44 = vsel %vm235_vm4, %v234_v40, %v233_v39  ;;  %vm321_vm4 = vcmask 216152  }
  0x98   :  { %v247_v41 = vpop.permute.xlu1 %246  ;;  %v224_v42 = vpop.permute.xlu0 %223  ;;  %v5599_v43 = vld [vmem:[#allocation2 + $0x4] sm:$0xff] }
  0x99   :  { %227 = vst.msk [vmem:[#allocation2 + $0xc] sm:$0xf] %vm226_vm5, %v224_v42  ;;  %v5603_v45 = vcombine.high %v5599_v43, %v5599_v43  ;;  %vm331_vm5 = vcmask 363752  }
  0x9a   :  { %241 = vst.msk [vmem:[#allocation2 + $0xc] sm:$0xff] %vm240_vm6, %v236_v44  ;;  %392 = vrot.lane.b32.xlu0 %v5592_v25, %s5496_s8  ;;  %vm341_vm6 = vcmask 511352   ;;  %v378_v44 = vld [vmem:[%s6486_s1] sm:$0xff] }
  0x9b   :  { %1672 = vrot.lane.b32.xlu1 %v5603_v45, %s5498_s15  ;;  %250 = vst.msk [vmem:[#allocation2 + $0x10] sm:$0xf] %vm249_vm7, %v247_v41  ;;  %vm351_vm7 = vcmask 658952  }
  0x9c   :  { %v265_v46 = vpop.permute.xlu1 %264  ;;  %v256_v47 = vpop.permute.xlu0 %255 }
  0x9d   :  { %259 = vst.msk [vmem:[#allocation2 + $0x10] sm:$0xf] %vm258_vm8, %v256_v47  ;;  %vm361_vm8 = vcmask 806552  }
  0x9e   :  { %639 = vrot.lane.b32.xlu0 %v5592_v25, %s5464_s27  ;;  %268 = vst.msk [vmem:[#allocation2 + $0x10] sm:$0xf] %vm267_vm9, %v265_v46  ;;  %vm371_vm9 = vcmask 954152  }
  0xa0   :  { %v274_v48 = vpop.permute.xlu1 %273  ;;  %v292_v49 = vpop.permute.xlu0 %291 }
  0xa1   :  { %277 = vst.msk [vmem:[#allocation2 + $0x10] sm:$0xf] %vm276_vm10, %v274_v48  ;;  %v293_v50 = vrot.slane %v292_v49, 4  ;;  %v380_v51 = vld [vmem:[#allocation2 + $0x8] sm:$0xff]  ;;  %vm402_vm10 = vcmask 146432  }
  0xa2   :  { %1161 = vrot.lane.b32.xlu0 %v5592_v25, %s5495_s16  ;;  %394 = vrot.lane.b32.xlu1 %v380_v51, %s5496_s8  ;;  %v892_v57 = vcombine.high %v380_v51, %v380_v51  ;;  %v5279_v25 = vld [vmem:[%s6486_s1 + $0x8] sm:$0xff] }
  0xa3   :  { %v295_v54 = vsel %vm294_vm11, %v292_v49, %v293_v50  ;;  %vm408_vm11 = vcmask 31744  }
  0xa4   :  { %v283_v52 = vpop.permute.xlu1 %282  ;;  %v304_v53 = vpop.permute.xlu0 %303 }
  0xa5   :  { %286 = vst.msk [vmem:[#allocation2 + $0x10] sm:$0xf] %vm285_vm12, %v283_v52  ;;  %v305_v55 = vrot.slane %v304_v53, 4  ;;  %vm649_vm12 = vcmask 154624  }
  0xa6   :  { %298 = vst.msk [vmem:[#allocation2 + $0x10] sm:$0xf] %vm297_vm15, %v295_v54  ;;  %898 = vrot.lane.b32.xlu0 %v380_v51, %s5497_s10  ;;  %641 = vrot.lane.b32.xlu1 %v380_v51, %s5464_s27  ;;  %vm6506_vm15 = vcmask 1039360  }
  0xa7   :  { %v307_v56 = vsel %vm306_vm2, %v304_v53, %v305_v55  ;;  %vm6505_vm2 = vcmask 908288  }
  0xa8   :  { %312 = vst.msk [vmem:[#allocation2 + $0x10] sm:$0xff] %vm311_vm3, %v307_v56  ;;  %v318_v58 = vpop.permute.xlu0 %317  ;;  %v328_v59 = vpop.permute.xlu1 %327  ;;  %vm6504_vm3 = vcmask 900096  }
  0xa9   :  { %v319_v60 = vrot.slane %v318_v58, 4  ;;  %v329_v61 = vrot.slane %v328_v59, 4  ;;  %v5298_v58 = vld [vmem:[%s6486_s1 + $0x10] sm:$0xff] }
  0xaa   :  { %1163 = vrot.lane.b32.xlu1 %v380_v51, %s5495_s16  ;;  %643 = vrot.lane.b32.xlu0 %v892_v57, %s5464_s27 }
  0xab   :  { %322 = vst.msk [vmem:[#allocation2 + $0x14] sm:$0xf] %vm321_vm4, %v319_v60  ;;  %vm6503_vm4 = vcmask 891904  }
  0xac   :  { %332 = vst.msk [vmem:[#allocation2 + $0x14] sm:$0xf] %vm331_vm5, %v329_v61  ;;  %v338_v62 = vpop.permute.xlu0 %337  ;;  %v348_v63 = vpop.permute.xlu1 %347 }
  0xad   :  { %v339_v0 = vrot.slane %v338_v62, 4  ;;  %v349_v2 = vrot.slane %v348_v63, 4 }
  0xae   :  { %1165 = vrot.lane.b32.xlu0 %v892_v57, %s5495_s16  ;;  %396 = vrot.lane.b32.xlu1 %v892_v57, %s5496_s8 }
  0xaf   :  { %342 = vst.msk [vmem:[#allocation2 + $0x14] sm:$0xf] %vm341_vm6, %v339_v0  ;;  %v5620_v7 = vld [vmem:[#allocation2 + $0xc] sm:$0xff] }
  0xb0   :  { %352 = vst.msk [vmem:[#allocation2 + $0x14] sm:$0xf] %vm351_vm7, %v349_v2  ;;  %v358_v3 = vpop.permute.xlu0 %357  ;;  %v368_v4 = vpop.permute.xlu1 %367  ;;  %v5625_v8 = vcombine.high %v5620_v7, %v5620_v7 }
  0xb1   :  { %v359_v5 = vrot.slane %v358_v3, 4  ;;  %v369_v6 = vrot.slane %v368_v4, 4 }
  0xb2   :  { %900 = vrot.lane.b32.xlu1 %v892_v57, %s5497_s10 }
  0xb3   :  { %362 = vst.msk [vmem:[#allocation2 + $0x14] sm:$0xf] %vm361_vm8, %v359_v5 }
  0xb4   :  { %372 = vst.msk [vmem:[#allocation2 + $0x14] sm:$0xf] %vm371_vm9, %v369_v6  ;;  %v5687_v13 = vpop.permute.xlu0 %1171 }
  0xb6   :  { %1676 = vrot.lane.b32.xlu1 %v5625_v8, %s5498_s15 }
  0xba   :  { %1670 = vrot.lane.b32.xlu1 %v5599_v43, %s5498_s15 }
  0xbb   :  { %v381_v9 = vld [vmem:[#allocation2 + $0x10] sm:$0xff] }
  0xbc   :  { %398 = vrot.lane.b32.xlu0 %v381_v9, %s5496_s8  ;;  %v1158_v10 = vcombine.high %v381_v9, %v381_v9  ;;  %v5642_v11 = vld [vmem:[#allocation2 + $0x14] sm:$0xff] }
  0xbd   :  { %v5658_v12 = vcombine.high %v5642_v11, %v5642_v11 }
  0xbe   :  { %645 = vrot.lane.b32.xlu1 %v381_v9, %s5464_s27 }
  0xc0   :  { %1674 = vrot.lane.b32.xlu0 %v5620_v7, %s5498_s15 }
  0xc2   :  { %1167 = vrot.lane.b32.xlu1 %v381_v9, %s5495_s16 }
  0xc4   :  { %1935 = vrot.lane.b32.xlu0 %v5603_v45, %s5491_s30 }
  0xc6   :  { %400 = vrot.lane.b32.xlu1 %v1158_v10, %s5496_s8 }
  0xc8   :  { %902 = vrot.lane.b32.xlu0 %v381_v9, %s5497_s10  ;;  %v5308_v9 = vld [vmem:[%s6486_s1 + $0x18] sm:$0xff] }
  0xca   :  { %1937 = vrot.lane.b32.xlu1 %v5620_v7, %s5491_s30 }
  0xcc   :  { %1678 = vrot.lane.b32.xlu0 %v5642_v11, %s5498_s15 }
  0xce   :  { %647 = vrot.lane.b32.xlu1 %v1158_v10, %s5464_s27 }
  0xd0   :  { %1939 = vrot.lane.b32.xlu0 %v5625_v8, %s5491_s30 }
  0xd2   :  { %904 = vrot.lane.b32.xlu1 %v1158_v10, %s5497_s10 }
  0xd4   :  { %2200 = vrot.lane.b32.xlu0 %v5620_v7, %s5499_s25 }
  0xd6   :  { %1933 = vrot.lane.b32.xlu1 %v5599_v43, %s5491_s30 }
  0xd8   :  { %2204 = vrot.lane.b32.xlu0 %v5642_v11, %s5499_s25 }
  0xda   :  { %1169 = vrot.lane.b32.xlu1 %v1158_v10, %s5495_s16 }
  0xdc   :  { %1680 = vrot.lane.b32.xlu0 %v5658_v12, %s5498_s15 }
  0xde   :  { %1941 = vrot.lane.b32.xlu1 %v5642_v11, %s5491_s30 }
  0xe0   :  { %1943 = vrot.lane.b32.xlu0 %v5658_v12, %s5491_s30 }
  0xe2   :  { %2198 = vrot.lane.b32.xlu1 %v5603_v45, %s5499_s25 }
  0xe4   :  { %2461 = vrot.lane.b32.xlu0 %v5603_v45, %s5490_s20 }
  0xe6   :  { %2202 = vrot.lane.b32.xlu1 %v5625_v8, %s5499_s25 }
  0xe8   :  { %2206 = vrot.lane.b32.xlu0 %v5658_v12, %s5499_s25 }
  0xea   :  { %2196 = vrot.lane.b32.xlu1 %v5599_v43, %s5499_s25 }
  0xec   :  { %2465 = vrot.lane.b32.xlu0 %v5625_v8, %s5490_s20 }
  0xee   :  { %2463 = vrot.lane.b32.xlu1 %v5620_v7, %s5490_s20 }
  0xf0   :  { %2469 = vrot.lane.b32.xlu0 %v5658_v12, %s5490_s20 }
  0xf2   :  { %2459 = vrot.lane.b32.xlu1 %v5599_v43, %s5490_s20 }
  0xf6   :  { %2467 = vrot.lane.b32.xlu1 %v5642_v11, %s5490_s20 }
  0xfc   :  { %v391_v14 = vpop.permute.xlu0 %390 }
  0xfe   :  { %v897_v18 = vpop.permute.xlu1 %896 }
 0x100   :  { %v638_v15 = vpop.permute.xlu0 %637 }
 0x104   :  { %v5689_v16 = vpop.permute.xlu0 %894 }
 0x105   :  { %v907_v56 = vsel %vm906_vm13, %v5689_v16, %v897_v18 }
 0x108   :  { %v5691_v17 = vpop.permute.xlu0 %1159 }
 0x10c   :  { %v393_v19 = vpop.permute.xlu0 %392 }
 0x10d   :  { %v5693_v20 = vpop.permute.xlu1 %1672  ;;  %v403_v24 = vsel %vm402_vm10, %v391_v14, %v393_v19 }
 0x110   :  { %v640_v21 = vpop.permute.xlu0 %639 }
 0x111   :  { %v650_v41 = vsel %vm649_vm12, %v638_v15, %v640_v21 }
 0x114   :  { %v395_v22 = vpop.permute.xlu1 %394  ;;  %v5702_v26 = vpop.permute.xlu0 %1161 }
 0x115   :  { %v404_v23 = vsel %vm402_vm10, %v393_v19, %v395_v22  ;;  %v1174_v4 = vsel %vm1173_vm14, %v5691_v17, %v5702_v26 }
 0x116   :  { %5280 = vmatprep.subr.msk.mxu0 %vm29_vm0, %v404_v23 }
 0x117   :  { %5281 = vmatpush1.msk.msra.mxu0 %vm29_vm0, %v403_v24 }
 0x118   :  { %v642_v27 = vpop.permute.xlu1 %641  ;;  %5282 = vmatmul.mubr.msk.f32.vlgmr.msra.gmra.mxu0 %vm408_vm11, %v5279_v25  ;;  %v899_v29 = vpop.permute.xlu0 %898 }
 0x119   :  { %630 = vmatprep.mubr.f32.mxu0 %v5462_v1  ;;  %v651_v40 = vsel %vm649_vm12, %v640_v21, %v642_v27  ;;  %v908_v54 = vsel %vm906_vm13, %v897_v18, %v899_v29 }
 0x11c   :  { %v5706_v28 = vpop.permute.xlu1 %1163  ;;  %v644_v31 = vpop.permute.xlu0 %643 }
 0x11d   :  { %v652_v52 = vsel %vm649_vm12, %v642_v27, %v644_v31  ;;  %v1175_v2 = vsel %vm1173_vm14, %v5702_v26, %v5706_v28  ;;  %v5338_v26 = vld [vmem:[%s6486_s1 + $0x30] sm:$0xff] }
 0x120   :  { %v397_v30 = vpop.permute.xlu1 %396  ;;  %v5710_v34 = vpop.permute.xlu0 %1165 }
 0x121   :  { %v405_v39 = vsel %vm402_vm10, %v395_v22, %v397_v30  ;;  %v1176_v10 = vsel %vm1173_vm14, %v5706_v28, %v5710_v34  ;;  %v5328_v22 = vld [vmem:[%s6486_s1 + $0x28] sm:$0xff] }
 0x124   :  { %v901_v32 = vpop.permute.xlu1 %900 }
 0x125   :  { %v909_v62 = vsel %vm906_vm13, %v899_v29, %v901_v32 }
 0x128   :  { %v5708_v33 = vpop.permute.xlu1 %1676 }
 0x12c   :  { %v5712_v35 = vpop.permute.xlu1 %1670 }
 0x12e   :  { %v399_v36 = vpop.permute.xlu0 %398 }
 0x12f   :  { %v406_v37 = vsel %vm402_vm10, %v397_v30, %v399_v36 }
 0x130   :  { %v646_v38 = vpop.permute.xlu1 %645  ;;  %5283 = vmatprep.subr.msk.mxu1 %vm29_vm0, %v406_v37 }
 0x131   :  { %5284 = vmatpush1.msk.msra.mxu1 %vm29_vm0, %v405_v39  ;;  %v653_v51 = vsel %vm649_vm12, %v644_v31, %v646_v38  ;;  %v5348_v39 = vld [vmem:[%s6486_s1 + $0x38] sm:$0xff] }
 0x132   :  { %5285 = vmatmul.mubr.msk.f32.vlgmr.msra.gmra.mxu1 %vm408_vm11, %v5279_v25  ;;  %5289 = vmatprep.subr.msk.mxu1 %vm29_vm0, %v651_v40  ;;  %v5722_v42 = vpop.permute.xlu0 %1674 }
 0x133   :  { %5290 = vmatpush1.msk.msra.mxu1 %vm29_vm0, %v650_v41  ;;  %734 = vmatprep.mubr.f32.mxu1 %v5462_v1 }
 0x134   :  { %v5729_v46 = vpop.permute.xlu1 %1167 }
 0x135   :  { %v1177_v5 = vsel %vm1173_vm14, %v5710_v34, %v5729_v46 }
 0x136   :  { %5291 = vmatmul.mubr.msk.f32.vlgmr.msra.gmra.mxu1 %vm408_vm11, %v378_v44  ;;  %v5732_v47 = vpop.permute.xlu0 %1935 }
 0x137   :  { %876 = vmatprep.mubr.f32.mxu1 %v5462_v1 }
 0x138   :  { %v401_v48 = vpop.permute.xlu1 %400 }
 0x139   :  { %v407_v49 = vsel %vm402_vm10, %v399_v36, %v401_v48  ;;  %5286 = vmatprep.subr.msk.mxu0 %vm29_vm0, %v401_v48 }
 0x13a   :  { %5287 = vmatpush1.msk.msra.mxu0 %vm29_vm0, %v407_v49  ;;  %v903_v50 = vpop.permute.xlu0 %902 }
 0x13b   :  { %5288 = vmatmul.mubr.msk.f32.vlgmr.msra.gmra.mxu0 %vm408_vm11, %v5279_v25  ;;  %5292 = vmatprep.subr.msk.mxu0 %vm29_vm0, %v653_v51  ;;  %v910_v61 = vsel %vm906_vm13, %v901_v32, %v903_v50  ;;  %v33_v51 = vlaneseq }
 0x13c   :  { %v5742_v53 = vpop.permute.xlu1 %1937  ;;  %5293 = vmatpush1.msk.msra.mxu0 %vm29_vm0, %v652_v52  ;;  %805 = vmatprep.mubr.f32.mxu0 %v5462_v1  ;;  %v5500_v52 = vmov 1.0  }
 0x13d   :  { %5299 = vmatprep.subr.msk.mxu0 %vm29_vm0, %v908_v54  ;;  %v1947_v21 = vsel %vm6505_vm2, %v5732_v47, %v5742_v53  ;;  %vm35_vm5 = vcmp.lt.s32.totalorder %v33_v51, 648  ;;  %vm45_vm6 = vcmp.ge.s32.totalorder %v33_v51, 19  ;;  %vm46_vm7 = vcmp.lt.s32.totalorder %v33_v51, 35 }
 0x13e   :  { %v5748_v55 = vpop.permute.xlu0 %1678  ;;  %37 = vst.msk [vmem:[#allocation4] sm:$0x3f] %vm35_vm5, %v5462_v1  ;;  %vm54_vm8 = vcmp.ge.s32.totalorder %v33_v51, 37  ;;  %vm55_vm9 = vcmp.lt.s32.totalorder %v33_v51, 53  ;;  %vm63_vm1 = vcmp.ge.s32.totalorder %v33_v51, 55  ;;  %vm73_vm5 = vcmp.lt.s32.totalorder %v33_v51, 89 }
 0x13f   :  { %5294 = vmatmul.mubr.msk.f32.vlgmr.msra.gmra.mxu0 %vm408_vm11, %v378_v44 }
 0x140   :  { %5300 = vmatpush1.msk.msra.mxu0 %vm29_vm0, %v907_v56  ;;  %v648_v57 = vpop.permute.xlu1 %647  ;;  %991 = vmatprep.mubr.f32.mxu0 %v5462_v1 }
 0x141   :  { %v654_v59 = vsel %vm649_vm12, %v646_v38, %v648_v57  ;;  %5295 = vmatprep.subr.msk.mxu1 %vm29_vm0, %v648_v57 }
 0x142   :  { %5296 = vmatpush1.msk.msra.mxu1 %vm29_vm0, %v654_v59  ;;  %v5761_v60 = vpop.permute.xlu0 %1939 }
 0x143   :  { %5297 = vmatmul.mubr.msk.f32.vlgmr.msra.gmra.mxu1 %vm408_vm11, %v378_v44  ;;  %5301 = vmatmul.mubr.msk.f32.vlgmr.msra.gmra.mxu0 %vm408_vm11, %v5298_v58  ;;  %v1948_v31 = vsel %vm6505_vm2, %v5742_v53, %v5761_v60  ;;  %v5358_v44 = vld [vmem:[%s6486_s1 + $0x40] sm:$0xff] }
 0x144   :  { %5302 = vmatprep.subr.msk.mxu1 %vm29_vm0, %v910_v61  ;;  %v905_v63 = vpop.permute.xlu1 %904  ;;  %1062 = vmatprep.mubr.f32.mxu1 %v5462_v1 }
 0x145   :  { %v911_v0 = vsel %vm906_vm13, %v903_v50, %v905_v63  ;;  %5303 = vmatpush1.msk.msra.mxu1 %vm29_vm0, %v909_v62  ;;  %5305 = vmatprep.subr.msk.mxu0 %vm29_vm0, %v905_v63 }
 0x146   :  { %5309 = vmatprep.subr.msk.mxu1 %vm29_vm0, %v1175_v2  ;;  %5306 = vmatpush1.msk.msra.mxu0 %vm29_vm0, %v911_v0  ;;  %v5777_v3 = vpop.permute.xlu0 %2200 }
 0x147   :  { %1133 = vmatprep.mubr.f32.mxu0 %v5462_v1  ;;  %5304 = vmatmul.mubr.msk.f32.vlgmr.msra.gmra.mxu1 %vm408_vm11, %v5298_v58 }
 0x148   :  { %5307 = vmatmul.mubr.msk.f32.vlgmr.msra.gmra.mxu0 %vm408_vm11, %v5298_v58  ;;  %5310 = vmatpush1.msk.msra.mxu1 %vm29_vm0, %v1174_v4  ;;  %v1934_v6 = vpop.permute.xlu1 %1933 }
 0x149   :  { %5312 = vmatprep.subr.msk.mxu0 %vm29_vm0, %v1177_v5  ;;  %1259 = vmatprep.mubr.f32.mxu1 %v5462_v1 }
 0x14a   :  { %5313 = vmatpush1.msk.msra.mxu0 %vm29_vm0, %v1176_v10  ;;  %1330 = vmatprep.mubr.f32.mxu0 %v5462_v1  ;;  %v5799_v14 = vpop.permute.xlu0 %2204 }
 0x14b   :  { %5319 = vmatprep.subr.msk.mxu0 %vm29_vm0, %v5603_v45  ;;  %5311 = vmatmul.mubr.msk.f32.vlgmr.msra.gmra.mxu1 %vm408_vm11, %v5308_v9  ;;  %v5318_v45 = vld [vmem:[%s6486_s1 + $0x20] sm:$0xff] }
 0x14c   :  { %5314 = vmatmul.mubr.msk.f32.vlgmr.msra.gmra.mxu0 %vm408_vm11, %v5308_v9  ;;  %v1170_v15 = vpop.permute.xlu1 %1169  ;;  %1401 = vmatprep.mubr.f32.mxu1 %v5462_v1 }
 0x14d   :  { %5320 = vmatpush1.msk.msra.mxu0 %vm29_vm0, %v5599_v43  ;;  %v1178_v16 = vsel %vm1173_vm14, %v5729_v46, %v1170_v15  ;;  %v1179_v17 = vsel %vm1173_vm14, %v1170_v15, %v5687_v13  ;;  %1504 = vmatprep.mubr.f32.mxu0 %v5462_v1  ;;  %v1684_v13 = vsel %vm6506_vm15, %v5693_v20, %v5722_v42 }
 0x14e   :  { %5325 = vmatprep.subr.msk.mxu0 %vm29_vm0, %v5658_v12  ;;  %5315 = vmatprep.subr.msk.mxu1 %vm29_vm0, %v1179_v17  ;;  %v1681_v18 = vpop.permute.xlu0 %1680  ;;  %v1686_v12 = vsel %vm6506_vm15, %v5708_v33, %v5748_v55 }
 0x14f   :  { %5316 = vmatpush1.msk.msra.mxu1 %vm29_vm0, %v1178_v16  ;;  %v1687_v25 = vsel %vm6506_vm15, %v5748_v55, %v1681_v18 }
 0x150   :  { %5321 = vmatmul.mubr.msk.f32.vlgmr.msra.gmra.mxu0 %vm408_vm11, %v5318_v45  ;;  %v1942_v43 = vpop.permute.xlu1 %1941  ;;  %5317 = vmatmul.mubr.msk.f32.vlgmr.msra.gmra.mxu1 %vm408_vm11, %v5308_v9 }
 0x151   :  { %5326 = vmatpush1.msk.msra.mxu0 %vm29_vm0, %v5642_v11  ;;  %5322 = vmatprep.subr.msk.mxu1 %vm29_vm0, %v5625_v8  ;;  %v1685_v8 = vsel %vm6506_vm15, %v5722_v42, %v5708_v33  ;;  %v1949_v27 = vsel %vm6505_vm2, %v5761_v60, %v1942_v43 }
 0x152   :  { %5332 = vmatprep.subr.msk.mxu0 %vm29_vm0, %v1686_v12  ;;  %5323 = vmatpush1.msk.msra.mxu1 %vm29_vm0, %v5620_v7  ;;  %v1944_v19 = vpop.permute.xlu0 %1943  ;;  %v1683_v7 = vsel %vm6506_vm15, %v5712_v35, %v5693_v20  ;;  %v1946_v20 = vsel %vm6505_vm2, %v1934_v6, %v5732_v47  ;;  %vm82_vm15 = vcmp.lt.s32.totalorder %v33_v51, 107 }
 0x153   :  { %1646 = vmatprep.mubr.f32.mxu0 %v5462_v1  ;;  %5329 = vmatprep.subr.msk.mxu1 %vm29_vm0, %v1684_v13  ;;  %v1950_v29 = vsel %vm6505_vm2, %v1942_v43, %v1944_v19  ;;  %vm72_vm2 = vcmp.ge.s32.totalorder %v33_v51, 73 }
 0x154   :  { %1575 = vmatprep.mubr.f32.mxu1 %v5462_v1  ;;  %5327 = vmatmul.mubr.msk.f32.vlgmr.msra.gmra.mxu0 %vm408_vm11, %v5318_v45  ;;  %v2199_v11 = vpop.permute.xlu1 %2198 }
 0x155   :  { %5333 = vmatpush1.msk.msra.mxu0 %vm29_vm0, %v1685_v8  ;;  %5324 = vmatmul.mubr.msk.f32.vlgmr.msra.gmra.mxu1 %vm408_vm11, %v5318_v45  ;;  %v2210_v33 = vsel %vm6504_vm3, %v2199_v11, %v5777_v3 }
 0x156   :  { %5330 = vmatpush1.msk.msra.mxu1 %vm29_vm0, %v1683_v7  ;;  %5339 = vmatprep.subr.msk.mxu0 %vm29_vm0, %v1947_v21  ;;  %v2462_v23 = vpop.permute.xlu0 %2461 }
 0x157   :  { %5335 = vmatprep.subr.msk.mxu1 %vm29_vm0, %v1681_v18  ;;  %1838 = vmatprep.mubr.f32.mxu0 %v5462_v1 }
 0x158   :  { %1767 = vmatprep.mubr.f32.mxu1 %v5462_v1  ;;  %5334 = vmatmul.mubr.msk.f32.vlgmr.msra.gmra.mxu0 %vm408_vm11, %v5328_v22  ;;  %v2203_v24 = vpop.permute.xlu1 %2202 }
 0x159   :  { %5340 = vmatpush1.msk.msra.mxu0 %vm29_vm0, %v1946_v20  ;;  %5331 = vmatmul.mubr.msk.f32.vlgmr.msra.gmra.mxu1 %vm408_vm11, %v5328_v22  ;;  %v2212_v32 = vsel %vm6504_vm3, %v2203_v24, %v5799_v14  ;;  %v2211_v34 = vsel %vm6504_vm3, %v5777_v3, %v2203_v24 }
 0x15a   :  { %5336 = vmatpush1.msk.msra.mxu1 %vm29_vm0, %v1687_v25  ;;  %5345 = vmatprep.subr.msk.mxu0 %vm29_vm0, %v1944_v19  ;;  %v2207_v28 = vpop.permute.xlu0 %2206 }
 0x15b   :  { %5342 = vmatprep.subr.msk.mxu1 %vm29_vm0, %v1949_v27  ;;  %2030 = vmatprep.mubr.f32.mxu0 %v5462_v1  ;;  %v2213_v41 = vsel %vm6504_vm3, %v5799_v14, %v2207_v28 }
 0x15c   :  { %1909 = vmatprep.mubr.f32.mxu1 %v5462_v1  ;;  %5341 = vmatmul.mubr.msk.f32.vlgmr.msra.gmra.mxu0 %vm408_vm11, %v5338_v26  ;;  %v2197_v30 = vpop.permute.xlu1 %2196 }
 0x15d   :  { %5346 = vmatpush1.msk.msra.mxu0 %vm29_vm0, %v1950_v29  ;;  %5337 = vmatmul.mubr.msk.f32.vlgmr.msra.gmra.mxu1 %vm408_vm11, %v5328_v22  ;;  %v2209_v37 = vsel %vm6504_vm3, %v2197_v30, %v2199_v11 }
 0x15e   :  { %5343 = vmatpush1.msk.msra.mxu1 %vm29_vm0, %v1948_v31  ;;  %5352 = vmatprep.subr.msk.mxu0 %vm29_vm0, %v2212_v32  ;;  %v2466_v35 = vpop.permute.xlu0 %2465 }
 0x15f   :  { %5349 = vmatprep.subr.msk.mxu1 %vm29_vm0, %v2210_v33  ;;  %2172 = vmatprep.mubr.f32.mxu0 %v5462_v1 }
 0x160   :  { %2101 = vmatprep.mubr.f32.mxu1 %v5462_v1  ;;  %5347 = vmatmul.mubr.msk.f32.vlgmr.msra.gmra.mxu0 %vm408_vm11, %v5338_v26  ;;  %v2464_v36 = vpop.permute.xlu1 %2463 }
 0x161   :  { %5353 = vmatpush1.msk.msra.mxu0 %vm29_vm0, %v2211_v34  ;;  %5344 = vmatmul.mubr.msk.f32.vlgmr.msra.gmra.mxu1 %vm408_vm11, %v5338_v26  ;;  %v2473_v38 = vsel %vm6503_vm4, %v2462_v23, %v2464_v36  ;;  %v2474_v50 = vsel %vm6503_vm4, %v2464_v36, %v2466_v35 }
 0x162   :  { %5350 = vmatpush1.msk.msra.mxu1 %vm29_vm0, %v2209_v37  ;;  %2364 = vmatprep.mubr.f32.mxu0 %v5462_v1  ;;  %v2470_v46 = vpop.permute.xlu0 %2469 }
 0x163   :  { %5355 = vmatprep.subr.msk.mxu1 %vm29_vm0, %v2207_v28  ;;  %5359 = vmatprep.subr.msk.mxu0 %vm29_vm0, %v2473_v38 }
 0x164   :  { %2293 = vmatprep.mubr.f32.mxu1 %v5462_v1  ;;  %5354 = vmatmul.mubr.msk.f32.vlgmr.msra.gmra.mxu0 %vm408_vm11, %v5348_v39  ;;  %v2460_v40 = vpop.permute.xlu1 %2459 }
 0x165   :  { %v2472_v42 = vsel %vm6503_vm4, %v2460_v40, %v2462_v23  ;;  %5351 = vmatmul.mubr.msk.f32.vlgmr.msra.gmra.mxu1 %vm408_vm11, %v5348_v39  ;;  %2556 = vmatprep.mubr.f32.mxu0 %v5462_v1 }
 0x166   :  { %5356 = vmatpush1.msk.msra.mxu1 %vm29_vm0, %v2213_v41  ;;  %5360 = vmatpush1.msk.msra.mxu0 %vm29_vm0, %v2472_v42  ;;  %v2713_v42 = vshrl.u32 %v33_v51, 7 }
 0x167   :  { %2435 = vmatprep.mubr.f32.mxu1 %v5462_v1  ;;  %5365 = vmatprep.subr.msk.mxu0 %vm29_vm0, %v2470_v46 }
 0x168   :  { %5361 = vmatmul.mubr.msk.f32.vlgmr.msra.gmra.mxu0 %vm408_vm11, %v5358_v44  ;;  %v2468_v47 = vpop.permute.xlu1 %2467 }
 0x169   :  { %v2476_v48 = vsel %vm6503_vm4, %v2468_v47, %v2470_v46  ;;  %5357 = vmatmul.mubr.msk.f32.vlgmr.msra.gmra.mxu1 %vm408_vm11, %v5348_v39  ;;  %v2475_v49 = vsel %vm6503_vm4, %v2466_v35, %v2468_v47  ;;  %2698 = vmatprep.mubr.f32.mxu0 %v5462_v1  ;;  %vm64_vm4 = vcmp.lt.s32.totalorder %v33_v51, 71 }
 0x16a   :  { %5362 = vmatprep.subr.msk.mxu1 %vm29_vm0, %v2475_v49  ;;  %5366 = vmatpush1.msk.msra.mxu0 %vm29_vm0, %v2476_v48  ;;  %vm65_vm3 = vmand %vm63_vm1, %vm64_vm4  ;;  %vm104_vm4 = vcmp.ge.s32.totalorder %v33_v51, 127 }
 0x16b   :  { %5363 = vmatpush1.msk.msra.mxu1 %vm29_vm0, %v2474_v50  ;;  %2627 = vmatprep.mubr.f32.mxu1 %v5462_v1  ;;  %vm47_vm0 = vmand %vm45_vm6, %vm46_vm7  ;;  %vm81_vm7 = vcmp.ge.s32.totalorder %v33_v51, 91 }
 0x16c   :  { %5367 = vmatmul.mubr.msk.f32.vlgmr.msra.gmra.mxu0 %vm408_vm11, %v5358_v44  ;;  %48 = vst.msk [vmem:[#allocation4] sm:$0x1] %vm47_vm0, %v5500_v52  ;;  %vm74_vm6 = vmand %vm72_vm2, %vm73_vm5  ;;  %vm114_vm5 = vcmp.lt.s32.totalorder %v33_v51, 33 }
 0x16d   :  { %5364 = vmatmul.mubr.msk.f32.vlgmr.msra.gmra.mxu1 %vm408_vm11, %v5358_v44  ;;  %3008 = vmatprep.mubr.f32.mxu0 %v5462_v1  ;;  %vm56_vm11 = vmand %vm54_vm8, %vm55_vm9  ;;  %vm90_vm8 = vcmp.ge.s32.totalorder %v33_v51, 109  ;;  %vm91_vm9 = vcmp.lt.s32.totalorder %v33_v51, 125 }
 0x16e   :  { %2937 = vmatprep.mubr.f32.mxu1 %v5462_v1  ;;  %57 = vst.msk [vmem:[#allocation4] sm:$0x1] %vm56_vm11, %v5500_v52  ;;  %vm83_vm0 = vmand %vm81_vm7, %vm82_vm15  ;;  %vm105_vm11 = vcmp.lt.s32.totalorder %v33_v51, 143  ;;  %vm126_vm7 = vcmp.lt.s32.totalorder %v33_v51, 51  ;;  %v6031_v1 = vld [vmem:[#allocation3] sm:$0xff] }
 0x16f   :  { %66 = vst.msk [vmem:[#allocation4] sm:$0x1] %vm65_vm3, %v5500_v52  ;;  %vm92_vm1 = vmand %vm90_vm8, %vm91_vm9  ;;  %vm113_vm3 = vcmp.ge.s32.totalorder %v33_v51, 17  ;;  %vm137_vm8 = vcmp.ge.s32.totalorder %v33_v51, 53  ;;  %vm138_vm9 = vcmp.lt.s32.totalorder %v33_v51, 69 }
 0x170   :  { %75 = vst.msk [vmem:[#allocation4] sm:$0x1] %vm74_vm6, %v5500_v52  ;;  %vm106_vm2 = vmand %vm104_vm4, %vm105_vm11  ;;  %vm125_vm6 = vcmp.ge.s32.totalorder %v33_v51, 35  ;;  %vm149_vm4 = vcmp.ge.s32.totalorder %v33_v51, 71  ;;  %vm150_vm11 = vcmp.lt.s32.totalorder %v33_v51, 87 }
 0x171   :  { %84 = vst.msk [vmem:[#allocation4] sm:$0x1] %vm83_vm0, %v5500_v52  ;;  %vm115_vm15 = vmand %vm113_vm3, %vm114_vm5  ;;  %vm161_vm3 = vcmp.ge.s32.totalorder %v33_v51, 89  ;;  %vm162_vm5 = vcmp.lt.s32.totalorder %v33_v51, 105 }
 0x172   :  { %93 = vst.msk [vmem:[#allocation4] sm:$0x1] %vm92_vm1, %v5500_v52  ;;  %vm127_vm0 = vmand %vm125_vm6, %vm126_vm7  ;;  %vm173_vm6 = vcmp.ge.s32.totalorder %v33_v51, 107  ;;  %vm174_vm7 = vcmp.lt.s32.totalorder %v33_v51, 123 }
 0x173   :  { %107 = vst.msk [vmem:[#allocation4] sm:$0x3] %vm106_vm2, %v5500_v52  ;;  %vm139_vm1 = vmand %vm137_vm8, %vm138_vm9  ;;  %vm187_vm8 = vcmp.ge.s32.totalorder %v33_v51, 125  ;;  %vm188_vm9 = vcmp.lt.s32.totalorder %v33_v51, 141 }
 0x174   :  { %116 = vst.msk [vmem:[#allocation4 + $0x1] sm:$0x1] %vm115_vm15, %v5500_v52  ;;  %vm151_vm2 = vmand %vm149_vm4, %vm150_vm11  ;;  %vm197_vm4 = vcmp.ge.s32.totalorder %v33_v51, 15  ;;  %vm198_vm11 = vcmp.lt.s32.totalorder %v33_v51, 31 }
 0x175   :  { %128 = vst.msk [vmem:[#allocation4 + $0x1] sm:$0x1] %vm127_vm0, %v5500_v52  ;;  %vm163_vm15 = vmand %vm161_vm3, %vm162_vm5  ;;  %vm207_vm3 = vcmp.ge.s32.totalorder %v33_v51, 33  ;;  %vm208_vm5 = vcmp.lt.s32.totalorder %v33_v51, 49 }
 0x176   :  { %140 = vst.msk [vmem:[#allocation4 + $0x1] sm:$0x1] %vm139_vm1, %v5500_v52  ;;  %vm175_vm0 = vmand %vm173_vm6, %vm174_vm7  ;;  %vm219_vm6 = vcmp.ge.s32.totalorder %v33_v51, 87  ;;  %vm220_vm7 = vcmp.lt.s32.totalorder %v33_v51, 103 }
 0x177   :  { %152 = vst.msk [vmem:[#allocation4 + $0x1] sm:$0x1] %vm151_vm2, %v5500_v52  ;;  %vm189_vm1 = vmand %vm187_vm8, %vm188_vm9  ;;  %vm228_vm8 = vcmp.ge.s32.totalorder %v33_v51, 105  ;;  %vm229_vm9 = vcmp.lt.s32.totalorder %v33_v51, 121 }
 0x178   :  { %164 = vst.msk [vmem:[#allocation4 + $0x1] sm:$0x1] %vm163_vm15, %v5500_v52  ;;  %vm199_vm2 = vmand %vm197_vm4, %vm198_vm11  ;;  %vm242_vm4 = vcmp.ge.s32.totalorder %v33_v51, 123  ;;  %vm243_vm11 = vcmp.lt.s32.totalorder %v33_v51, 139 }
 0x179   :  { %176 = vst.msk [vmem:[#allocation4 + $0x1] sm:$0x1] %vm175_vm0, %v5500_v52  ;;  %vm209_vm15 = vmand %vm207_vm3, %vm208_vm5  ;;  %vm251_vm3 = vcmp.ge.s32.totalorder %v33_v51, 13  ;;  %vm252_vm5 = vcmp.lt.s32.totalorder %v33_v51, 29 }
 0x17a   :  { %190 = vst.msk [vmem:[#allocation4 + $0x1] sm:$0x3] %vm189_vm1, %v5500_v52  ;;  %vm221_vm0 = vmand %vm219_vm6, %vm220_vm7  ;;  %vm260_vm6 = vcmp.ge.s32.totalorder %v33_v51, 31  ;;  %vm261_vm7 = vcmp.lt.s32.totalorder %v33_v51, 47 }
 0x17b   :  { %200 = vst.msk [vmem:[#allocation4 + $0x2] sm:$0x1] %vm199_vm2, %v5500_v52  ;;  %vm230_vm1 = vmand %vm228_vm8, %vm229_vm9  ;;  %vm269_vm8 = vcmp.ge.s32.totalorder %v33_v51, 49  ;;  %vm270_vm9 = vcmp.lt.s32.totalorder %v33_v51, 65 }
 0x17c   :  { %210 = vst.msk [vmem:[#allocation4 + $0x2] sm:$0x1] %vm209_vm15, %v5500_v52  ;;  %vm244_vm2 = vmand %vm242_vm4, %vm243_vm11  ;;  %vm278_vm4 = vcmp.ge.s32.totalorder %v33_v51, 67  ;;  %vm279_vm11 = vcmp.lt.s32.totalorder %v33_v51, 83 }
 0x17d   :  { %222 = vst.msk [vmem:[#allocation4 + $0x2] sm:$0x1] %vm221_vm0, %v5500_v52  ;;  %vm253_vm15 = vmand %vm251_vm3, %vm252_vm5  ;;  %vm287_vm3 = vcmp.ge.s32.totalorder %v33_v51, 85  ;;  %vm288_vm5 = vcmp.lt.s32.totalorder %v33_v51, 101 }
 0x17e   :  { %231 = vst.msk [vmem:[#allocation4 + $0x2] sm:$0x1] %vm230_vm1, %v5500_v52  ;;  %vm262_vm0 = vmand %vm260_vm6, %vm261_vm7  ;;  %vm299_vm6 = vcmp.ge.s32.totalorder %v33_v51, 103  ;;  %vm300_vm7 = vcmp.lt.s32.totalorder %v33_v51, 119 }
 0x17f   :  { %245 = vst.msk [vmem:[#allocation4 + $0x2] sm:$0x3] %vm244_vm2, %v5500_v52  ;;  %vm271_vm1 = vmand %vm269_vm8, %vm270_vm9  ;;  %vm313_vm8 = vcmp.ge.s32.totalorder %v33_v51, 121  ;;  %vm314_vm9 = vcmp.lt.s32.totalorder %v33_v51, 137 }
 0x180   :  { %254 = vst.msk [vmem:[#allocation4 + $0x3] sm:$0x1] %vm253_vm15, %v5500_v52  ;;  %vm280_vm2 = vmand %vm278_vm4, %vm279_vm11  ;;  %vm323_vm4 = vcmp.ge.s32.totalorder %v33_v51, 11  ;;  %vm324_vm11 = vcmp.lt.s32.totalorder %v33_v51, 27 }
 0x181   :  { %263 = vst.msk [vmem:[#allocation4 + $0x3] sm:$0x1] %vm262_vm0, %v5500_v52  ;;  %vm289_vm15 = vmand %vm287_vm3, %vm288_vm5  ;;  %vm333_vm3 = vcmp.ge.s32.totalorder %v33_v51, 29  ;;  %vm334_vm5 = vcmp.lt.s32.totalorder %v33_v51, 45 }
 0x182   :  { %272 = vst.msk [vmem:[#allocation4 + $0x3] sm:$0x1] %vm271_vm1, %v5500_v52  ;;  %vm301_vm0 = vmand %vm299_vm6, %vm300_vm7  ;;  %vm343_vm6 = vcmp.ge.s32.totalorder %v33_v51, 47  ;;  %vm344_vm7 = vcmp.lt.s32.totalorder %v33_v51, 63 }
 0x183   :  { %281 = vst.msk [vmem:[#allocation4 + $0x3] sm:$0x1] %vm280_vm2, %v5500_v52  ;;  %vm315_vm1 = vmand %vm313_vm8, %vm314_vm9  ;;  %vm353_vm8 = vcmp.ge.s32.totalorder %v33_v51, 65  ;;  %vm354_vm9 = vcmp.lt.s32.totalorder %v33_v51, 81 }
 0x184   :  { %290 = vst.msk [vmem:[#allocation4 + $0x3] sm:$0x1] %vm289_vm15, %v5500_v52  ;;  %vm325_vm2 = vmand %vm323_vm4, %vm324_vm11  ;;  %vm363_vm4 = vcmp.ge.s32.totalorder %v33_v51, 83  ;;  %vm364_vm11 = vcmp.lt.s32.totalorder %v33_v51, 99 }
 0x185   :  { %302 = vst.msk [vmem:[#allocation4 + $0x3] sm:$0x1] %vm301_vm0, %v5500_v52  ;;  %vm335_vm15 = vmand %vm333_vm3, %vm334_vm5  ;;  %vm373_vm3 = vcmp.ge.s32.totalorder %v33_v51, 101  ;;  %vm374_vm5 = vcmp.lt.s32.totalorder %v33_v51, 117 }
 0x186   :  { %316 = vst.msk [vmem:[#allocation4 + $0x3] sm:$0x3] %vm315_vm1, %v5500_v52  ;;  %vm345_vm0 = vmand %vm343_vm6, %vm344_vm7  ;;  %vm2752_vm6 = vcmask 64512   ;;  %vm6512_vm7 = vcmask 908288  }
 0x187   :  { %326 = vst.msk [vmem:[#allocation4 + $0x4] sm:$0x1] %vm325_vm2, %v5500_v52  ;;  %vm355_vm1 = vmand %vm353_vm8, %vm354_vm9 }
 0x188   :  { %336 = vst.msk [vmem:[#allocation4 + $0x4] sm:$0x1] %vm335_vm15, %v5500_v52  ;;  %vm365_vm2 = vmand %vm363_vm4, %vm364_vm11  ;;  %vm6518_vm11 = vcmask 900096  }
 0x189   :  { %346 = vst.msk [vmem:[#allocation4 + $0x4] sm:$0x1] %vm345_vm0, %v5500_v52  ;;  %vm375_vm15 = vmand %vm373_vm3, %vm374_vm5 }
 0x18a   :  { %356 = vst.msk [vmem:[#allocation4 + $0x4] sm:$0x1] %vm355_vm1, %v5500_v52  ;;  %vm6513_vm0 = vmmov %vm6512_vm7 }
 0x18b   :  { %366 = vst.msk [vmem:[#allocation4 + $0x4] sm:$0x1] %vm365_vm2, %v5500_v52  ;;  %vm6515_vm9 = vmmov %vm6513_vm0 }
 0x18c   :  { %376 = vst.msk [vmem:[#allocation4 + $0x4] sm:$0x1] %vm375_vm15, %v5500_v52  ;;  %vm6516_vm1 = vmmov %vm6513_vm0  ;;  %vm6522_vm15 = vcmask 891904  }
 0x18d   :  { %vm6517_vm4 = vmmov %vm6513_vm0 }
 0x18e   :  { %vm6519_vm2 = vmmov %vm6518_vm11 }
 0x18f   :  { %vm6520_vm3 = vmmov %vm6519_vm2 }
 0x190   :  { %vm6521_vm5 = vmmov %vm6519_vm2 }
 0x1d8   :  { %v490_v53 = vpop.f32.mrf.mxu0 }
 0x1da   :  { %v492_v55 = vpop.f32.mrf.mxu0 }
 0x1f2   :  { %v561_v54 = vpop.f32.mrf.mxu1 }
 0x1f4   :  { %v563_v56 = vpop.f32.mrf.mxu1 }
 0x1f6   :  { %v736_v58 = vpop.f32.mrf.mxu1 }
 0x1f7   :  { %v737_v11 = vadd.f32 %v736_v58, %v490_v53  ;;  %v2714_v58 = vsub.s32 0, %v2713_v42 }
 0x1f8   :  { %v738_v61 = vpop.f32.mrf.mxu1 }
 0x1f9   :  { %v739_v22 = vadd.f32 %v738_v61, %v492_v55 }
 0x1fb   :  { %v632_v57 = vpop.f32.mrf.mxu0 }
 0x1fd   :  { %v634_v59 = vpop.f32.mrf.mxu0 }
 0x1ff   :  { %v807_v60 = vpop.f32.mrf.mxu0 }
 0x200   :  { %v808_v25 = vadd.f32 %v807_v60, %v561_v54 }
 0x201   :  { %v809_v62 = vpop.f32.mrf.mxu0 }
 0x202   :  { %v810_v32 = vadd.f32 %v809_v62, %v563_v56 }
 0x203   :  { %v878_v63 = vpop.f32.mrf.mxu1  ;;  %v993_v0 = vpop.f32.mrf.mxu0 }
 0x204   :  { %v879_v23 = vadd.f32 %v878_v63, %v632_v57  ;;  %v1140_v20 = vadd.f32 %v993_v0, %v737_v11  ;;  %v377_v0 = vld [vmem:[#allocation4] sm:$0x3f]  ;;  %v2734_v11 = vsub.s32 5, %v2713_v42 }
 0x205   :  { %v880_v2 = vpop.f32.mrf.mxu1  ;;  %v995_v3 = vpop.f32.mrf.mxu0 }
 0x206   :  { %v881_v27 = vadd.f32 %v880_v2, %v634_v59  ;;  %v1141_v28 = vadd.f32 %v995_v3, %v739_v22  ;;  %v2718_v2 = vsub.s32 1, %v2713_v42 }
 0x207   :  { %v1064_v4 = vpop.f32.mrf.mxu1 }
 0x208   :  { %v1135_v5 = vpop.f32.mrf.mxu0  ;;  %v1142_v33 = vadd.f32 %v1064_v4, %v808_v25 }
 0x209   :  { %v1066_v6 = vpop.f32.mrf.mxu1  ;;  %v1144_v29 = vadd.f32 %v1135_v5, %v879_v23 }
 0x20a   :  { %v1137_v9 = vpop.f32.mrf.mxu0  ;;  %v1143_v40 = vadd.f32 %v1066_v6, %v810_v32 }
 0x20b   :  { %v1261_v10 = vpop.f32.mrf.mxu1  ;;  %v1145_v35 = vadd.f32 %v1137_v9, %v881_v27 }
 0x20c   :  { %v1332_v14 = vpop.f32.mrf.mxu0  ;;  %v1408_v30 = vadd.f32 %v1261_v10, %v1140_v20  ;;  %v2726_v20 = vsub.s32 3, %v2713_v42 }
 0x20d   :  { %v1263_v15 = vpop.f32.mrf.mxu1  ;;  %v1410_v44 = vadd.f32 %v1332_v14, %v1142_v33  ;;  %v6034_v14 = vrot.slane %v377_v0, %v2714_v58 }
 0x20e   :  { %v1334_v16 = vpop.f32.mrf.mxu0  ;;  %v1409_v36 = vadd.f32 %v1263_v15, %v1141_v28  ;;  %v2722_v15 = vsub.s32 2, %v2713_v42 }
 0x20f   :  { %v1411_v52 = vadd.f32 %v1334_v16, %v1143_v40 }
 0x210   :  { %v1506_v17 = vpop.f32.mrf.mxu0  ;;  %v1403_v45 = vpop.f32.mrf.mxu1 }
 0x211   :  { %v1653_v37 = vadd.f32 %v1506_v17, %v1408_v30  ;;  %v1412_v38 = vadd.f32 %v1403_v45, %v1144_v29  ;;  %v6044_v30 = vrot.slane %v377_v0, %v2722_v15 }
 0x212   :  { %v1508_v18 = vpop.f32.mrf.mxu0  ;;  %v1405_v43 = vpop.f32.mrf.mxu1 }
 0x213   :  { %v1654_v46 = vadd.f32 %v1508_v18, %v1409_v36  ;;  %v1413_v47 = vadd.f32 %v1405_v43, %v1145_v35 }
 0x214   :  { %v1648_v12 = vpop.f32.mrf.mxu0 }
 0x215   :  { %v1577_v13 = vpop.f32.mrf.mxu1  ;;  %v1657_v53 = vadd.f32 %v1648_v12, %v1412_v38 }
 0x216   :  { %v1650_v19 = vpop.f32.mrf.mxu0  ;;  %v1655_v54 = vadd.f32 %v1577_v13, %v1410_v44 }
 0x217   :  { %v1579_v8 = vpop.f32.mrf.mxu1  ;;  %v1658_v59 = vadd.f32 %v1650_v19, %v1413_v47  ;;  %v6038_v19 = vrot.slane %v377_v0, %v2718_v2 }
 0x218   :  { %v1840_v7 = vpop.f32.mrf.mxu0  ;;  %v1656_v60 = vadd.f32 %v1579_v8, %v1411_v52  ;;  %v2730_v8 = vsub.s32 4, %v2713_v42 }
 0x219   :  { %v1769_v21 = vpop.f32.mrf.mxu1  ;;  %v1918_v3 = vadd.f32 %v1840_v7, %v1655_v54 }
 0x21a   :  { %v1842_v24 = vpop.f32.mrf.mxu0  ;;  %v1916_v48 = vadd.f32 %v1769_v21, %v1653_v37  ;;  %v6048_v32 = vrot.slane %v377_v0, %v2730_v8  ;;  %v2780_v8 = vld [vmem:[%s6488_s3] sm:$0xff] }
 0x21b   :  { %v1771_v26 = vpop.f32.mrf.mxu1  ;;  %v1919_v16 = vadd.f32 %v1842_v24, %v1656_v60 }
 0x21c   :  { %v2032_v31 = vpop.f32.mrf.mxu0  ;;  %v1917_v55 = vadd.f32 %v1771_v26, %v1654_v46 }
 0x21d   :  { %v1911_v34 = vpop.f32.mrf.mxu1  ;;  %v2179_v61 = vadd.f32 %v2032_v31, %v1916_v48 }
 0x21e   :  { %v2034_v39 = vpop.f32.mrf.mxu0  ;;  %v1920_v62 = vadd.f32 %v1911_v34, %v1657_v53  ;;  %v6050_v34 = vrot.slane %v377_v0, %v2734_v11 }
 0x21f   :  { %v1913_v41 = vpop.f32.mrf.mxu1  ;;  %v2180_v4 = vadd.f32 %v2034_v39, %v1917_v55  ;;  %v6052_v39 = vrot.slane %v377_v0, %v2726_v20 }
 0x220   :  { %v2174_v49 = vpop.f32.mrf.mxu0  ;;  %v1921_v5 = vadd.f32 %v1913_v41, %v1658_v59 }
 0x221   :  { %v2103_v50 = vpop.f32.mrf.mxu1  ;;  %v2183_v17 = vadd.f32 %v2174_v49, %v1920_v62 }
 0x222   :  { %v2176_v56 = vpop.f32.mrf.mxu0  ;;  %v2181_v45 = vadd.f32 %v2103_v50, %v1918_v3 }
 0x223   :  { %v2105_v57 = vpop.f32.mrf.mxu1  ;;  %v2184_v7 = vadd.f32 %v2176_v56, %v1921_v5 }
 0x224   :  { %v2366_v63 = vpop.f32.mrf.mxu0  ;;  %v2182_v21 = vadd.f32 %v2105_v57, %v1919_v16 }
 0x225   :  { %v2295_v51 = vpop.f32.mrf.mxu1  ;;  %v2444_v27 = vadd.f32 %v2366_v63, %v2181_v45 }
 0x226   :  { %v2442_v6 = vadd.f32 %v2295_v51, %v2179_v61  ;;  %v2368_v9 = vpop.f32.mrf.mxu0 }
 0x227   :  { %v2297_v10 = vpop.f32.mrf.mxu1  ;;  %v2445_v35 = vadd.f32 %v2368_v9, %v2182_v21 }
 0x228   :  { %v2443_v18 = vadd.f32 %v2297_v10, %v2180_v4  ;;  %v2558_v43 = vpop.f32.mrf.mxu0  ;;  %v5501_v4 = vmov 0  }
 0x229   :  { %v6036_v12 = vadd.f32 %v2558_v43, %v2442_v6  ;;  %v2437_v13 = vpop.f32.mrf.mxu1  ;;  %5450 = vset.pattern.permute.xlu0 %v5501_v4  ;;  %5451 = vset.pattern.permute.xlu1 %v5501_v4  ;;  %v5368_v4 = vld [vmem:[%s6489_s4 + $0x8] sm:$0xff] }
 0x22a   :  { %v2446_v22 = vadd.f32 %v2437_v13, %v2183_v17  ;;  %v2560_v23 = vpop.f32.mrf.mxu0 }
 0x22b   :  { %v2742_v25 = vmul.f32 %v6034_v14, %v6036_v12  ;;  %v6042_v24 = vadd.f32 %v2560_v23, %v2443_v18  ;;  %v2439_v26 = vpop.f32.mrf.mxu1  ;;  %v2776_v18 = vld [vmem:[%s6487_s2] sm:$0xff] }
 0x22c   :  { %v2447_v28 = vadd.f32 %v2439_v26, %v2184_v7  ;;  %v2700_v29 = vpop.f32.mrf.mxu0 }
 0x22d   :  { %v2743_v31 = vmul.f32 %v6038_v19, %v6042_v24  ;;  %v2629_v33 = vpop.f32.mrf.mxu1  ;;  %v2709_v36 = vadd.f32 %v2700_v29, %v2446_v22  ;;  %v2757_v40 = vmul.f32 %v2742_v25, %v6036_v12 }
 0x22e   :  { %v2707_v37 = vadd.f32 %v2629_v33, %v2444_v27  ;;  %v2702_v38 = vpop.f32.mrf.mxu0 }
 0x22f   :  { %v2748_v41 = vadd.f32 %v2743_v31, %v2742_v25  ;;  %v2758_v42 = vmul.f32 %v2743_v31, %v6042_v24  ;;  %v2710_v44 = vadd.f32 %v2702_v38, %v2447_v28  ;;  %v2631_v46 = vpop.f32.mrf.mxu1  ;;  %v2746_v52 = vmul.f32 %v6048_v32, %v2709_v36 }
 0x230   :  { %v2744_v47 = vmul.f32 %v6044_v30, %v2707_v37  ;;  %v2708_v48 = vadd.f32 %v2631_v46, %v2445_v35 }
 0x231   :  { %v2763_v49 = vadd.f32 %v2758_v42, %v2757_v40  ;;  %v2747_v50 = vmul.f32 %v6050_v34, %v2710_v44  ;;  %v2761_v60 = vmul.f32 %v2746_v52, %v2709_v36 }
 0x232   :  { %v2749_v53 = vadd.f32 %v2748_v41, %v2744_v47  ;;  %v2759_v54 = vmul.f32 %v2744_v47, %v2707_v37  ;;  %v2745_v55 = vmul.f32 %v6052_v39, %v2708_v48 }
 0x233   :  { %v2762_v59 = vmul.f32 %v2747_v50, %v2710_v44  ;;  %v2753_v63 = vsel %vm2752_vm6, %v2747_v50, 0.0 }
 0x234   :  { %v2764_v56 = vadd.f32 %v2763_v49, %v2759_v54  ;;  %v2760_v57 = vmul.f32 %v2745_v55, %v2708_v48  ;;  %v2750_v58 = vadd.f32 %v2749_v53, %v2745_v55 }
 0x235   :  { %v2767_v2 = vsel %vm2752_vm6, %v2762_v59, 0.0 }
 0x236   :  { %v2751_v61 = vadd.f32 %v2750_v58, %v2746_v52  ;;  %v2765_v62 = vadd.f32 %v2764_v56, %v2760_v57 }
 0x238   :  { %v2754_v0 = vadd.f32 %v2753_v63, %v2751_v61  ;;  %v2766_v51 = vadd.f32 %v2765_v62, %v2761_v60 }
 0x23a   :  { %2755 = vadd.xlane.f32.xlu1 %v2754_v0  ;;  %v2768_v3 = vadd.f32 %v2767_v2, %v2766_v51 }
 0x23c   :  { %2769 = vadd.xlane.f32.xlu0 %v2768_v3 }
 0x2c3   :  { %v2756_v5 = vpop.xlane.xlu1 %2755 }
 0x2c4   :  { %v2771_v6 = vmul.f32 0.001953125, %v2756_v5 }
 0x2c5   :  { %v2770_v9 = vpop.xlane.xlu0 %2769 }
 0x2c6   :  { %v2773_v10 = vmul.f32 %v2771_v6, %v2771_v6  ;;  %v2772_v15 = vmul.f32 0.001953125, %v2770_v9 }
 0x2c8   :  { %v2774_v16 = vsub.f32 %v2772_v15, %v2773_v10 }
 0x2ca   :  { %v2775_v17 = vmax.f32 %v2774_v16, 0.0 }
 0x2cc   :  { %v2777_v45 = vadd.f32 1e-05, %v2775_v17 }
 0x2ce   :  { %5457 = vrsqrt.f32 %v2777_v45 }
 0x2db   :  { %v5458_v43 = vpop.eup %5457 }
 0x2dc   :  { %v2779_v13 = vmul.f32 %v5458_v43, %v2776_v18 }
 0x2de   :  { %2785 = vperm.xlu0 %5450, %v2779_v13   ;;  %v2781_v11 = vmul.f32 %v2779_v13, %v2771_v6 }
 0x2e0   :  { %v2782_v7 = vsub.f32 %v2780_v8, %v2781_v11 }
 0x2e2   :  { %2796 = vperm.xlu1 %5451, %v2782_v7  }
 0x2e6   :  { %2847 = vrot.lane.b32.xlu1 %v6031_v1, %s5496_s8 }
 0x2ea   :  { %3086 = vrot.lane.b32.xlu1 %v6031_v1, %s5464_s27 }
 0x2ee   :  { %3327 = vrot.lane.b32.xlu1 %v6031_v1, %s5497_s10 }
 0x2f2   :  { %3588 = vrot.lane.b32.xlu1 %v6031_v1, %s5495_s16 }
 0x359   :  { %v2786_v21 = vpop.permute.xlu0 %2785 }
 0x35a   :  { %v2788_v22 = vmul.f32 %v2786_v21, %v6036_v12  ;;  %v2789_v23 = vmul.f32 %v2786_v21, %v6042_v24  ;;  %v2790_v20 = vmul.f32 %v2786_v21, %v2707_v37  ;;  %v2791_v25 = vmul.f32 %v2786_v21, %v2708_v48 }
 0x35b   :  { %v2792_v26 = vmul.f32 %v2786_v21, %v2709_v36  ;;  %v2793_v27 = vmul.f32 %v2786_v21, %v2710_v44  ;;  %v2832_v21 = vld [vmem:[%s6489_s4] sm:$0xff] }
 0x35d   :  { %v2797_v28 = vpop.permute.xlu1 %2796 }
 0x35e   :  { %v2799_v29 = vadd.f32 %v2797_v28, %v2788_v22  ;;  %v2800_v31 = vadd.f32 %v2797_v28, %v2789_v23  ;;  %v2801_v33 = vadd.f32 %v2797_v28, %v2790_v20  ;;  %v2802_v35 = vadd.f32 %v2797_v28, %v2791_v25 }
 0x35f   :  { %v2803_v38 = vadd.f32 %v2797_v28, %v2792_v26  ;;  %v2804_v40 = vadd.f32 %v2797_v28, %v2793_v27 }
 0x360   :  { %v2805_v41 = vmul.f32 0.01, %v2799_v29  ;;  %v2806_v42 = vmul.f32 0.01, %v2800_v31  ;;  %v2807_v46 = vmul.f32 0.01, %v2801_v33 }
 0x361   :  { %v2808_v47 = vmul.f32 0.01, %v2802_v35  ;;  %v2809_v49 = vmul.f32 0.01, %v2803_v38  ;;  %v2810_v50 = vmul.f32 0.01, %v2804_v40  ;;  %v2848_v59 = vpop.permute.xlu1 %2847 }
 0x362   :  { %v2811_v12 = vmax.f32 %v2799_v29, %v2805_v41  ;;  %v2812_v52 = vmax.f32 %v2800_v31, %v2806_v42  ;;  %v2813_v24 = vmax.f32 %v2801_v33, %v2807_v46  ;;  %v5375_v31 = vld [vmem:[%s6489_s4 + $0x10] sm:$0xff] }
 0x363   :  { %v2814_v37 = vmax.f32 %v2802_v35, %v2808_v47  ;;  %v2815_v48 = vmax.f32 %v2803_v38, %v2809_v49  ;;  %v2816_v36 = vmax.f32 %v2804_v40, %v2810_v50 }
 0x364   :  { %v6079_v44 = vmul.f32 %v2811_v12, %v6034_v14  ;;  %v6082_v53 = vmul.f32 %v2812_v52, %v6038_v19  ;;  %v6085_v54 = vmul.f32 %v2813_v24, %v6044_v30  ;;  %v5379_v12 = vld [vmem:[%s6489_s4 + $0x18] sm:$0xff] }
 0x365   :  { %v6088_v55 = vmul.f32 %v2814_v37, %v6052_v39  ;;  %v6091_v56 = vmul.f32 %v2815_v48, %v6048_v32  ;;  %v2825_v57 = vmul.f32 %v2816_v36, %v6050_v34  ;;  %v3087_v60 = vpop.permute.xlu1 %3086 }
 0x366   :  { %3090 = vrot.lane.b32.xlu0 %v6082_v53, %s5464_s27  ;;  %2849 = vrot.lane.b32.xlu1 %v6079_v44, %s5496_s8 }
 0x367   :  { %2831 = vst.msk [vmem:[#allocation3 + $0x30] sm:$0xff] %vm2752_vm6, %v2825_v57 }
 0x369   :  { %v3328_v61 = vpop.permute.xlu1 %3327 }
 0x36a   :  { %3094 = vrot.lane.b32.xlu0 %v6088_v55, %s5464_s27  ;;  %2851 = vrot.lane.b32.xlu1 %v6082_v53, %s5496_s8 }
 0x36d   :  { %v6187_v62 = vpop.permute.xlu1 %3588 }
 0x36e   :  { %3329 = vrot.lane.b32.xlu0 %v6079_v44, %s5497_s10  ;;  %2853 = vrot.lane.b32.xlu1 %v6085_v54, %s5496_s8  ;;  %v6139_v58 = vld [vmem:[#allocation3 + $0x30] sm:$0xff] }
 0x372   :  { %3096 = vrot.lane.b32.xlu0 %v6091_v56, %s5464_s27  ;;  %2855 = vrot.lane.b32.xlu1 %v6088_v55, %s5496_s8 }
 0x376   :  { %3333 = vrot.lane.b32.xlu0 %v6085_v54, %s5497_s10  ;;  %2857 = vrot.lane.b32.xlu1 %v6091_v56, %s5496_s8 }
 0x37a   :  { %3337 = vrot.lane.b32.xlu0 %v6091_v56, %s5497_s10  ;;  %3088 = vrot.lane.b32.xlu1 %v6079_v44, %s5464_s27 }
 0x37e   :  { %3592 = vrot.lane.b32.xlu0 %v6082_v53, %s5495_s16  ;;  %3092 = vrot.lane.b32.xlu1 %v6085_v54, %s5464_s27 }
 0x382   :  { %3596 = vrot.lane.b32.xlu0 %v6088_v55, %s5495_s16  ;;  %3331 = vrot.lane.b32.xlu1 %v6082_v53, %s5497_s10 }
 0x386   :  { %3598 = vrot.lane.b32.xlu0 %v6091_v56, %s5495_s16  ;;  %3335 = vrot.lane.b32.xlu1 %v6088_v55, %s5497_s10 }
 0x38a   :  { %4064 = vrot.lane.b32.xlu0 %v6082_v53, %s5498_s15  ;;  %3590 = vrot.lane.b32.xlu1 %v6079_v44, %s5495_s16 }
 0x38e   :  { %4068 = vrot.lane.b32.xlu0 %v6088_v55, %s5498_s15  ;;  %3594 = vrot.lane.b32.xlu1 %v6085_v54, %s5495_s16 }
 0x392   :  { %4062 = vrot.lane.b32.xlu0 %v6079_v44, %s5498_s15  ;;  %3600 = vrot.lane.b32.xlu1 %v6139_v58, %s5495_s16 }
 0x396   :  { %4313 = vrot.lane.b32.xlu0 %v6085_v54, %s5491_s30  ;;  %4066 = vrot.lane.b32.xlu1 %v6085_v54, %s5498_s15 }
 0x39a   :  { %4309 = vrot.lane.b32.xlu0 %v6079_v44, %s5491_s30  ;;  %4070 = vrot.lane.b32.xlu1 %v6091_v56, %s5498_s15 }
 0x39e   :  { %4317 = vrot.lane.b32.xlu0 %v6091_v56, %s5491_s30  ;;  %4311 = vrot.lane.b32.xlu1 %v6082_v53, %s5491_s30 }
 0x3a2   :  { %4558 = vrot.lane.b32.xlu0 %v6082_v53, %s5499_s25  ;;  %4072 = vrot.lane.b32.xlu1 %v6139_v58, %s5498_s15 }
 0x3a6   :  { %4562 = vrot.lane.b32.xlu0 %v6088_v55, %s5499_s25  ;;  %4315 = vrot.lane.b32.xlu1 %v6088_v55, %s5491_s30 }
 0x3aa   :  { %4556 = vrot.lane.b32.xlu0 %v6079_v44, %s5499_s25  ;;  %4319 = vrot.lane.b32.xlu1 %v6139_v58, %s5491_s30 }
 0x3ae   :  { %4807 = vrot.lane.b32.xlu0 %v6085_v54, %s5490_s20  ;;  %4560 = vrot.lane.b32.xlu1 %v6085_v54, %s5499_s25 }
 0x3b2   :  { %4803 = vrot.lane.b32.xlu0 %v6079_v44, %s5490_s20  ;;  %4564 = vrot.lane.b32.xlu1 %v6091_v56, %s5499_s25 }
 0x3b6   :  { %4811 = vrot.lane.b32.xlu0 %v6091_v56, %s5490_s20  ;;  %4805 = vrot.lane.b32.xlu1 %v6082_v53, %s5490_s20 }
 0x3ba   :  { %4566 = vrot.lane.b32.xlu1 %v6139_v58, %s5499_s25 }
 0x3be   :  { %4809 = vrot.lane.b32.xlu1 %v6088_v55, %s5490_s20 }
 0x3c2   :  { %4813 = vrot.lane.b32.xlu1 %v6139_v58, %s5490_s20 }
 0x3d8   :  { %v3091_v63 = vpop.permute.xlu0 %3090  ;;  %v2850_v0 = vpop.permute.xlu1 %2849 }
 0x3d9   :  { %v2859_v5 = vsel %vm402_vm10, %v2848_v59, %v2850_v0 }
 0x3dc   :  { %v3095_v51 = vpop.permute.xlu0 %3094  ;;  %v2852_v2 = vpop.permute.xlu1 %2851 }
 0x3dd   :  { %v2860_v3 = vsel %vm402_vm10, %v2850_v0, %v2852_v2 }
 0x3de   :  { %2903 = vmatprep.subr.mxu1 %v2860_v3 }
 0x3df   :  { %2904 = vmatpush1.msra.mxu1 %v2859_v5  ;;  %v5391_v5 = vld [vmem:[%s6489_s4 + $0x30] sm:$0xff] }
 0x3e0   :  { %v3330_v6 = vpop.permute.xlu0 %3329  ;;  %v2854_v9 = vpop.permute.xlu1 %2853  ;;  %5369 = vmatmul.mubr.msk.f32.vlgmr.msra.gmra.mxu1 %vm2752_vm6, %v5368_v4 }
 0x3e1   :  { %3079 = vmatprep.mubr.f32.mxu1 %v6031_v1  ;;  %v2861_v17 = vsel %vm402_vm10, %v2852_v2, %v2854_v9  ;;  %v3339_v33 = vsel %vm906_vm13, %v3328_v61, %v3330_v6 }
 0x3e4   :  { %v3097_v10 = vpop.permute.xlu0 %3096  ;;  %v2856_v15 = vpop.permute.xlu1 %2855 }
 0x3e5   :  { %v2862_v16 = vsel %vm402_vm10, %v2854_v9, %v2856_v15  ;;  %v3102_v22 = vsel %vm649_vm12, %v3095_v51, %v3097_v10 }
 0x3e6   :  { %2974 = vmatprep.subr.mxu0 %v2862_v16 }
 0x3e7   :  { %2975 = vmatpush1.msra.mxu0 %v2861_v17 }
 0x3e8   :  { %v3334_v45 = vpop.permute.xlu0 %3333  ;;  %v2858_v18 = vpop.permute.xlu1 %2857  ;;  %5370 = vmatmul.mubr.msk.f32.vlgmr.msra.gmra.mxu0 %vm2752_vm6, %v5368_v4 }
 0x3e9   :  { %v2863_v43 = vsel %vm402_vm10, %v2856_v15, %v2858_v18  ;;  %3045 = vmatprep.subr.mxu1 %v2858_v18  ;;  %3176 = vmatprep.mubr.f32.mxu0 %v6031_v1  ;;  %vm6508_vm10 = vcmask 1039360  }
 0x3ea   :  { %3046 = vmatpush1.msra.mxu1 %v2863_v43  ;;  %vm6514_vm8 = vmmov %vm6508_vm10 }
 0x3eb   :  { %5371 = vmatmul.mubr.msk.f32.vlgmr.msra.gmra.mxu1 %vm2752_vm6, %v5368_v4 }
 0x3ec   :  { %v3338_v13 = vpop.permute.xlu0 %3337  ;;  %v3089_v8 = vpop.permute.xlu1 %3088  ;;  %3247 = vmatprep.mubr.f32.mxu1 %v6031_v1 }
 0x3ed   :  { %v3098_v11 = vsel %vm649_vm12, %v3087_v60, %v3089_v8  ;;  %v3099_v7 = vsel %vm649_vm12, %v3089_v8, %v3091_v63  ;;  %v5383_v60 = vld [vmem:[%s6489_s4 + $0x20] sm:$0xff] }
 0x3ee   :  { %3142 = vmatprep.subr.mxu0 %v3099_v7  ;;  %v5395_v7 = vld [vmem:[%s6489_s4 + $0x38] sm:$0xff] }
 0x3ef   :  { %3143 = vmatpush1.msra.mxu0 %v3098_v11 }
 0x3f0   :  { %v3593_v23 = vpop.permute.xlu0 %3592  ;;  %3284 = vmatprep.subr.mxu0 %v3097_v10  ;;  %v3093_v20 = vpop.permute.xlu1 %3092  ;;  %5372 = vmatmul.mubr.msk.f32.vlgmr.msra.gmra.mxu0 %vm2752_vm6, %v2832_v21 }
 0x3f1   :  { %v3100_v25 = vsel %vm649_vm12, %v3091_v63, %v3093_v20  ;;  %3285 = vmatpush1.msra.mxu0 %v3102_v22  ;;  %v3101_v26 = vsel %vm649_vm12, %v3093_v20, %v3095_v51  ;;  %3318 = vmatprep.mubr.f32.mxu0 %v6031_v1  ;;  %vm6509_vm12 = vmmov %vm6508_vm10 }
 0x3f2   :  { %3213 = vmatprep.subr.mxu1 %v3101_v26 }
 0x3f3   :  { %3214 = vmatpush1.msra.mxu1 %v3100_v25 }
 0x3f4   :  { %v3597_v27 = vpop.permute.xlu0 %3596  ;;  %v3332_v28 = vpop.permute.xlu1 %3331  ;;  %5373 = vmatmul.mubr.msk.f32.vlgmr.msra.gmra.mxu1 %vm2752_vm6, %v2832_v21  ;;  %5374 = vmatmul.mubr.msk.f32.vlgmr.msra.gmra.mxu0 %vm2752_vm6, %v2832_v21 }
 0x3f5   :  { %v3340_v29 = vsel %vm906_vm13, %v3330_v6, %v3332_v28  ;;  %3417 = vmatprep.mubr.f32.mxu1 %v6031_v1  ;;  %3488 = vmatprep.mubr.f32.mxu0 %v6031_v1  ;;  %v3341_v42 = vsel %vm906_vm13, %v3332_v28, %v3334_v45 }
 0x3f6   :  { %3383 = vmatprep.subr.mxu1 %v3340_v29 }
 0x3f7   :  { %3384 = vmatpush1.msra.mxu1 %v3339_v33 }
 0x3f8   :  { %v3599_v35 = vpop.permute.xlu0 %3598  ;;  %3525 = vmatprep.subr.mxu1 %v3338_v13  ;;  %v3336_v38 = vpop.permute.xlu1 %3335  ;;  %5376 = vmatmul.mubr.msk.f32.vlgmr.msra.gmra.mxu1 %vm2752_vm6, %v5375_v31 }
 0x3f9   :  { %v3343_v40 = vsel %vm906_vm13, %v3336_v38, %v3338_v13  ;;  %v3342_v41 = vsel %vm906_vm13, %v3334_v45, %v3336_v38  ;;  %3559 = vmatprep.mubr.f32.mxu1 %v6031_v1  ;;  %v3606_v61 = vsel %vm1173_vm14, %v3597_v27, %v3599_v35  ;;  %vm6510_vm13 = vmmov %vm6508_vm10 }
 0x3fa   :  { %3454 = vmatprep.subr.mxu0 %v3342_v41  ;;  %3526 = vmatpush1.msra.mxu1 %v3343_v40 }
 0x3fb   :  { %3455 = vmatpush1.msra.mxu0 %v3341_v42 }
 0x3fc   :  { %v4065_v46 = vpop.permute.xlu0 %4064  ;;  %v3591_v47 = vpop.permute.xlu1 %3590  ;;  %5377 = vmatmul.mubr.msk.f32.vlgmr.msra.gmra.mxu0 %vm2752_vm6, %v5375_v31  ;;  %5378 = vmatmul.mubr.msk.f32.vlgmr.msra.gmra.mxu1 %vm2752_vm6, %v5375_v31  ;;  %v5399_v31 = vld [vmem:[%s6489_s4 + $0x40] sm:$0xff] }
 0x3fd   :  { %v3602_v49 = vsel %vm1173_vm14, %v6187_v62, %v3591_v47  ;;  %v3603_v50 = vsel %vm1173_vm14, %v3591_v47, %v3593_v23  ;;  %3681 = vmatprep.mubr.f32.mxu0 %v6031_v1  ;;  %3752 = vmatprep.mubr.f32.mxu1 %v6031_v1 }
 0x3fe   :  { %3647 = vmatprep.subr.mxu0 %v3603_v50 }
 0x3ff   :  { %3648 = vmatpush1.msra.mxu0 %v3602_v49 }
 0x400   :  { %v4069_v52 = vpop.permute.xlu0 %4068  ;;  %v3595_v24 = vpop.permute.xlu1 %3594  ;;  %5380 = vmatmul.mubr.msk.f32.vlgmr.msra.gmra.mxu0 %vm2752_vm6, %v5379_v12 }
 0x401   :  { %v3604_v37 = vsel %vm1173_vm14, %v3593_v23, %v3595_v24  ;;  %v3605_v48 = vsel %vm1173_vm14, %v3595_v24, %v3597_v27  ;;  %3823 = vmatprep.mubr.f32.mxu0 %v6031_v1 }
 0x402   :  { %3718 = vmatprep.subr.mxu1 %v3605_v48 }
 0x403   :  { %3719 = vmatpush1.msra.mxu1 %v3604_v37 }
 0x404   :  { %v4063_v36 = vpop.permute.xlu0 %4062  ;;  %5381 = vmatmul.mubr.msk.f32.vlgmr.msra.gmra.mxu1 %vm2752_vm6, %v5379_v12  ;;  %3871 = vmatprep.subr.mxu1 %v6082_v53  ;;  %v3601_v57 = vpop.permute.xlu1 %3600 }
 0x405   :  { %3872 = vmatpush1.msra.mxu1 %v6079_v44  ;;  %v3607_v59 = vsel %vm1173_vm14, %v3599_v35, %v3601_v57  ;;  %3905 = vmatprep.mubr.f32.mxu1 %v6031_v1  ;;  %vm6511_vm14 = vmmov %vm6508_vm10 }
 0x406   :  { %3789 = vmatprep.subr.mxu0 %v3607_v59  ;;  %4013 = vmatprep.subr.mxu1 %v6139_v58  ;;  %v4074_v58 = vsel %vm6509_vm12, %v4063_v36, %v4065_v46  ;;  %vm6524_vm12 = vmmov %vm6519_vm2 }
 0x407   :  { %3790 = vmatpush1.msra.mxu0 %v3606_v61 }
 0x408   :  { %v4314_v62 = vpop.permute.xlu0 %4313  ;;  %5382 = vmatmul.mubr.msk.f32.vlgmr.msra.gmra.mxu0 %vm2752_vm6, %v5379_v12  ;;  %5384 = vmatmul.mubr.msk.f32.vlgmr.msra.gmra.mxu1 %vm2752_vm6, %v5383_v60  ;;  %v4067_v44 = vpop.permute.xlu1 %4066 }
 0x409   :  { %3942 = vmatprep.subr.mxu0 %v6088_v55  ;;  %4014 = vmatpush1.msra.mxu1 %v6091_v56  ;;  %v4075_v53 = vsel %vm6508_vm10, %v4065_v46, %v4067_v44  ;;  %v4076_v56 = vsel %vm6511_vm14, %v4067_v44, %v4069_v52  ;;  %vm6523_vm10 = vmmov %vm6522_vm15 }
 0x40a   :  { %3943 = vmatpush1.msra.mxu0 %v6085_v54  ;;  %3976 = vmatprep.mubr.f32.mxu0 %v6031_v1  ;;  %v5387_v54 = vld [vmem:[%s6489_s4 + $0x28] sm:$0xff]  ;;  %vm6526_vm14 = vmmov %vm6523_vm10 }
 0x40b   :  { %4118 = vmatprep.subr.mxu0 %v4075_v53  ;;  %4047 = vmatprep.mubr.f32.mxu1 %v6031_v1 }
 0x40c   :  { %v4310_v63 = vpop.permute.xlu0 %4309  ;;  %5385 = vmatmul.mubr.msk.f32.vlgmr.msra.gmra.mxu0 %vm2752_vm6, %v5383_v60  ;;  %5386 = vmatmul.mubr.msk.f32.vlgmr.msra.gmra.mxu1 %vm2752_vm6, %v5383_v60  ;;  %v4071_v0 = vpop.permute.xlu1 %4070 }
 0x40d   :  { %4119 = vmatpush1.msra.mxu0 %v4074_v58  ;;  %v4077_v55 = vsel %vm6510_vm13, %v4069_v52, %v4071_v0  ;;  %4152 = vmatprep.mubr.f32.mxu0 %v6031_v1  ;;  %vm6525_vm13 = vmmov %vm6523_vm10 }
 0x40e   :  { %4189 = vmatprep.subr.mxu1 %v4077_v55  ;;  %4223 = vmatprep.mubr.f32.mxu1 %v6031_v1 }
 0x40f   :  { %4190 = vmatpush1.msra.mxu1 %v4076_v56 }
 0x410   :  { %v4318_v51 = vpop.permute.xlu0 %4317  ;;  %5388 = vmatmul.mubr.msk.f32.vlgmr.msra.gmra.mxu0 %vm2752_vm6, %v5387_v54  ;;  %5389 = vmatmul.mubr.msk.f32.vlgmr.msra.gmra.mxu1 %vm2752_vm6, %v5387_v54  ;;  %v4312_v2 = vpop.permute.xlu1 %4311 }
 0x411   :  { %v4321_v3 = vsel %vm6512_vm7, %v4310_v63, %v4312_v2  ;;  %v4322_v4 = vsel %vm6513_vm0, %v4312_v2, %v4314_v62  ;;  %4399 = vmatprep.mubr.f32.mxu1 %v6031_v1  ;;  %4294 = vmatprep.mubr.f32.mxu0 %v6031_v1  ;;  %vm6527_vm7 = vmmov %vm6523_vm10  ;;  %vm5127_vm0 = vcmask 261248  }
 0x412   :  { %4365 = vmatprep.subr.mxu1 %v4322_v4 }
 0x413   :  { %4366 = vmatpush1.msra.mxu1 %v4321_v3 }
 0x414   :  { %v4559_v6 = vpop.permute.xlu0 %4558  ;;  %5392 = vmatmul.mubr.msk.f32.vlgmr.msra.gmra.mxu1 %vm2752_vm6, %v5391_v5  ;;  %v4073_v9 = vpop.permute.xlu1 %4072 }
 0x415   :  { %v4078_v10 = vsel %vm6514_vm8, %v4071_v0, %v4073_v9  ;;  %4260 = vmatprep.subr.mxu0 %v4073_v9  ;;  %4541 = vmatprep.mubr.f32.mxu1 %v6031_v1  ;;  %vm5132_vm8 = vcmask 392448  }
 0x416   :  { %4261 = vmatpush1.msra.mxu0 %v4078_v10 }
 0x417   :  { %5390 = vmatmul.mubr.msk.f32.vlgmr.msra.gmra.mxu0 %vm2752_vm6, %v5387_v54 }
 0x418   :  { %v4563_v15 = vpop.permute.xlu0 %4562  ;;  %v4316_v16 = vpop.permute.xlu1 %4315  ;;  %4470 = vmatprep.mubr.f32.mxu0 %v6031_v1 }
 0x419   :  { %v4323_v17 = vsel %vm6515_vm9, %v4314_v62, %v4316_v16  ;;  %v4324_v45 = vsel %vm6516_vm1, %v4316_v16, %v4318_v51  ;;  %vm5137_vm9 = vcmask 523648   ;;  %vm5246_vm1 = vcmask 187392  }
 0x41a   :  { %4436 = vmatprep.subr.mxu0 %v4324_v45 }
 0x41b   :  { %4437 = vmatpush1.msra.mxu0 %v4323_v17 }
 0x41c   :  { %v4557_v18 = vpop.permute.xlu0 %4556  ;;  %5393 = vmatmul.mubr.msk.f32.vlgmr.msra.gmra.mxu0 %vm2752_vm6, %v5391_v5  ;;  %v4320_v43 = vpop.permute.xlu1 %4319 }
 0x41d   :  { %v4325_v13 = vsel %vm6517_vm4, %v4318_v51, %v4320_v43  ;;  %4507 = vmatprep.subr.mxu1 %v4320_v43  ;;  %4646 = vmatprep.mubr.f32.mxu0 %v6031_v1  ;;  %v4568_v21 = vsel %vm6519_vm2, %v4557_v18, %v4559_v6  ;;  %vm6537_vm4 = vcmask 302080   ;;  %vm5189_vm2 = vcmask 678912  }
 0x41e   :  { %4508 = vmatpush1.msra.mxu1 %v4325_v13 }
 0x41f   :  { %5394 = vmatmul.mubr.msk.f32.vlgmr.msra.gmra.mxu1 %vm2752_vm6, %v5391_v5 }
 0x420   :  { %v4561_v8 = vpop.permute.xlu1 %4560  ;;  %4717 = vmatprep.mubr.f32.mxu1 %v6031_v1  ;;  %v4808_v22 = vpop.permute.xlu0 %4807 }
 0x421   :  { %v4569_v11 = vsel %vm6518_vm11, %v4559_v6, %v4561_v8  ;;  %v4570_v25 = vsel %vm6521_vm5, %v4561_v8, %v4563_v15  ;;  %vm5142_vm11 = vcmask 654848   ;;  %vm5154_vm5 = vcmask 793600  }
 0x422   :  { %4612 = vmatprep.subr.mxu0 %v4569_v11 }
 0x423   :  { %4613 = vmatpush1.msra.mxu0 %v4568_v21 }
 0x424   :  { %5396 = vmatmul.mubr.msk.f32.vlgmr.msra.gmra.mxu0 %vm2752_vm6, %v5395_v7  ;;  %v4565_v23 = vpop.permute.xlu1 %4564  ;;  %v4804_v26 = vpop.permute.xlu0 %4803 }
 0x425   :  { %v4571_v20 = vsel %vm6520_vm3, %v4563_v15, %v4565_v23  ;;  %4788 = vmatprep.mubr.f32.mxu0 %v6031_v1  ;;  %vm5147_vm3 = vcmask 786048  }
 0x426   :  { %4683 = vmatprep.subr.mxu1 %v4571_v20 }
 0x427   :  { %4684 = vmatpush1.msra.mxu1 %v4570_v25 }
 0x428   :  { %5397 = vmatmul.mubr.msk.f32.vlgmr.msra.gmra.mxu1 %vm2752_vm6, %v5395_v7  ;;  %v4806_v27 = vpop.permute.xlu1 %4805  ;;  %v4812_v38 = vpop.permute.xlu0 %4811 }
 0x429   :  { %v4815_v28 = vsel %vm6522_vm15, %v4804_v26, %v4806_v27  ;;  %v4816_v29 = vsel %vm6523_vm10, %v4806_v27, %v4808_v22  ;;  %4893 = vmatprep.mubr.f32.mxu1 %v6031_v1  ;;  %vm5157_vm15 = vcmask 917248   ;;  %vm5162_vm10 = vcmask 1048448  }
 0x42a   :  { %4859 = vmatprep.subr.mxu1 %v4816_v29 }
 0x42b   :  { %4860 = vmatpush1.msra.mxu1 %v4815_v28 }
 0x42c   :  { %5400 = vmatmul.mubr.msk.f32.vlgmr.msra.gmra.mxu1 %vm2752_vm6, %v5399_v31  ;;  %v4567_v33 = vpop.permute.xlu1 %4566 }
 0x42d   :  { %v4572_v35 = vsel %vm6524_vm12, %v4565_v23, %v4567_v33  ;;  %4754 = vmatprep.subr.mxu0 %v4567_v33  ;;  %5035 = vmatprep.mubr.f32.mxu1 %v6031_v1 }
 0x42e   :  { %4755 = vmatpush1.msra.mxu0 %v4572_v35 }
 0x42f   :  { %5398 = vmatmul.mubr.msk.f32.vlgmr.msra.gmra.mxu0 %vm2752_vm6, %v5395_v7 }
 0x430   :  { %v4810_v40 = vpop.permute.xlu1 %4809  ;;  %4964 = vmatprep.mubr.f32.mxu0 %v6031_v1 }
 0x431   :  { %v4817_v41 = vsel %vm6525_vm13, %v4808_v22, %v4810_v40  ;;  %v4818_v42 = vsel %vm6526_vm14, %v4810_v40, %v4812_v38 }
 0x432   :  { %4930 = vmatprep.subr.mxu0 %v4818_v42 }
 0x433   :  { %4931 = vmatpush1.msra.mxu0 %v4817_v41 }
 0x434   :  { %5401 = vmatmul.mubr.msk.f32.vlgmr.msra.gmra.mxu0 %vm2752_vm6, %v5399_v31  ;;  %v4814_v46 = vpop.permute.xlu1 %4813 }
 0x435   :  { %v4819_v47 = vsel %vm6527_vm7, %v4812_v38, %v4814_v46  ;;  %5001 = vmatprep.subr.mxu1 %v4814_v46 }
 0x436   :  { %5002 = vmatpush1.msra.mxu1 %v4819_v47 }
 0x437   :  { %5402 = vmatmul.mubr.msk.f32.vlgmr.msra.gmra.mxu1 %vm2752_vm6, %v5399_v31 }
 0x4a0   :  { %v2939_v49 = vpop.f32.mrf.mxu1 }
 0x4a2   :  { %v2941_v50 = vpop.f32.mrf.mxu1 }
 0x4a8   :  { %v3010_v12 = vpop.f32.mrf.mxu0 }
 0x4aa   :  { %v3012_v1 = vpop.f32.mrf.mxu0 }
 0x4ab   :  { %v3081_v52 = vpop.f32.mrf.mxu1 }
 0x4ad   :  { %v3083_v24 = vpop.f32.mrf.mxu1 }
 0x4b0   :  { %v3178_v37 = vpop.f32.mrf.mxu0 }
 0x4b1   :  { %v3179_v8 = vadd.f32 %v3178_v37, %v2939_v49 }
 0x4b2   :  { %v3180_v48 = vpop.f32.mrf.mxu0 }
 0x4b3   :  { %v3181_v11 = vadd.f32 %v3180_v48, %v2941_v50 }
 0x4b4   :  { %v3249_v36 = vpop.f32.mrf.mxu1  ;;  %v3320_v57 = vpop.f32.mrf.mxu0 }
 0x4b5   :  { %v3250_v25 = vadd.f32 %v3249_v36, %v3010_v12  ;;  %v3321_v31 = vadd.f32 %v3320_v57, %v3081_v52 }
 0x4b6   :  { %v3251_v59 = vpop.f32.mrf.mxu1  ;;  %v3322_v61 = vpop.f32.mrf.mxu0 }
 0x4b7   :  { %v3252_v27 = vadd.f32 %v3251_v59, %v3012_v1  ;;  %v3323_v50 = vadd.f32 %v3322_v61, %v3083_v24 }
 0x4b8   :  { %v3419_v60 = vpop.f32.mrf.mxu1 }
 0x4b9   :  { %v3566_v22 = vadd.f32 %v3419_v60, %v3179_v8 }
 0x4ba   :  { %v3421_v62 = vpop.f32.mrf.mxu1 }
 0x4bb   :  { %v3567_v23 = vadd.f32 %v3421_v62, %v3181_v11 }
 0x4bc   :  { %v3490_v44 = vpop.f32.mrf.mxu0  ;;  %v3561_v53 = vpop.f32.mrf.mxu1 }
 0x4bd   :  { %v3568_v38 = vadd.f32 %v3490_v44, %v3250_v25  ;;  %v3570_v37 = vadd.f32 %v3561_v53, %v3321_v31 }
 0x4be   :  { %v3492_v58 = vpop.f32.mrf.mxu0  ;;  %v3563_v63 = vpop.f32.mrf.mxu1 }
 0x4bf   :  { %v3569_v46 = vadd.f32 %v3492_v58, %v3252_v27 }
 0x4c0   :  { %v3683_v0 = vpop.f32.mrf.mxu0 }
 0x4c1   :  { %v3830_v28 = vadd.f32 %v3683_v0, %v3566_v22 }
 0x4c2   :  { %v3685_v54 = vpop.f32.mrf.mxu0 }
 0x4c3   :  { %v3831_v29 = vadd.f32 %v3685_v54, %v3567_v23  ;;  %v3571_v54 = vadd.f32 %v3563_v63, %v3323_v50 }
 0x4c4   :  { %v3754_v55 = vpop.f32.mrf.mxu1 }
 0x4c5   :  { %v3832_v62 = vadd.f32 %v3754_v55, %v3568_v38 }
 0x4c6   :  { %v3756_v56 = vpop.f32.mrf.mxu1 }
 0x4c7   :  { %v3833_v59 = vadd.f32 %v3756_v56, %v3569_v46 }
 0x4c8   :  { %v3825_v51 = vpop.f32.mrf.mxu0  ;;  %v3907_v2 = vpop.f32.mrf.mxu1 }
 0x4c9   :  { %v4054_v40 = vadd.f32 %v3907_v2, %v3830_v28  ;;  %v3834_v44 = vadd.f32 %v3825_v51, %v3570_v37 }
 0x4ca   :  { %v3827_v3 = vpop.f32.mrf.mxu0  ;;  %v3909_v4 = vpop.f32.mrf.mxu1 }
 0x4cb   :  { %v4055_v41 = vadd.f32 %v3909_v4, %v3831_v29  ;;  %v3835_v61 = vadd.f32 %v3827_v3, %v3571_v54 }
 0x4cc   :  { %v3978_v5 = vpop.f32.mrf.mxu0  ;;  %v4049_v6 = vpop.f32.mrf.mxu1 }
 0x4cd   :  { %v4056_v0 = vadd.f32 %v3978_v5, %v3832_v62  ;;  %v4058_v53 = vadd.f32 %v4049_v6, %v3834_v44 }
 0x4ce   :  { %v3980_v9 = vpop.f32.mrf.mxu0  ;;  %v4051_v10 = vpop.f32.mrf.mxu1 }
 0x4cf   :  { %v4057_v4 = vadd.f32 %v3980_v9, %v3833_v59 }
 0x4d0   :  { %v4154_v15 = vpop.f32.mrf.mxu0  ;;  %v4225_v16 = vpop.f32.mrf.mxu1 }
 0x4d1   :  { %v4301_v47 = vadd.f32 %v4154_v15, %v4054_v40  ;;  %v4303_v8 = vadd.f32 %v4225_v16, %v4056_v0 }
 0x4d2   :  { %v4156_v17 = vpop.f32.mrf.mxu0  ;;  %v4227_v45 = vpop.f32.mrf.mxu1 }
 0x4d3   :  { %v4302_v49 = vadd.f32 %v4156_v17, %v4055_v41  ;;  %v4304_v55 = vadd.f32 %v4227_v45, %v4057_v4 }
 0x4d4   :  { %v4401_v43 = vpop.f32.mrf.mxu1 }
 0x4d5   :  { %v4548_v12 = vadd.f32 %v4401_v43, %v4301_v47  ;;  %v4059_v43 = vadd.f32 %v4051_v10, %v3835_v61 }
 0x4d6   :  { %v4403_v7 = vpop.f32.mrf.mxu1 }
 0x4d7   :  { %v4296_v18 = vpop.f32.mrf.mxu0  ;;  %v4549_v36 = vadd.f32 %v4403_v7, %v4302_v49 }
 0x4d8   :  { %v4305_v11 = vadd.f32 %v4296_v18, %v4058_v53 }
 0x4d9   :  { %v4298_v13 = vpop.f32.mrf.mxu0 }
 0x4da   :  { %v4306_v16 = vadd.f32 %v4298_v13, %v4059_v43 }
 0x4dc   :  { %v4472_v21 = vpop.f32.mrf.mxu0 }
 0x4dd   :  { %v4550_v17 = vadd.f32 %v4472_v21, %v4303_v8 }
 0x4de   :  { %v4474_v26 = vpop.f32.mrf.mxu0 }
 0x4df   :  { %v4543_v20 = vpop.f32.mrf.mxu1  ;;  %v4551_v63 = vadd.f32 %v4474_v26, %v4304_v55 }
 0x4e0   :  { %v4552_v7 = vadd.f32 %v4543_v20, %v4305_v11 }
 0x4e1   :  { %v4545_v33 = vpop.f32.mrf.mxu1 }
 0x4e2   :  { %v4553_v45 = vadd.f32 %v4545_v33, %v4306_v16 }
 0x4e4   :  { %v4648_v35 = vpop.f32.mrf.mxu0 }
 0x4e5   :  { %v4795_v52 = vadd.f32 %v4648_v35, %v4548_v12 }
 0x4e6   :  { %v4650_v48 = vpop.f32.mrf.mxu0 }
 0x4e7   :  { %v4796_v57 = vadd.f32 %v4650_v48, %v4549_v36 }
 0x4e8   :  { %v4719_v42 = vpop.f32.mrf.mxu1 }
 0x4e9   :  { %v4797_v51 = vadd.f32 %v4719_v42, %v4550_v17 }
 0x4ea   :  { %v4721_v60 = vpop.f32.mrf.mxu1 }
 0x4eb   :  { %v4798_v23 = vadd.f32 %v4721_v60, %v4551_v63 }
 0x4ec   :  { %v4895_v1 = vpop.f32.mrf.mxu1 }
 0x4ed   :  { %v6316_v58 = vadd.f32 %v4895_v1, %v4795_v52 }
 0x4ee   :  { %v4897_v2 = vpop.f32.mrf.mxu1 }
 0x4ef   :  { %v6318_v15 = vadd.f32 %v4897_v2, %v4796_v57  ;;  %v4790_v24 = vpop.f32.mrf.mxu0  ;;  %v5048_v9 = vmul.f32 %v6316_v58, %v6034_v14  ;;  %v5081_v57 = vld [vmem:[%s6490_s5] sm:$0xff]  ;;  %s6528_s5 = smov 35  }
 0x4f0   :  { %v4799_v21 = vadd.f32 %v4790_v24, %v4552_v7  ;;  %v5085_v2 = vld [vmem:[%s6491_s6] sm:$0xff]  ;;  %s5502_s6 = smov 85  }
 0x4f1   :  { %v5049_v56 = vmul.f32 %v6318_v15, %v6038_v19  ;;  %v4792_v5 = vpop.f32.mrf.mxu0  ;;  %v5062_v19 = vmul.f32 %v5048_v9, %v6316_v58 }
 0x4f2   :  { %v4800_v28 = vadd.f32 %v4792_v5, %v4553_v45 }
 0x4f3   :  { %v5063_v3 = vmul.f32 %v5049_v56, %v6318_v15  ;;  %v5054_v27 = vadd.f32 %v5049_v56, %v5048_v9 }
 0x4f4   :  { %v4966_v22 = vpop.f32.mrf.mxu0 }
 0x4f5   :  { %v5044_v6 = vadd.f32 %v4966_v22, %v4797_v51  ;;  %v5068_v14 = vadd.f32 %v5063_v3, %v5062_v19 }
 0x4f6   :  { %v4968_v25 = vpop.f32.mrf.mxu0 }
 0x4f7   :  { %v5050_v10 = vmul.f32 %v5044_v6, %v6044_v30  ;;  %v5045_v18 = vadd.f32 %v4968_v25, %v4798_v23  ;;  %v5037_v26 = vpop.f32.mrf.mxu1 }
 0x4f8   :  { %v5046_v29 = vadd.f32 %v5037_v26, %v4799_v21 }
 0x4f9   :  { %v5055_v13 = vadd.f32 %v5054_v27, %v5050_v10  ;;  %v5064_v20 = vmul.f32 %v5050_v10, %v5044_v6  ;;  %v5051_v31 = vmul.f32 %v5045_v18, %v6052_v39  ;;  %v5039_v35 = vpop.f32.mrf.mxu1 }
 0x4fa   :  { %v5052_v38 = vmul.f32 %v5046_v29, %v6048_v32  ;;  %v5047_v33 = vadd.f32 %v5039_v35, %v4800_v28 }
 0x4fb   :  { %v5069_v40 = vadd.f32 %v5068_v14, %v5064_v20  ;;  %v5056_v41 = vadd.f32 %v5055_v13, %v5051_v31  ;;  %v5065_v42 = vmul.f32 %v5051_v31, %v5045_v18 }
 0x4fc   :  { %v5066_v46 = vmul.f32 %v5052_v38, %v5046_v29  ;;  %v5053_v47 = vmul.f32 %v5047_v33, %v6050_v34 }
 0x4fd   :  { %v5070_v30 = vadd.f32 %v5069_v40, %v5065_v42  ;;  %v5057_v49 = vadd.f32 %v5056_v41, %v5052_v38 }
 0x4fe   :  { %v5058_v50 = vsel %vm2752_vm6, %v5053_v47, 0.0  ;;  %v5067_v37 = vmul.f32 %v5053_v47, %v5047_v33 }
 0x4ff   :  { %v5059_v48 = vadd.f32 %v5058_v50, %v5057_v49  ;;  %v5071_v60 = vadd.f32 %v5070_v30, %v5066_v46 }
 0x500   :  { %v5072_v62 = vsel %vm2752_vm6, %v5067_v37, 0.0  ;;  %vm5122_vm6 = vcmask 130048  }
 0x501   :  { %5060 = vadd.xlane.f32.xlu0 %v5059_v48  ;;  %v5073_v39 = vadd.f32 %v5072_v62, %v5071_v60 }
 0x503   :  { %5074 = vadd.xlane.f32.xlu1 %v5073_v39 }
 0x58a   :  { %v5061_v32 = vpop.xlane.xlu0 %5060 }
 0x58b   :  { %v5076_v12 = vmul.f32 0.001953125, %v5061_v32 }
 0x58c   :  { %v5075_v36 = vpop.xlane.xlu1 %5074 }
 0x58d   :  { %v5078_v1 = vmul.f32 %v5076_v12, %v5076_v12  ;;  %v5077_v59 = vmul.f32 0.001953125, %v5075_v36 }
 0x58f   :  { %v5079_v0 = vsub.f32 %v5077_v59, %v5078_v1 }
 0x591   :  { %v5080_v52 = vmax.f32 %v5079_v0, 0.0 }
 0x593   :  { %v5082_v34 = vadd.f32 1e-05, %v5080_v52 }
 0x595   :  { %5459 = vrsqrt.f32 %v5082_v34 }
 0x5a2   :  { %v5460_v54 = vpop.eup %5459 }
 0x5a3   :  { %v5084_v44 = vmul.f32 %v5460_v54, %v5081_v57 }
 0x5a5   :  { %5090 = vperm.xlu0 %5450, %v5084_v44   ;;  %v5086_v4 = vmul.f32 %v5084_v44, %v5076_v12 }
 0x5a7   :  { %v5087_v8 = vsub.f32 %v5085_v2, %v5086_v4 }
 0x5a9   :  { %5100 = vperm.xlu1 %5451, %v5087_v8  }
 0x620   :  { %v5091_v24 = vpop.permute.xlu0 %5090 }
 0x621   :  { %v5093_v61 = vmul.f32 %v5091_v24, %v6316_v58  ;;  %v5094_v17 = vmul.f32 %v5091_v24, %v6318_v15  ;;  %v5095_v56 = vmul.f32 %v5091_v24, %v5044_v6  ;;  %v5096_v51 = vmul.f32 %v5091_v24, %v5045_v18 }
 0x622   :  { %v5097_v22 = vmul.f32 %v5091_v24, %v5046_v29 }
 0x624   :  { %v5101_v53 = vpop.permute.xlu1 %5100 }
 0x625   :  { %v5103_v55 = vadd.f32 %v5101_v53, %v5093_v61  ;;  %v5104_v43 = vadd.f32 %v5101_v53, %v5094_v17  ;;  %v5105_v11 = vadd.f32 %v5101_v53, %v5095_v56  ;;  %v5106_v9 = vadd.f32 %v5101_v53, %v5096_v51 }
 0x626   :  { %v5107_v58 = vadd.f32 %v5101_v53, %v5097_v22 }
 0x627   :  { %v5108_v5 = vmul.f32 0.01, %v5103_v55  ;;  %v5109_v16 = vmul.f32 0.01, %v5104_v43  ;;  %v5110_v7 = vmul.f32 0.01, %v5105_v11 }
 0x628   :  { %v5111_v15 = vmul.f32 0.01, %v5106_v9  ;;  %v5112_v6 = vmul.f32 0.01, %v5107_v58 }
 0x629   :  { %v5113_v63 = vmax.f32 %v5103_v55, %v5108_v5  ;;  %v5114_v23 = vmax.f32 %v5104_v43, %v5109_v16  ;;  %v5115_v3 = vmax.f32 %v5105_v11, %v5110_v7 }
 0x62a   :  { %v5116_v45 = vmax.f32 %v5106_v9, %v5111_v15  ;;  %v5117_v21 = vmax.f32 %v5107_v58, %v5112_v6 }
 0x62b   :  { %5124 = vrot.lane.b32.xlu1 %v5113_v63, %s5489_s19  ;;  %5119 = vrot.lane.b32.xlu0 %v5113_v63, %s5490_s20  ;;  %s6536_s19 = smov 27  }
 0x62f   :  { %5134 = vrot.lane.b32.xlu1 %v5113_v63, %s5486_s0  ;;  %5129 = vrot.lane.b32.xlu0 %v5113_v63, %s5488_s18  ;;  %s6535_s0 = smov 95   ;;  %s5508_s18 = smov 11  }
 0x633   :  { %5201 = vrot.lane.b32.xlu1 %v5115_v3, %s5473_s13  ;;  %5164 = vrot.lane.b32.xlu0 %v5114_v23, %s5481_s23  ;;  %s6530_s13 = smov 33   ;;  %s6534_s23 = smov 29  }
 0x637   :  { %5242 = vrot.lane.b32.xlu1 %v5116_v45, %s5463_s26  ;;  %5237 = vrot.lane.b32.xlu0 %v5116_v45, %s5465_s28  ;;  %s6529_s28 = smov 101  }
 0x63b   :  { %5168 = vrot.lane.b32.xlu1 %v5114_v23, %s5480_s22  ;;  %5244 = vrot.lane.b32.xlu0 %v5117_v21, %s5463_s26  ;;  %s5503_s26 = smov 83   ;;  %s5506_s22 = smov 13  }
 0x63f   :  { %5210 = vrot.lane.b32.xlu1 %v5115_v3, %s5472_s12  ;;  %5205 = vrot.lane.b32.xlu0 %v5115_v3, %s5474_s14  ;;  %s6532_s14 = smov 99  }
 0x643   :  { %5172 = vrot.lane.b32.xlu1 %v5114_v23, %s5482_s24  ;;  %5212 = vrot.lane.b32.xlu0 %v5116_v45, %s5472_s12  ;;  %s6531_s12 = smov 97   ;;  %s5507_s24 = smov 79  }
 0x647   :  { %5176 = vrot.lane.b32.xlu1 %v5114_v23, %s5479_s21  ;;  %5250 = vrot.lane.b32.xlu0 %v5117_v21, %s5466_s29  ;;  %s6533_s29 = smov 31   ;;  %s5505_s21 = smov 15  }
 0x64b   :  { %5254 = vrot.lane.b32.xlu1 %v5117_v21, %s5464_s27  ;;  %5217 = vrot.lane.b32.xlu0 %v5116_v45, %s6528_s5  ;;  %s5504_s27 = smov 81  }
 0x64f   :  { %5180 = vrot.lane.b32.xlu1 %v5114_v23, %s5502_s6  ;;  %5139 = vrot.lane.b32.xlu0 %v5113_v63, %s6529_s28 }
 0x653   :  { %5187 = vrot.lane.b32.xlu1 %v5115_v3, %s5503_s26  ;;  %5185 = vrot.lane.b32.xlu0 %v5114_v23, %s5503_s26 }
 0x657   :  { %5258 = vrot.lane.b32.xlu1 %v5117_v21, %s5497_s10  ;;  %5221 = vrot.lane.b32.xlu0 %v5116_v45, %s6530_s13 }
 0x65b   :  { %5150 = vrot.lane.b32.xlu1 %v5113_v63, %s6531_s12  ;;  %5144 = vrot.lane.b32.xlu0 %v5113_v63, %s6532_s14 }
 0x65f   :  { %5225 = vrot.lane.b32.xlu1 %v5116_v45, %s6533_s29  ;;  %5152 = vrot.lane.b32.xlu0 %v5114_v23, %s6531_s12 }
 0x663   :  { %5193 = vrot.lane.b32.xlu1 %v5115_v3, %s5504_s27  ;;  %5262 = vrot.lane.b32.xlu0 %v5117_v21, %s5505_s21 }
 0x667   :  { %5266 = vrot.lane.b32.xlu1 %v5117_v21, %s5506_s22  ;;  %5229 = vrot.lane.b32.xlu0 %v5116_v45, %s6534_s23 }
 0x66b   :  { %5197 = vrot.lane.b32.xlu1 %v5115_v3, %s5507_s24  ;;  %5159 = vrot.lane.b32.xlu0 %v5114_v23, %s6535_s0 }
 0x66f   :  { %5270 = vrot.lane.b32.xlu1 %v5117_v21, %s5508_s18  ;;  %5233 = vrot.lane.b32.xlu0 %v5116_v45, %s6536_s19 }
 0x69d   :  { %v5125_v25 = vpop.permute.xlu1 %5124  ;;  %v5120_v19 = vpop.permute.xlu0 %5119 }
 0x69e   :  { %5123 = vst.msk [vmem:[%s6492_s7] sm:$0xff] %vm5122_vm6, %v5120_v19 }
 0x69f   :  { %5128 = vst.msk [vmem:[%s6492_s7] sm:$0xff] %vm5127_vm0, %v5125_v25 }
 0x6a1   :  { %v5135_v27 = vpop.permute.xlu1 %5134  ;;  %v5130_v10 = vpop.permute.xlu0 %5129 }
 0x6a2   :  { %5133 = vst.msk [vmem:[%s6492_s7] sm:$0xff] %vm5132_vm8, %v5130_v10 }
 0x6a3   :  { %5138 = vst.msk [vmem:[%s6492_s7] sm:$0xff] %vm5137_vm9, %v5135_v27 }
 0x6a5   :  { %v5202_v18 = vpop.permute.xlu1 %5201  ;;  %v5165_v26 = vpop.permute.xlu0 %5164 }
 0x6a6   :  { %5204 = vst.msk [vmem:[%s6492_s7 + $0x10] sm:$0xff] %vm5122_vm6, %v5202_v18  ;;  %5167 = vst.msk [vmem:[%s6492_s7 + $0x8] sm:$0xff] %vm5122_vm6, %v5165_v26 }
 0x6a9   :  { %v5243_v28 = vpop.permute.xlu1 %5242  ;;  %v5238_v29 = vpop.permute.xlu0 %5237 }
 0x6aa   :  { %5240 = vst.msk [vmem:[%s6492_s7 + $0x18] sm:$0xff] %vm5122_vm6, %v5238_v29 }
 0x6ad   :  { %v5169_v14 = vpop.permute.xlu1 %5168  ;;  %v5245_v13 = vpop.permute.xlu0 %5244 }
 0x6ae   :  { %5171 = vst.msk [vmem:[%s6492_s7 + $0x8] sm:$0xff] %vm5127_vm0, %v5169_v14  ;;  %v5247_v20 = vsel %vm5246_vm1, %v5243_v28, %v5245_v13 }
 0x6af   :  { %5249 = vst.msk [vmem:[%s6492_s7 + $0x18] sm:$0xff] %vm5127_vm0, %v5247_v20 }
 0x6b1   :  { %v5211_v31 = vpop.permute.xlu1 %5210  ;;  %v5206_v35 = vpop.permute.xlu0 %5205 }
 0x6b2   :  { %5208 = vst.msk [vmem:[%s6492_s7 + $0x10] sm:$0xff] %vm5127_vm0, %v5206_v35 }
 0x6b5   :  { %v5173_v38 = vpop.permute.xlu1 %5172  ;;  %v5213_v33 = vpop.permute.xlu0 %5212 }
 0x6b6   :  { %5175 = vst.msk [vmem:[%s6492_s7 + $0x8] sm:$0xff] %vm5132_vm8, %v5173_v38  ;;  %v5214_v40 = vsel %vm6537_vm4, %v5211_v31, %v5213_v33 }
 0x6b7   :  { %5216 = vst.msk [vmem:[%s6492_s7 + $0x10] sm:$0xff] %vm5132_vm8, %v5214_v40 }
 0x6b9   :  { %v5177_v41 = vpop.permute.xlu1 %5176  ;;  %v5251_v42 = vpop.permute.xlu0 %5250 }
 0x6ba   :  { %5179 = vst.msk [vmem:[%s6492_s7 + $0x8] sm:$0xff] %vm5137_vm9, %v5177_v41 }
 0x6bb   :  { %5253 = vst.msk [vmem:[%s6492_s7 + $0x18] sm:$0xff] %vm5132_vm8, %v5251_v42 }
 0x6bd   :  { %v5255_v46 = vpop.permute.xlu1 %5254  ;;  %v5218_v47 = vpop.permute.xlu0 %5217 }
 0x6be   :  { %5257 = vst.msk [vmem:[%s6492_s7 + $0x18] sm:$0xff] %vm5137_vm9, %v5255_v46  ;;  %5220 = vst.msk [vmem:[%s6492_s7 + $0x10] sm:$0xff] %vm5137_vm9, %v5218_v47 }
 0x6c1   :  { %v5181_v30 = vpop.permute.xlu1 %5180  ;;  %v5140_v49 = vpop.permute.xlu0 %5139 }
 0x6c2   :  { %5183 = vst.msk [vmem:[%s6492_s7 + $0x8] sm:$0xff] %vm5142_vm11, %v5181_v30  ;;  %5143 = vst.msk [vmem:[%s6492_s7] sm:$0xff] %vm5142_vm11, %v5140_v49 }
 0x6c5   :  { %v5188_v50 = vpop.permute.xlu1 %5187  ;;  %v5186_v37 = vpop.permute.xlu0 %5185 }
 0x6c6   :  { %v5190_v48 = vsel %vm5189_vm2, %v5186_v37, %v5188_v50 }
 0x6c7   :  { %5192 = vst.msk [vmem:[%s6492_s7 + $0x8] sm:$0xff] %vm5147_vm3, %v5190_v48 }
 0x6c9   :  { %v5259_v60 = vpop.permute.xlu1 %5258  ;;  %v5222_v62 = vpop.permute.xlu0 %5221 }
 0x6ca   :  { %5261 = vst.msk [vmem:[%s6492_s7 + $0x18] sm:$0xff] %vm5142_vm11, %v5259_v60  ;;  %5224 = vst.msk [vmem:[%s6492_s7 + $0x10] sm:$0xff] %vm5142_vm11, %v5222_v62 }
 0x6cd   :  { %v5151_v39 = vpop.permute.xlu1 %5150  ;;  %v5145_v32 = vpop.permute.xlu0 %5144 }
 0x6ce   :  { %5148 = vst.msk [vmem:[%s6492_s7] sm:$0xff] %vm5147_vm3, %v5145_v32 }
 0x6d1   :  { %v5226_v12 = vpop.permute.xlu1 %5225  ;;  %v5153_v36 = vpop.permute.xlu0 %5152 }
 0x6d2   :  { %5228 = vst.msk [vmem:[%s6492_s7 + $0x10] sm:$0xff] %vm5147_vm3, %v5226_v12  ;;  %v5155_v1 = vsel %vm5154_vm5, %v5151_v39, %v5153_v36 }
 0x6d3   :  { %5158 = vst.msk [vmem:[%s6492_s7] sm:$0xff] %vm5157_vm15, %v5155_v1 }
 0x6d5   :  { %v5194_v59 = vpop.permute.xlu1 %5193  ;;  %v5263_v0 = vpop.permute.xlu0 %5262 }
 0x6d6   :  { %5196 = vst.msk [vmem:[%s6492_s7 + $0x8] sm:$0xff] %vm5157_vm15, %v5194_v59 }
 0x6d7   :  { %5265 = vst.msk [vmem:[%s6492_s7 + $0x18] sm:$0xff] %vm5147_vm3, %v5263_v0 }
 0x6d9   :  { %v5267_v52 = vpop.permute.xlu1 %5266  ;;  %v5230_v34 = vpop.permute.xlu0 %5229 }
 0x6da   :  { %5269 = vst.msk [vmem:[%s6492_s7 + $0x18] sm:$0xff] %vm5157_vm15, %v5267_v52  ;;  %5232 = vst.msk [vmem:[%s6492_s7 + $0x10] sm:$0xff] %vm5157_vm15, %v5230_v34 }
 0x6dd   :  { %v5198_v57 = vpop.permute.xlu1 %5197  ;;  %v5160_v54 = vpop.permute.xlu0 %5159 }
 0x6de   :  { %5200 = vst.msk [vmem:[%s6492_s7 + $0x8] sm:$0xff] %vm5162_vm10, %v5198_v57  ;;  %5163 = vst.msk [vmem:[%s6492_s7] sm:$0xff] %vm5162_vm10, %v5160_v54 }
 0x6e1   :  { %v5271_v44 = vpop.permute.xlu1 %5270  ;;  %v5234_v2 = vpop.permute.xlu0 %5233 }
 0x6e2   :  { %5273 = vst.msk [vmem:[%s6492_s7 + $0x18] sm:$0xff] %vm5162_vm10, %v5271_v44  ;;  %5236 = vst.msk [vmem:[%s6492_s7 + $0x10] sm:$0xff] %vm5162_vm10, %v5234_v2 }

</bundles_post_ra>
